<compile_context>
chip_gen: v6e
topology: v6e:2x2x1
jax: 0.10.0
libtpu: 0.0.40
codegen_flags: <defaults>
</compile_context>

<pallas_src>
import math

import jax
import jax.numpy as jnp
from jax.experimental import pallas as pl
from jax.experimental.pallas import tpu as pltpu


def _concentration_kernel(vs_ref, ve_ref, mask_ref,
                          wqk_ref, ones_ref, wv_ref,
                          w1T_ref, b1_ref, w2T_ref, b2_ref,
                          vC_ref, vM_ref,
                          cm_ref):
    TM, L = vs_ref.shape                       # L = P*H (128 when H divides 128)
    E = mask_ref.shape[-1] // L
    K = w2T_ref.shape[0] // L - 1              # n_focus_on (static)
    f32 = jnp.float32
    NEG_BIG = jnp.float32(-1e30)

    vs = vs_ref[...]                           # (TM, L) native dtype
    vs32 = vs.astype(f32)

    # per-agent  vs Wq Wk^T / sqrt(H)   (block-diagonal weight -> full 128-wide MXU K)
    qk = jnp.dot(vs, wqk_ref[...], preferred_element_type=f32)         # (TM, L)
    ones_blk = ones_ref[...]                   # (L, L) block-diagonal ones

    def ve_e(e):                               # 128-aligned lane slice, no shuffle
        return ve_ref[:, e * L:(e + 1) * L].astype(f32)

    def dead_e(e):
        return mask_ref[:, e * L:(e + 1) * L] != 0

    # ---- pass 1: masked logits, broadcast over each agent's lane group; running max.
    # (qk*ve_e) @ ones_blk performs the per-agent sum over H on the MXU and leaves the
    # result broadcast across the agent's H lanes, so everything below is elementwise.
    m = jnp.full((TM, L), NEG_BIG, f32)
    for e in range(E):
        c = jnp.dot(qk * ve_e(e), ones_blk, preferred_element_type=f32)
        c = jnp.where(dead_e(e), NEG_BIG, c)
        cm_ref[e] = c
        m = jnp.maximum(m, c)

    # ---- pass 2: exp, denom, score-weighted ve sum, running top-1 max (fused).
    denom = jnp.zeros((TM, L), f32)
    wsum = jnp.zeros((TM, L), f32)
    mx = jnp.zeros((TM, L), f32)
    for e in range(E):
        p = jnp.where(dead_e(e), 0.0, jnp.exp(cm_ref[e] - m))          # EUP
        cm_ref[e] = p                                                   # reuse scratch
        denom = denom + p
        wsum = wsum + p * ve_e(e)
        mx = jnp.maximum(mx, p)

    denom_safe = jnp.where(denom > 0.0, denom, 1.0)
    weighted = wsum / denom_safe               # == softmax(score) @ ve (0 when all-dead)

    # ---- v_M = ReLU([vs, Va] W1^T + b1),  Va = (score @ ve) Wv
    va = jnp.dot(weighted, wv_ref[...], preferred_element_type=f32)
    vm = (jnp.dot(vs32, w1T_ref[0:L, :], preferred_element_type=f32)
          + jnp.dot(va, w1T_ref[L:2 * L, :], preferred_element_type=f32)
          + b1_ref[...])
    vM_ref[...] = jnp.maximum(vm, 0.0).astype(vM_ref.dtype)            # unmasked 128-lane store

    # ---- top-K (descending, first-index tie-break) fused with the forward MLP.
    # Ranking on unnormalized p is identical to ranking on score (positive scale).
    acc = jnp.dot(vs32, w2T_ref[0:L, :], preferred_element_type=f32) + b2_ref[...]
    for k in range(K):
        found = jnp.zeros((TM, L), jnp.bool_)
        row = jnp.zeros((TM, L), f32)
        mx_next = jnp.zeros((TM, L), f32)
        for e in range(E):
            w = cm_ref[e]
            sel = jnp.logical_and(w == mx, jnp.logical_not(found))
            found = jnp.logical_or(found, sel)
            row = row + jnp.where(sel, ve_e(e), 0.0)
            if k + 1 < K:
                w = jnp.where(sel, -1.0, w)    # p in [0,1] -> -1 is a safe drop sentinel
                cm_ref[e] = w
                mx_next = jnp.maximum(mx_next, w)
        acc = acc + jnp.dot(row, w2T_ref[(k + 1) * L:(k + 2) * L, :],
                            preferred_element_type=f32)
        mx = mx_next
    vC_ref[...] = jnp.maximum(acc, 0.0).astype(vC_ref.dtype)


def _choose_tile_rows(n_rows, E, L, ve_itemsize, vs_itemsize):
    # Keep the double-buffered working set well under v5e's 16 MiB scoped-VMEM default
    # (and far under v7x's 64 MiB physical VMEM).  Candidates are multiples of 32 so the
    # int8 mask / any bf16 inputs stay sublane-tile aligned.
    budget = 8 << 20

    def tile_bytes(tm):
        return (2 * tm * E * L * ve_itemsize      # ve block (dominant), double-buffered
                + 2 * tm * E * L                  # int8 mask block
                + 2 * tm * L * vs_itemsize        # vs block
                + 2 * 2 * tm * L * 4              # two f32 output blocks
                + E * tm * L * 4)                 # f32 scratch

    for tm in (256, 128, 64, 32):                 # prefer 256 (amortizes ~0.35us/step)
        if tile_bytes(tm) <= budget and n_rows >= 2 * tm:
            return tm
    return 32


def concentration_forward(vs, ve, ve_dead, params, n_focus_on, *, tile_rows=None):
    """vs:(B,A,1,H) ve:(B,A,E,H) ve_dead:(B,A,E) -> (v_C_final, v_M_final), each (B,A,H)."""
    B, A, one, H = vs.shape
    assert one == 1
    E = ve.shape[2]
    N = B * A
    K = int(n_focus_on)

    # Pack P agents per 128-lane row (P=4 at H=32); weights become block-diagonal (L,L).
    P = 128 // H if (H <= 128 and 128 % H == 0) else 1
    L = P * H
    f32 = jnp.float32
    eye_p = jnp.eye(P, dtype=f32)

    def bd(w):  # (H, H) -> block-diagonal (L, L), P copies
        return jnp.kron(eye_p, w.astype(f32))

    wqk = bd(jnp.dot(params["CT_W_query"].astype(f32),
                     params["CT_W_key"].astype(f32).T) * (1.0 / math.sqrt(H)))
    ones_blk = jnp.kron(eye_p, jnp.ones((H, H), f32))
    wv = bd(params["CT_W_val"])
    w1 = params["mlp1_w"]                                  # (H, 2H) torch Linear layout
    w1T = jnp.concatenate([bd(w1[:, :H].T), bd(w1[:, H:].T)], axis=0)        # (2L, L)
    b1 = jnp.tile(params["mlp1_b"].astype(f32).reshape(1, H), (1, P))        # (1, L)
    w2 = params["mlp2_w"]                                  # (H, (K+1)H)
    w2T = jnp.concatenate([bd(w2[:, j * H:(j + 1) * H].T) for j in range(K + 1)],
                          axis=0)                                            # ((K+1)L, L)
    b2 = jnp.tile(params["mlp2_b"].astype(f32).reshape(1, H), (1, P))

    n_rows = -(-N // P)
    TM = tile_rows if tile_rows is not None else _choose_tile_rows(
        n_rows, E, L, ve.dtype.itemsize, vs.dtype.itemsize)
    n_blocks = -(-n_rows // TM)
    if tile_rows is None and n_blocks > 1 and n_blocks % 2 == 1 and TM >= 64:
        TM //= 2                      # v7x megacore: prefer an even grid-step count
        n_blocks = -(-n_rows // TM)
    R = n_blocks * TM                 # padded packed-row count
    Np = R * P                        # padded agent count

    def pad_rows(x, fill=0):
        pad = Np - x.shape[0]
        if pad == 0:
            return x
        widths = ((0, pad),) + ((0, 0),) * (x.ndim - 1)
        return jnp.pad(x, widths, constant_values=fill)

    # Keep vs/ve in their native dtype; mask travels as int8, broadcast over H so the
    # kernel's mask slices are lane-aligned with the packed ve slices.
    vs_f = pad_rows(vs.reshape(N, H)).reshape(R, L)
    ve_f = (pad_rows(ve.reshape(N, E, H))
            .reshape(R, P, E, H).transpose(0, 2, 1, 3).reshape(R, E * L))
    dead = pad_rows((ve_dead.reshape(N, E) != 0).astype(jnp.int8), fill=1)   # pad rows dead
    mask_f = jnp.broadcast_to(
        dead.reshape(R, P, E).transpose(0, 2, 1)[:, :, :, None],
        (R, E, P, H)).reshape(R, E * L)

    row = lambda shape: pl.BlockSpec(shape, lambda i: (i, 0))
    cst = lambda shape: pl.BlockSpec(shape, lambda i: (0, 0))   # constant block -> DMA'd once

    tile_bytes = (2 * TM * E * L * ve.dtype.itemsize + 2 * TM * E * L
                  + 2 * TM * L * vs.dtype.itemsize + 2 * 2 * TM * L * 4
                  + E * TM * L * 4
                  + 2 * ((3 + 2 + (K + 1)) * L * L + 2 * L) * 4)
    vmem_limit = int(min(32 << 20, max(16 << 20, 2 * tile_bytes)))

    vC, vM = pl.pallas_call(
        _concentration_kernel,
        out_shape=(jax.ShapeDtypeStruct((R, L), jnp.float32),
                   jax.ShapeDtypeStruct((R, L), jnp.float32)),
        grid=(n_blocks,),
        in_specs=[
            row((TM, L)),            # vs, packed
            row((TM, E * L)),        # ve, packed + entity-major lane chunks
            row((TM, E * L)),        # dead mask (int8, broadcast over H)
            cst((L, L)),             # block-diag Wq Wk^T / sqrt(H)
            cst((L, L)),             # block-diag ones (per-agent sum+broadcast on MXU)
            cst((L, L)),             # block-diag Wv
            cst((2 * L, L)),         # motivate-MLP weight^T (block-diag per H slab)
            cst((1, L)),             # motivate-MLP bias (tiled per agent)
            cst(((K + 1) * L, L)),   # forward-MLP weight^T (block-diag per H slab)
            cst((1, L)),             # forward-MLP bias (tiled per agent)
        ],
        out_specs=(row((TM, L)), row((TM, L))),
        scratch_shapes=[pltpu.VMEM((E, TM, L), jnp.float32)],
        compiler_params=pltpu.CompilerParams(
            dimension_semantics=("parallel",),
            vmem_limit_bytes=vmem_limit),
    )(vs_f, ve_f, mask_f, wqk, ones_blk, wv, w1T, b1, w2T, b2)

    vC = vC.reshape(Np, H)[:N].reshape(B, A, H)
    vM = vM.reshape(Np, H)[:N].reshape(B, A, H)
    return vC, vM


def concentration_reference(vs, ve, ve_dead, params, n_focus_on):
    """Pure-JAX reference mirroring the torch module (skip_connect=False)."""
    B, A, _, H = vs.shape
    q = jnp.einsum("bash,hk->bask", vs, params["CT_W_query"])
    k = jnp.einsum("baeh,hk->baek", ve, params["CT_W_key"])
    compat = jnp.einsum("bask,baek->base", q, k)[:, :, 0, :] * (1.0 / math.sqrt(H))
    dead = ve_dead != 0
    compat = jnp.where(dead, -jnp.inf, compat)
    score = jnp.nan_to_num(jax.nn.softmax(compat, axis=-1), nan=0.0)
    va = jnp.einsum("bae,baeh->bah", score,
                    jnp.einsum("baeh,hk->baek", ve, params["CT_W_val"]))
    v_m = jnp.concatenate([vs[:, :, 0, :], va], axis=-1)
    v_m_final = jax.nn.relu(v_m @ params["mlp1_w"].T + params["mlp1_b"])
    idx = jnp.argsort(-score, axis=-1)[..., :n_focus_on]          # stable: first index wins ties
    ve_c = jnp.take_along_axis(ve, idx[..., None], axis=2)
    v_c = jnp.concatenate([vs, ve_c], axis=2).reshape(B, A, (n_focus_on + 1) * H)
    v_c_final = jax.nn.relu(v_c @ params["mlp2_w"].T + params["mlp2_b"])
    return v_c_final, v_m_final


def init_params(key, h_dim, n_focus_on):
    """Deterministic synthetic init mirroring Concentration.init_parameters shapes."""
    ks = jax.random.split(key, 7)

    def unif(k, shape, fan_last):
        s = 1.0 / math.sqrt(fan_last)
        return jax.random.uniform(k, shape, jnp.float32, -s, s)

    return {
        "CT_W_query": unif(ks[0], (h_dim, h_dim), h_dim),
        "CT_W_key":   unif(ks[1], (h_dim, h_dim), h_dim),
        "CT_W_val":   unif(ks[2], (h_dim, h_dim), h_dim),
        "mlp1_w": unif(ks[3], (h_dim, 2 * h_dim), 2 * h_dim),
        "mlp1_b": unif(ks[4], (h_dim,), h_dim),
        "mlp2_w": unif(ks[5], (h_dim, (n_focus_on + 1) * h_dim),
                       (n_focus_on + 1) * h_dim),
        "mlp2_b": unif(ks[6], (h_dim,), h_dim),
    }


if __name__ == "__main__":
    B, A, E, H = 2, 4, 8, 32
    n_focus_on = 3

    key = jax.random.PRNGKey(0)
    k_vs, k_ve, k_dead, k_par = jax.random.split(key, 4)

    vs = jax.random.normal(k_vs, (B, A, 1, H), jnp.float32)
    ve = jax.random.normal(k_ve, (B, A, E, H), jnp.float32)
    ve_dead = (jax.random.uniform(k_dead, (B, A, E)) < 0.25).astype(jnp.float32)
    params = init_params(k_par, H, n_focus_on)

    # TODO(synk): skip_connect=True path not implemented (module default is False);
    # adopt_selfattn asserts in the reference module itself.
    v_C_final, v_M_final = concentration_forward(vs, ve, ve_dead, params, n_focus_on)
    jax.block_until_ready((v_C_final, v_M_final))

    assert v_C_final.shape == (B, A, H) and v_M_final.shape == (B, A, H)
    assert jnp.all(jnp.isfinite(v_C_final)) and jnp.all(jnp.isfinite(v_M_final))

    ref_c, ref_m = concentration_reference(vs, ve, ve_dead, params, n_focus_on)
    assert jnp.allclose(v_M_final, ref_m, rtol=2e-3, atol=2e-3), \
        float(jnp.max(jnp.abs(v_M_final - ref_m)))
    assert jnp.allclose(v_C_final, ref_c, rtol=2e-3, atol=2e-3), \
        float(jnp.max(jnp.abs(v_C_final - ref_c)))

    print("KERNEL_OK")
</pallas_src>

<mosaic_0001>
module attributes {stable_mosaic.version = 11 : i64} {
  func.func @_concentration_kernel(%arg0: i32, %arg1: memref<32x128xf32, #tpu.memory_space<vmem>>, %arg2: memref<32x1024xf32, #tpu.memory_space<vmem>>, %arg3: memref<32x1024xi8, #tpu.memory_space<vmem>>, %arg4: memref<128x128xf32, #tpu.memory_space<vmem>>, %arg5: memref<128x128xf32, #tpu.memory_space<vmem>>, %arg6: memref<128x128xf32, #tpu.memory_space<vmem>>, %arg7: memref<256x128xf32, #tpu.memory_space<vmem>>, %arg8: memref<1x128xf32, #tpu.memory_space<vmem>>, %arg9: memref<512x128xf32, #tpu.memory_space<vmem>>, %arg10: memref<1x128xf32, #tpu.memory_space<vmem>>, %arg11: memref<32x128xf32, #tpu.memory_space<vmem>>, %arg12: memref<32x128xf32, #tpu.memory_space<vmem>>, %arg13: memref<8x32x128xf32, #tpu.memory_space<vmem>>) attributes {dimension_semantics = [#tpu.dimension_semantics<parallel>], iteration_bounds = array<i64: 1>, scalar_prefetch = 0 : i64, scratch_operands = 1 : i64, tpu.core_type = #tpu.core_type<tc>, window_params = [{transform_indices = @transform_0, window_bounds = array<i64: 32, 128>}, {transform_indices = @transform_1, window_bounds = array<i64: 32, 1024>}, {transform_indices = @transform_2, window_bounds = array<i64: 32, 1024>}, {pipeline_mode = #tpu.pipeline_mode<synchronous>, transform_indices = @transform_3, window_bounds = array<i64: 128, 128>}, {pipeline_mode = #tpu.pipeline_mode<synchronous>, transform_indices = @transform_4, window_bounds = array<i64: 128, 128>}, {pipeline_mode = #tpu.pipeline_mode<synchronous>, transform_indices = @transform_5, window_bounds = array<i64: 128, 128>}, {pipeline_mode = #tpu.pipeline_mode<synchronous>, transform_indices = @transform_6, window_bounds = array<i64: 256, 128>}, {pipeline_mode = #tpu.pipeline_mode<synchronous>, transform_indices = @transform_7, window_bounds = array<i64: 1, 128>}, {pipeline_mode = #tpu.pipeline_mode<synchronous>, transform_indices = @transform_8, window_bounds = array<i64: 512, 128>}, {pipeline_mode = #tpu.pipeline_mode<synchronous>, transform_indices = @transform_9, window_bounds = array<i64: 1, 128>}, {transform_indices = @transform_10, window_bounds = array<i64: 32, 128>}, {transform_indices = @transform_11, window_bounds = array<i64: 32, 128>}]} {
    %c0 = arith.constant 0 : index
    %c0_0 = arith.constant 0 : index
    %0 = vector.load %arg1[%c0, %c0_0] : memref<32x128xf32, #tpu.memory_space<vmem>>, vector<32x128xf32>
    %c0_1 = arith.constant 0 : index
    %c0_2 = arith.constant 0 : index
    %1 = vector.load %arg4[%c0_1, %c0_2] : memref<128x128xf32, #tpu.memory_space<vmem>>, vector<128x128xf32>
    %cst = arith.constant dense<0.000000e+00> : vector<32x128xf32>
    %2 = tpu.matmul %0, %1, %cst {dimension_numbers = #tpu.dot_dimension_numbers<[1], [0], [0], [1], [0, 0, 1, 1], [], []>} : vector<32x128xf32>, vector<128x128xf32>, vector<32x128xf32> -> vector<32x128xf32>
    %c0_3 = arith.constant 0 : index
    %c0_4 = arith.constant 0 : index
    %3 = vector.load %arg5[%c0_3, %c0_4] : memref<128x128xf32, #tpu.memory_space<vmem>>, vector<128x128xf32>
    %cst_5 = arith.constant -1.000000e+30 : f32
    %4 = vector.broadcast %cst_5 : f32 to vector<32x128xf32>
    %c0_6 = arith.constant 0 : index
    %c0_7 = arith.constant 0 : index
    %5 = vector.load %arg2[%c0_6, %c0_7] : memref<32x1024xf32, #tpu.memory_space<vmem>>, vector<32x128xf32>
    %6 = arith.mulf %2, %5 : vector<32x128xf32>
    %cst_8 = arith.constant dense<0.000000e+00> : vector<32x128xf32>
    %7 = tpu.matmul %6, %3, %cst_8 {dimension_numbers = #tpu.dot_dimension_numbers<[1], [0], [0], [1], [0, 0, 1, 1], [], []>} : vector<32x128xf32>, vector<128x128xf32>, vector<32x128xf32> -> vector<32x128xf32>
    %c0_9 = arith.constant 0 : index
    %c0_10 = arith.constant 0 : index
    %8 = vector.load %arg3[%c0_9, %c0_10] : memref<32x1024xi8, #tpu.memory_space<vmem>>, vector<32x128xi8>
    %c0_i8 = arith.constant 0 : i8
    %9 = vector.broadcast %c0_i8 : i8 to vector<32x128xi8>
    %10 = arith.cmpi ne, %8, %9 : vector<32x128xi8>
    %cst_11 = arith.constant -1.000000e+30 : f32
    %11 = vector.broadcast %cst_11 : f32 to vector<32x128xf32>
    %12 = arith.select %10, %11, %7 : vector<32x128xi1>, vector<32x128xf32>
    %c0_12 = arith.constant 0 : index
    %c0_13 = arith.constant 0 : index
    %c0_14 = arith.constant 0 : index
    %13 = vector.load %arg13[%c0_12, %c0_13, %c0_14] : memref<8x32x128xf32, #tpu.memory_space<vmem>>, vector<1x32x128xf32>
    %14 = vector.shape_cast %13 : vector<1x32x128xf32> to vector<32x128xf32>
    %15 = vector.shape_cast %12 : vector<32x128xf32> to vector<1x32x128xf32>
    tpu.vector_store %arg13[%c0_12, %c0_13, %c0_14], %15 {strides = array<i32>} : memref<8x32x128xf32, #tpu.memory_space<vmem>>, vector<1x32x128xf32>,
    %16 = arith.maximumf %4, %12 : vector<32x128xf32>
    %c0_15 = arith.constant 0 : index
    %c128 = arith.constant 128 : index
    %17 = vector.load %arg2[%c0_15, %c128] : memref<32x1024xf32, #tpu.memory_space<vmem>>, vector<32x128xf32>
    %18 = arith.mulf %2, %17 : vector<32x128xf32>
    %cst_16 = arith.constant dense<0.000000e+00> : vector<32x128xf32>
    %19 = tpu.matmul %18, %3, %cst_16 {dimension_numbers = #tpu.dot_dimension_numbers<[1], [0], [0], [1], [0, 0, 1, 1], [], []>} : vector<32x128xf32>, vector<128x128xf32>, vector<32x128xf32> -> vector<32x128xf32>
    %c0_17 = arith.constant 0 : index
    %c128_18 = arith.constant 128 : index
    %20 = vector.load %arg3[%c0_17, %c128_18] : memref<32x1024xi8, #tpu.memory_space<vmem>>, vector<32x128xi8>
    %c0_i8_19 = arith.constant 0 : i8
    %21 = vector.broadcast %c0_i8_19 : i8 to vector<32x128xi8>
    %22 = arith.cmpi ne, %20, %21 : vector<32x128xi8>
    %cst_20 = arith.constant -1.000000e+30 : f32
    %23 = vector.broadcast %cst_20 : f32 to vector<32x128xf32>
    %24 = arith.select %22, %23, %19 : vector<32x128xi1>, vector<32x128xf32>
    %c1 = arith.constant 1 : index
    %c0_21 = arith.constant 0 : index
    %c0_22 = arith.constant 0 : index
    %25 = vector.load %arg13[%c1, %c0_21, %c0_22] : memref<8x32x128xf32, #tpu.memory_space<vmem>>, vector<1x32x128xf32>
    %26 = vector.shape_cast %25 : vector<1x32x128xf32> to vector<32x128xf32>
    %27 = vector.shape_cast %24 : vector<32x128xf32> to vector<1x32x128xf32>
    tpu.vector_store %arg13[%c1, %c0_21, %c0_22], %27 {strides = array<i32>} : memref<8x32x128xf32, #tpu.memory_space<vmem>>, vector<1x32x128xf32>,
    %28 = arith.maximumf %16, %24 : vector<32x128xf32>
    %c0_23 = arith.constant 0 : index
    %c256 = arith.constant 256 : index
    %29 = vector.load %arg2[%c0_23, %c256] : memref<32x1024xf32, #tpu.memory_space<vmem>>, vector<32x128xf32>
    %30 = arith.mulf %2, %29 : vector<32x128xf32>
    %cst_24 = arith.constant dense<0.000000e+00> : vector<32x128xf32>
    %31 = tpu.matmul %30, %3, %cst_24 {dimension_numbers = #tpu.dot_dimension_numbers<[1], [0], [0], [1], [0, 0, 1, 1], [], []>} : vector<32x128xf32>, vector<128x128xf32>, vector<32x128xf32> -> vector<32x128xf32>
    %c0_25 = arith.constant 0 : index
    %c256_26 = arith.constant 256 : index
    %32 = vector.load %arg3[%c0_25, %c256_26] : memref<32x1024xi8, #tpu.memory_space<vmem>>, vector<32x128xi8>
    %c0_i8_27 = arith.constant 0 : i8
    %33 = vector.broadcast %c0_i8_27 : i8 to vector<32x128xi8>
    %34 = arith.cmpi ne, %32, %33 : vector<32x128xi8>
    %cst_28 = arith.constant -1.000000e+30 : f32
    %35 = vector.broadcast %cst_28 : f32 to vector<32x128xf32>
    %36 = arith.select %34, %35, %31 : vector<32x128xi1>, vector<32x128xf32>
    %c2 = arith.constant 2 : index
    %c0_29 = arith.constant 0 : index
    %c0_30 = arith.constant 0 : index
    %37 = vector.load %arg13[%c2, %c0_29, %c0_30] : memref<8x32x128xf32, #tpu.memory_space<vmem>>, vector<1x32x128xf32>
    %38 = vector.shape_cast %37 : vector<1x32x128xf32> to vector<32x128xf32>
    %39 = vector.shape_cast %36 : vector<32x128xf32> to vector<1x32x128xf32>
    tpu.vector_store %arg13[%c2, %c0_29, %c0_30], %39 {strides = array<i32>} : memref<8x32x128xf32, #tpu.memory_space<vmem>>, vector<1x32x128xf32>,
    %40 = arith.maximumf %28, %36 : vector<32x128xf32>
    %c0_31 = arith.constant 0 : index
    %c384 = arith.constant 384 : index
    %41 = vector.load %arg2[%c0_31, %c384] : memref<32x1024xf32, #tpu.memory_space<vmem>>, vector<32x128xf32>
    %42 = arith.mulf %2, %41 : vector<32x128xf32>
    %cst_32 = arith.constant dense<0.000000e+00> : vector<32x128xf32>
    %43 = tpu.matmul %42, %3, %cst_32 {dimension_numbers = #tpu.dot_dimension_numbers<[1], [0], [0], [1], [0, 0, 1, 1], [], []>} : vector<32x128xf32>, vector<128x128xf32>, vector<32x128xf32> -> vector<32x128xf32>
    %c0_33 = arith.constant 0 : index
    %c384_34 = arith.constant 384 : index
    %44 = vector.load %arg3[%c0_33, %c384_34] : memref<32x1024xi8, #tpu.memory_space<vmem>>, vector<32x128xi8>
    %c0_i8_35 = arith.constant 0 : i8
    %45 = vector.broadcast %c0_i8_35 : i8 to vector<32x128xi8>
    %46 = arith.cmpi ne, %44, %45 : vector<32x128xi8>
    %cst_36 = arith.constant -1.000000e+30 : f32
    %47 = vector.broadcast %cst_36 : f32 to vector<32x128xf32>
    %48 = arith.select %46, %47, %43 : vector<32x128xi1>, vector<32x128xf32>
    %c3 = arith.constant 3 : index
    %c0_37 = arith.constant 0 : index
    %c0_38 = arith.constant 0 : index
    %49 = vector.load %arg13[%c3, %c0_37, %c0_38] : memref<8x32x128xf32, #tpu.memory_space<vmem>>, vector<1x32x128xf32>
    %50 = vector.shape_cast %49 : vector<1x32x128xf32> to vector<32x128xf32>
    %51 = vector.shape_cast %48 : vector<32x128xf32> to vector<1x32x128xf32>
    tpu.vector_store %arg13[%c3, %c0_37, %c0_38], %51 {strides = array<i32>} : memref<8x32x128xf32, #tpu.memory_space<vmem>>, vector<1x32x128xf32>,
    %52 = arith.maximumf %40, %48 : vector<32x128xf32>
    %c0_39 = arith.constant 0 : index
    %c512 = arith.constant 512 : index
    %53 = vector.load %arg2[%c0_39, %c512] : memref<32x1024xf32, #tpu.memory_space<vmem>>, vector<32x128xf32>
    %54 = arith.mulf %2, %53 : vector<32x128xf32>
    %cst_40 = arith.constant dense<0.000000e+00> : vector<32x128xf32>
    %55 = tpu.matmul %54, %3, %cst_40 {dimension_numbers = #tpu.dot_dimension_numbers<[1], [0], [0], [1], [0, 0, 1, 1], [], []>} : vector<32x128xf32>, vector<128x128xf32>, vector<32x128xf32> -> vector<32x128xf32>
    %c0_41 = arith.constant 0 : index
    %c512_42 = arith.constant 512 : index
    %56 = vector.load %arg3[%c0_41, %c512_42] : memref<32x1024xi8, #tpu.memory_space<vmem>>, vector<32x128xi8>
    %c0_i8_43 = arith.constant 0 : i8
    %57 = vector.broadcast %c0_i8_43 : i8 to vector<32x128xi8>
    %58 = arith.cmpi ne, %56, %57 : vector<32x128xi8>
    %cst_44 = arith.constant -1.000000e+30 : f32
    %59 = vector.broadcast %cst_44 : f32 to vector<32x128xf32>
    %60 = arith.select %58, %59, %55 : vector<32x128xi1>, vector<32x128xf32>
    %c4 = arith.constant 4 : index
    %c0_45 = arith.constant 0 : index
    %c0_46 = arith.constant 0 : index
    %61 = vector.load %arg13[%c4, %c0_45, %c0_46] : memref<8x32x128xf32, #tpu.memory_space<vmem>>, vector<1x32x128xf32>
    %62 = vector.shape_cast %61 : vector<1x32x128xf32> to vector<32x128xf32>
    %63 = vector.shape_cast %60 : vector<32x128xf32> to vector<1x32x128xf32>
    tpu.vector_store %arg13[%c4, %c0_45, %c0_46], %63 {strides = array<i32>} : memref<8x32x128xf32, #tpu.memory_space<vmem>>, vector<1x32x128xf32>,
    %64 = arith.maximumf %52, %60 : vector<32x128xf32>
    %c0_47 = arith.constant 0 : index
    %c640 = arith.constant 640 : index
    %65 = vector.load %arg2[%c0_47, %c640] : memref<32x1024xf32, #tpu.memory_space<vmem>>, vector<32x128xf32>
    %66 = arith.mulf %2, %65 : vector<32x128xf32>
    %cst_48 = arith.constant dense<0.000000e+00> : vector<32x128xf32>
    %67 = tpu.matmul %66, %3, %cst_48 {dimension_numbers = #tpu.dot_dimension_numbers<[1], [0], [0], [1], [0, 0, 1, 1], [], []>} : vector<32x128xf32>, vector<128x128xf32>, vector<32x128xf32> -> vector<32x128xf32>
    %c0_49 = arith.constant 0 : index
    %c640_50 = arith.constant 640 : index
    %68 = vector.load %arg3[%c0_49, %c640_50] : memref<32x1024xi8, #tpu.memory_space<vmem>>, vector<32x128xi8>
    %c0_i8_51 = arith.constant 0 : i8
    %69 = vector.broadcast %c0_i8_51 : i8 to vector<32x128xi8>
    %70 = arith.cmpi ne, %68, %69 : vector<32x128xi8>
    %cst_52 = arith.constant -1.000000e+30 : f32
    %71 = vector.broadcast %cst_52 : f32 to vector<32x128xf32>
    %72 = arith.select %70, %71, %67 : vector<32x128xi1>, vector<32x128xf32>
    %c5 = arith.constant 5 : index
    %c0_53 = arith.constant 0 : index
    %c0_54 = arith.constant 0 : index
    %73 = vector.load %arg13[%c5, %c0_53, %c0_54] : memref<8x32x128xf32, #tpu.memory_space<vmem>>, vector<1x32x128xf32>
    %74 = vector.shape_cast %73 : vector<1x32x128xf32> to vector<32x128xf32>
    %75 = vector.shape_cast %72 : vector<32x128xf32> to vector<1x32x128xf32>
    tpu.vector_store %arg13[%c5, %c0_53, %c0_54], %75 {strides = array<i32>} : memref<8x32x128xf32, #tpu.memory_space<vmem>>, vector<1x32x128xf32>,
    %76 = arith.maximumf %64, %72 : vector<32x128xf32>
    %c0_55 = arith.constant 0 : index
    %c768 = arith.constant 768 : index
    %77 = vector.load %arg2[%c0_55, %c768] : memref<32x1024xf32, #tpu.memory_space<vmem>>, vector<32x128xf32>
    %78 = arith.mulf %2, %77 : vector<32x128xf32>
    %cst_56 = arith.constant dense<0.000000e+00> : vector<32x128xf32>
    %79 = tpu.matmul %78, %3, %cst_56 {dimension_numbers = #tpu.dot_dimension_numbers<[1], [0], [0], [1], [0, 0, 1, 1], [], []>} : vector<32x128xf32>, vector<128x128xf32>, vector<32x128xf32> -> vector<32x128xf32>
    %c0_57 = arith.constant 0 : index
    %c768_58 = arith.constant 768 : index
    %80 = vector.load %arg3[%c0_57, %c768_58] : memref<32x1024xi8, #tpu.memory_space<vmem>>, vector<32x128xi8>
    %c0_i8_59 = arith.constant 0 : i8
    %81 = vector.broadcast %c0_i8_59 : i8 to vector<32x128xi8>
    %82 = arith.cmpi ne, %80, %81 : vector<32x128xi8>
    %cst_60 = arith.constant -1.000000e+30 : f32
    %83 = vector.broadcast %cst_60 : f32 to vector<32x128xf32>
    %84 = arith.select %82, %83, %79 : vector<32x128xi1>, vector<32x128xf32>
    %c6 = arith.constant 6 : index
    %c0_61 = arith.constant 0 : index
    %c0_62 = arith.constant 0 : index
    %85 = vector.load %arg13[%c6, %c0_61, %c0_62] : memref<8x32x128xf32, #tpu.memory_space<vmem>>, vector<1x32x128xf32>
    %86 = vector.shape_cast %85 : vector<1x32x128xf32> to vector<32x128xf32>
    %87 = vector.shape_cast %84 : vector<32x128xf32> to vector<1x32x128xf32>
    tpu.vector_store %arg13[%c6, %c0_61, %c0_62], %87 {strides = array<i32>} : memref<8x32x128xf32, #tpu.memory_space<vmem>>, vector<1x32x128xf32>,
    %88 = arith.maximumf %76, %84 : vector<32x128xf32>
    %c0_63 = arith.constant 0 : index
    %c896 = arith.constant 896 : index
    %89 = vector.load %arg2[%c0_63, %c896] : memref<32x1024xf32, #tpu.memory_space<vmem>>, vector<32x128xf32>
    %90 = arith.mulf %2, %89 : vector<32x128xf32>
    %cst_64 = arith.constant dense<0.000000e+00> : vector<32x128xf32>
    %91 = tpu.matmul %90, %3, %cst_64 {dimension_numbers = #tpu.dot_dimension_numbers<[1], [0], [0], [1], [0, 0, 1, 1], [], []>} : vector<32x128xf32>, vector<128x128xf32>, vector<32x128xf32> -> vector<32x128xf32>
    %c0_65 = arith.constant 0 : index
    %c896_66 = arith.constant 896 : index
    %92 = vector.load %arg3[%c0_65, %c896_66] : memref<32x1024xi8, #tpu.memory_space<vmem>>, vector<32x128xi8>
    %c0_i8_67 = arith.constant 0 : i8
    %93 = vector.broadcast %c0_i8_67 : i8 to vector<32x128xi8>
    %94 = arith.cmpi ne, %92, %93 : vector<32x128xi8>
    %cst_68 = arith.constant -1.000000e+30 : f32
    %95 = vector.broadcast %cst_68 : f32 to vector<32x128xf32>
    %96 = arith.select %94, %95, %91 : vector<32x128xi1>, vector<32x128xf32>
    %c7 = arith.constant 7 : index
    %c0_69 = arith.constant 0 : index
    %c0_70 = arith.constant 0 : index
    %97 = vector.load %arg13[%c7, %c0_69, %c0_70] : memref<8x32x128xf32, #tpu.memory_space<vmem>>, vector<1x32x128xf32>
    %98 = vector.shape_cast %97 : vector<1x32x128xf32> to vector<32x128xf32>
    %99 = vector.shape_cast %96 : vector<32x128xf32> to vector<1x32x128xf32>
    tpu.vector_store %arg13[%c7, %c0_69, %c0_70], %99 {strides = array<i32>} : memref<8x32x128xf32, #tpu.memory_space<vmem>>, vector<1x32x128xf32>,
    %100 = arith.maximumf %88, %96 : vector<32x128xf32>
    %cst_71 = arith.constant 0.000000e+00 : f32
    %101 = vector.broadcast %cst_71 : f32 to vector<32x128xf32>
    %cst_72 = arith.constant 0.000000e+00 : f32
    %102 = vector.broadcast %cst_72 : f32 to vector<32x128xf32>
    %cst_73 = arith.constant 0.000000e+00 : f32
    %103 = vector.broadcast %cst_73 : f32 to vector<32x128xf32>
    %c0_74 = arith.constant 0 : index
    %c0_75 = arith.constant 0 : index
    %104 = vector.load %arg3[%c0_74, %c0_75] : memref<32x1024xi8, #tpu.memory_space<vmem>>, vector<32x128xi8>
    %c0_i8_76 = arith.constant 0 : i8
    %105 = vector.broadcast %c0_i8_76 : i8 to vector<32x128xi8>
    %106 = arith.cmpi ne, %104, %105 : vector<32x128xi8>
    %c0_77 = arith.constant 0 : index
    %c0_78 = arith.constant 0 : index
    %c0_79 = arith.constant 0 : index
    %107 = vector.load %arg13[%c0_77, %c0_78, %c0_79] : memref<8x32x128xf32, #tpu.memory_space<vmem>>, vector<1x32x128xf32>
    %108 = vector.shape_cast %107 : vector<1x32x128xf32> to vector<32x128xf32>
    %109 = arith.subf %108, %100 : vector<32x128xf32>
    %110 = math.exp %109 : vector<32x128xf32>
    %cst_80 = arith.constant 0.000000e+00 : f32
    %111 = vector.broadcast %cst_80 : f32 to vector<32x128xf32>
    %112 = arith.select %106, %111, %110 : vector<32x128xi1>, vector<32x128xf32>
    %c0_81 = arith.constant 0 : index
    %c0_82 = arith.constant 0 : index
    %c0_83 = arith.constant 0 : index
    %113 = vector.load %arg13[%c0_81, %c0_82, %c0_83] : memref<8x32x128xf32, #tpu.memory_space<vmem>>, vector<1x32x128xf32>
    %114 = vector.shape_cast %113 : vector<1x32x128xf32> to vector<32x128xf32>
    %115 = vector.shape_cast %112 : vector<32x128xf32> to vector<1x32x128xf32>
    tpu.vector_store %arg13[%c0_81, %c0_82, %c0_83], %115 {strides = array<i32>} : memref<8x32x128xf32, #tpu.memory_space<vmem>>, vector<1x32x128xf32>,
    %116 = arith.addf %101, %112 : vector<32x128xf32>
    %c0_84 = arith.constant 0 : index
    %c0_85 = arith.constant 0 : index
    %117 = vector.load %arg2[%c0_84, %c0_85] : memref<32x1024xf32, #tpu.memory_space<vmem>>, vector<32x128xf32>
    %118 = arith.mulf %112, %117 : vector<32x128xf32>
    %119 = arith.addf %102, %118 : vector<32x128xf32>
    %120 = arith.maximumf %103, %112 : vector<32x128xf32>
    %c0_86 = arith.constant 0 : index
    %c128_87 = arith.constant 128 : index
    %121 = vector.load %arg3[%c0_86, %c128_87] : memref<32x1024xi8, #tpu.memory_space<vmem>>, vector<32x128xi8>
    %c0_i8_88 = arith.constant 0 : i8
    %122 = vector.broadcast %c0_i8_88 : i8 to vector<32x128xi8>
    %123 = arith.cmpi ne, %121, %122 : vector<32x128xi8>
    %c1_89 = arith.constant 1 : index
    %c0_90 = arith.constant 0 : index
    %c0_91 = arith.constant 0 : index
    %124 = vector.load %arg13[%c1_89, %c0_90, %c0_91] : memref<8x32x128xf32, #tpu.memory_space<vmem>>, vector<1x32x128xf32>
    %125 = vector.shape_cast %124 : vector<1x32x128xf32> to vector<32x128xf32>
    %126 = arith.subf %125, %100 : vector<32x128xf32>
    %127 = math.exp %126 : vector<32x128xf32>
    %cst_92 = arith.constant 0.000000e+00 : f32
    %128 = vector.broadcast %cst_92 : f32 to vector<32x128xf32>
    %129 = arith.select %123, %128, %127 : vector<32x128xi1>, vector<32x128xf32>
    %c1_93 = arith.constant 1 : index
    %c0_94 = arith.constant 0 : index
    %c0_95 = arith.constant 0 : index
    %130 = vector.load %arg13[%c1_93, %c0_94, %c0_95] : memref<8x32x128xf32, #tpu.memory_space<vmem>>, vector<1x32x128xf32>
    %131 = vector.shape_cast %130 : vector<1x32x128xf32> to vector<32x128xf32>
    %132 = vector.shape_cast %129 : vector<32x128xf32> to vector<1x32x128xf32>
    tpu.vector_store %arg13[%c1_93, %c0_94, %c0_95], %132 {strides = array<i32>} : memref<8x32x128xf32, #tpu.memory_space<vmem>>, vector<1x32x128xf32>,
    %133 = arith.addf %116, %129 : vector<32x128xf32>
    %c0_96 = arith.constant 0 : index
    %c128_97 = arith.constant 128 : index
    %134 = vector.load %arg2[%c0_96, %c128_97] : memref<32x1024xf32, #tpu.memory_space<vmem>>, vector<32x128xf32>
    %135 = arith.mulf %129, %134 : vector<32x128xf32>
    %136 = arith.addf %119, %135 : vector<32x128xf32>
    %137 = arith.maximumf %120, %129 : vector<32x128xf32>
    %c0_98 = arith.constant 0 : index
    %c256_99 = arith.constant 256 : index
    %138 = vector.load %arg3[%c0_98, %c256_99] : memref<32x1024xi8, #tpu.memory_space<vmem>>, vector<32x128xi8>
    %c0_i8_100 = arith.constant 0 : i8
    %139 = vector.broadcast %c0_i8_100 : i8 to vector<32x128xi8>
    %140 = arith.cmpi ne, %138, %139 : vector<32x128xi8>
    %c2_101 = arith.constant 2 : index
    %c0_102 = arith.constant 0 : index
    %c0_103 = arith.constant 0 : index
    %141 = vector.load %arg13[%c2_101, %c0_102, %c0_103] : memref<8x32x128xf32, #tpu.memory_space<vmem>>, vector<1x32x128xf32>
    %142 = vector.shape_cast %141 : vector<1x32x128xf32> to vector<32x128xf32>
    %143 = arith.subf %142, %100 : vector<32x128xf32>
    %144 = math.exp %143 : vector<32x128xf32>
    %cst_104 = arith.constant 0.000000e+00 : f32
    %145 = vector.broadcast %cst_104 : f32 to vector<32x128xf32>
    %146 = arith.select %140, %145, %144 : vector<32x128xi1>, vector<32x128xf32>
    %c2_105 = arith.constant 2 : index
    %c0_106 = arith.constant 0 : index
    %c0_107 = arith.constant 0 : index
    %147 = vector.load %arg13[%c2_105, %c0_106, %c0_107] : memref<8x32x128xf32, #tpu.memory_space<vmem>>, vector<1x32x128xf32>
    %148 = vector.shape_cast %147 : vector<1x32x128xf32> to vector<32x128xf32>
    %149 = vector.shape_cast %146 : vector<32x128xf32> to vector<1x32x128xf32>
    tpu.vector_store %arg13[%c2_105, %c0_106, %c0_107], %149 {strides = array<i32>} : memref<8x32x128xf32, #tpu.memory_space<vmem>>, vector<1x32x128xf32>,
    %150 = arith.addf %133, %146 : vector<32x128xf32>
    %c0_108 = arith.constant 0 : index
    %c256_109 = arith.constant 256 : index
    %151 = vector.load %arg2[%c0_108, %c256_109] : memref<32x1024xf32, #tpu.memory_space<vmem>>, vector<32x128xf32>
    %152 = arith.mulf %146, %151 : vector<32x128xf32>
    %153 = arith.addf %136, %152 : vector<32x128xf32>
    %154 = arith.maximumf %137, %146 : vector<32x128xf32>
    %c0_110 = arith.constant 0 : index
    %c384_111 = arith.constant 384 : index
    %155 = vector.load %arg3[%c0_110, %c384_111] : memref<32x1024xi8, #tpu.memory_space<vmem>>, vector<32x128xi8>
    %c0_i8_112 = arith.constant 0 : i8
    %156 = vector.broadcast %c0_i8_112 : i8 to vector<32x128xi8>
    %157 = arith.cmpi ne, %155, %156 : vector<32x128xi8>
    %c3_113 = arith.constant 3 : index
    %c0_114 = arith.constant 0 : index
    %c0_115 = arith.constant 0 : index
    %158 = vector.load %arg13[%c3_113, %c0_114, %c0_115] : memref<8x32x128xf32, #tpu.memory_space<vmem>>, vector<1x32x128xf32>
    %159 = vector.shape_cast %158 : vector<1x32x128xf32> to vector<32x128xf32>
    %160 = arith.subf %159, %100 : vector<32x128xf32>
    %161 = math.exp %160 : vector<32x128xf32>
    %cst_116 = arith.constant 0.000000e+00 : f32
    %162 = vector.broadcast %cst_116 : f32 to vector<32x128xf32>
    %163 = arith.select %157, %162, %161 : vector<32x128xi1>, vector<32x128xf32>
    %c3_117 = arith.constant 3 : index
    %c0_118 = arith.constant 0 : index
    %c0_119 = arith.constant 0 : index
    %164 = vector.load %arg13[%c3_117, %c0_118, %c0_119] : memref<8x32x128xf32, #tpu.memory_space<vmem>>, vector<1x32x128xf32>
    %165 = vector.shape_cast %164 : vector<1x32x128xf32> to vector<32x128xf32>
    %166 = vector.shape_cast %163 : vector<32x128xf32> to vector<1x32x128xf32>
    tpu.vector_store %arg13[%c3_117, %c0_118, %c0_119], %166 {strides = array<i32>} : memref<8x32x128xf32, #tpu.memory_space<vmem>>, vector<1x32x128xf32>,
    %167 = arith.addf %150, %163 : vector<32x128xf32>
    %c0_120 = arith.constant 0 : index
    %c384_121 = arith.constant 384 : index
    %168 = vector.load %arg2[%c0_120, %c384_121] : memref<32x1024xf32, #tpu.memory_space<vmem>>, vector<32x128xf32>
    %169 = arith.mulf %163, %168 : vector<32x128xf32>
    %170 = arith.addf %153, %169 : vector<32x128xf32>
    %171 = arith.maximumf %154, %163 : vector<32x128xf32>
    %c0_122 = arith.constant 0 : index
    %c512_123 = arith.constant 512 : index
    %172 = vector.load %arg3[%c0_122, %c512_123] : memref<32x1024xi8, #tpu.memory_space<vmem>>, vector<32x128xi8>
    %c0_i8_124 = arith.constant 0 : i8
    %173 = vector.broadcast %c0_i8_124 : i8 to vector<32x128xi8>
    %174 = arith.cmpi ne, %172, %173 : vector<32x128xi8>
    %c4_125 = arith.constant 4 : index
    %c0_126 = arith.constant 0 : index
    %c0_127 = arith.constant 0 : index
    %175 = vector.load %arg13[%c4_125, %c0_126, %c0_127] : memref<8x32x128xf32, #tpu.memory_space<vmem>>, vector<1x32x128xf32>
    %176 = vector.shape_cast %175 : vector<1x32x128xf32> to vector<32x128xf32>
    %177 = arith.subf %176, %100 : vector<32x128xf32>
    %178 = math.exp %177 : vector<32x128xf32>
    %cst_128 = arith.constant 0.000000e+00 : f32
    %179 = vector.broadcast %cst_128 : f32 to vector<32x128xf32>
    %180 = arith.select %174, %179, %178 : vector<32x128xi1>, vector<32x128xf32>
    %c4_129 = arith.constant 4 : index
    %c0_130 = arith.constant 0 : index
    %c0_131 = arith.constant 0 : index
    %181 = vector.load %arg13[%c4_129, %c0_130, %c0_131] : memref<8x32x128xf32, #tpu.memory_space<vmem>>, vector<1x32x128xf32>
    %182 = vector.shape_cast %181 : vector<1x32x128xf32> to vector<32x128xf32>
    %183 = vector.shape_cast %180 : vector<32x128xf32> to vector<1x32x128xf32>
    tpu.vector_store %arg13[%c4_129, %c0_130, %c0_131], %183 {strides = array<i32>} : memref<8x32x128xf32, #tpu.memory_space<vmem>>, vector<1x32x128xf32>,
    %184 = arith.addf %167, %180 : vector<32x128xf32>
    %c0_132 = arith.constant 0 : index
    %c512_133 = arith.constant 512 : index
    %185 = vector.load %arg2[%c0_132, %c512_133] : memref<32x1024xf32, #tpu.memory_space<vmem>>, vector<32x128xf32>
    %186 = arith.mulf %180, %185 : vector<32x128xf32>
    %187 = arith.addf %170, %186 : vector<32x128xf32>
    %188 = arith.maximumf %171, %180 : vector<32x128xf32>
    %c0_134 = arith.constant 0 : index
    %c640_135 = arith.constant 640 : index
    %189 = vector.load %arg3[%c0_134, %c640_135] : memref<32x1024xi8, #tpu.memory_space<vmem>>, vector<32x128xi8>
    %c0_i8_136 = arith.constant 0 : i8
    %190 = vector.broadcast %c0_i8_136 : i8 to vector<32x128xi8>
    %191 = arith.cmpi ne, %189, %190 : vector<32x128xi8>
    %c5_137 = arith.constant 5 : index
    %c0_138 = arith.constant 0 : index
    %c0_139 = arith.constant 0 : index
    %192 = vector.load %arg13[%c5_137, %c0_138, %c0_139] : memref<8x32x128xf32, #tpu.memory_space<vmem>>, vector<1x32x128xf32>
    %193 = vector.shape_cast %192 : vector<1x32x128xf32> to vector<32x128xf32>
    %194 = arith.subf %193, %100 : vector<32x128xf32>
    %195 = math.exp %194 : vector<32x128xf32>
    %cst_140 = arith.constant 0.000000e+00 : f32
    %196 = vector.broadcast %cst_140 : f32 to vector<32x128xf32>
    %197 = arith.select %191, %196, %195 : vector<32x128xi1>, vector<32x128xf32>
    %c5_141 = arith.constant 5 : index
    %c0_142 = arith.constant 0 : index
    %c0_143 = arith.constant 0 : index
    %198 = vector.load %arg13[%c5_141, %c0_142, %c0_143] : memref<8x32x128xf32, #tpu.memory_space<vmem>>, vector<1x32x128xf32>
    %199 = vector.shape_cast %198 : vector<1x32x128xf32> to vector<32x128xf32>
    %200 = vector.shape_cast %197 : vector<32x128xf32> to vector<1x32x128xf32>
    tpu.vector_store %arg13[%c5_141, %c0_142, %c0_143], %200 {strides = array<i32>} : memref<8x32x128xf32, #tpu.memory_space<vmem>>, vector<1x32x128xf32>,
    %201 = arith.addf %184, %197 : vector<32x128xf32>
    %c0_144 = arith.constant 0 : index
    %c640_145 = arith.constant 640 : index
    %202 = vector.load %arg2[%c0_144, %c640_145] : memref<32x1024xf32, #tpu.memory_space<vmem>>, vector<32x128xf32>
    %203 = arith.mulf %197, %202 : vector<32x128xf32>
    %204 = arith.addf %187, %203 : vector<32x128xf32>
    %205 = arith.maximumf %188, %197 : vector<32x128xf32>
    %c0_146 = arith.constant 0 : index
    %c768_147 = arith.constant 768 : index
    %206 = vector.load %arg3[%c0_146, %c768_147] : memref<32x1024xi8, #tpu.memory_space<vmem>>, vector<32x128xi8>
    %c0_i8_148 = arith.constant 0 : i8
    %207 = vector.broadcast %c0_i8_148 : i8 to vector<32x128xi8>
    %208 = arith.cmpi ne, %206, %207 : vector<32x128xi8>
    %c6_149 = arith.constant 6 : index
    %c0_150 = arith.constant 0 : index
    %c0_151 = arith.constant 0 : index
    %209 = vector.load %arg13[%c6_149, %c0_150, %c0_151] : memref<8x32x128xf32, #tpu.memory_space<vmem>>, vector<1x32x128xf32>
    %210 = vector.shape_cast %209 : vector<1x32x128xf32> to vector<32x128xf32>
    %211 = arith.subf %210, %100 : vector<32x128xf32>
    %212 = math.exp %211 : vector<32x128xf32>
    %cst_152 = arith.constant 0.000000e+00 : f32
    %213 = vector.broadcast %cst_152 : f32 to vector<32x128xf32>
    %214 = arith.select %208, %213, %212 : vector<32x128xi1>, vector<32x128xf32>
    %c6_153 = arith.constant 6 : index
    %c0_154 = arith.constant 0 : index
    %c0_155 = arith.constant 0 : index
    %215 = vector.load %arg13[%c6_153, %c0_154, %c0_155] : memref<8x32x128xf32, #tpu.memory_space<vmem>>, vector<1x32x128xf32>
    %216 = vector.shape_cast %215 : vector<1x32x128xf32> to vector<32x128xf32>
    %217 = vector.shape_cast %214 : vector<32x128xf32> to vector<1x32x128xf32>
    tpu.vector_store %arg13[%c6_153, %c0_154, %c0_155], %217 {strides = array<i32>} : memref<8x32x128xf32, #tpu.memory_space<vmem>>, vector<1x32x128xf32>,
    %218 = arith.addf %201, %214 : vector<32x128xf32>
    %c0_156 = arith.constant 0 : index
    %c768_157 = arith.constant 768 : index
    %219 = vector.load %arg2[%c0_156, %c768_157] : memref<32x1024xf32, #tpu.memory_space<vmem>>, vector<32x128xf32>
    %220 = arith.mulf %214, %219 : vector<32x128xf32>
    %221 = arith.addf %204, %220 : vector<32x128xf32>
    %222 = arith.maximumf %205, %214 : vector<32x128xf32>
    %c0_158 = arith.constant 0 : index
    %c896_159 = arith.constant 896 : index
    %223 = vector.load %arg3[%c0_158, %c896_159] : memref<32x1024xi8, #tpu.memory_space<vmem>>, vector<32x128xi8>
    %c0_i8_160 = arith.constant 0 : i8
    %224 = vector.broadcast %c0_i8_160 : i8 to vector<32x128xi8>
    %225 = arith.cmpi ne, %223, %224 : vector<32x128xi8>
    %c7_161 = arith.constant 7 : index
    %c0_162 = arith.constant 0 : index
    %c0_163 = arith.constant 0 : index
    %226 = vector.load %arg13[%c7_161, %c0_162, %c0_163] : memref<8x32x128xf32, #tpu.memory_space<vmem>>, vector<1x32x128xf32>
    %227 = vector.shape_cast %226 : vector<1x32x128xf32> to vector<32x128xf32>
    %228 = arith.subf %227, %100 : vector<32x128xf32>
    %229 = math.exp %228 : vector<32x128xf32>
    %cst_164 = arith.constant 0.000000e+00 : f32
    %230 = vector.broadcast %cst_164 : f32 to vector<32x128xf32>
    %231 = arith.select %225, %230, %229 : vector<32x128xi1>, vector<32x128xf32>
    %c7_165 = arith.constant 7 : index
    %c0_166 = arith.constant 0 : index
    %c0_167 = arith.constant 0 : index
    %232 = vector.load %arg13[%c7_165, %c0_166, %c0_167] : memref<8x32x128xf32, #tpu.memory_space<vmem>>, vector<1x32x128xf32>
    %233 = vector.shape_cast %232 : vector<1x32x128xf32> to vector<32x128xf32>
    %234 = vector.shape_cast %231 : vector<32x128xf32> to vector<1x32x128xf32>
    tpu.vector_store %arg13[%c7_165, %c0_166, %c0_167], %234 {strides = array<i32>} : memref<8x32x128xf32, #tpu.memory_space<vmem>>, vector<1x32x128xf32>,
    %235 = arith.addf %218, %231 : vector<32x128xf32>
    %c0_168 = arith.constant 0 : index
    %c896_169 = arith.constant 896 : index
    %236 = vector.load %arg2[%c0_168, %c896_169] : memref<32x1024xf32, #tpu.memory_space<vmem>>, vector<32x128xf32>
    %237 = arith.mulf %231, %236 : vector<32x128xf32>
    %238 = arith.addf %221, %237 : vector<32x128xf32>
    %239 = arith.maximumf %222, %231 : vector<32x128xf32>
    %cst_170 = arith.constant 0.000000e+00 : f32
    %240 = vector.broadcast %cst_170 : f32 to vector<32x128xf32>
    %241 = arith.cmpf ogt, %235, %240 : vector<32x128xf32>
    %cst_171 = arith.constant 1.000000e+00 : f32
    %242 = vector.broadcast %cst_171 : f32 to vector<32x128xf32>
    %243 = arith.select %241, %235, %242 : vector<32x128xi1>, vector<32x128xf32>
    %244 = arith.divf %238, %243 : vector<32x128xf32>
    %c0_172 = arith.constant 0 : index
    %c0_173 = arith.constant 0 : index
    %245 = vector.load %arg6[%c0_172, %c0_173] : memref<128x128xf32, #tpu.memory_space<vmem>>, vector<128x128xf32>
    %cst_174 = arith.constant dense<0.000000e+00> : vector<32x128xf32>
    %246 = tpu.matmul %244, %245, %cst_174 {dimension_numbers = #tpu.dot_dimension_numbers<[1], [0], [0], [1], [0, 0, 1, 1], [], []>} : vector<32x128xf32>, vector<128x128xf32>, vector<32x128xf32> -> vector<32x128xf32>
    %c0_175 = arith.constant 0 : index
    %c0_176 = arith.constant 0 : index
    %247 = vector.load %arg7[%c0_175, %c0_176] : memref<256x128xf32, #tpu.memory_space<vmem>>, vector<128x128xf32>
    %cst_177 = arith.constant dense<0.000000e+00> : vector<32x128xf32>
    %248 = tpu.matmul %0, %247, %cst_177 {dimension_numbers = #tpu.dot_dimension_numbers<[1], [0], [0], [1], [0, 0, 1, 1], [], []>} : vector<32x128xf32>, vector<128x128xf32>, vector<32x128xf32> -> vector<32x128xf32>
    %c128_178 = arith.constant 128 : index
    %c0_179 = arith.constant 0 : index
    %249 = vector.load %arg7[%c128_178, %c0_179] : memref<256x128xf32, #tpu.memory_space<vmem>>, vector<128x128xf32>
    %cst_180 = arith.constant dense<0.000000e+00> : vector<32x128xf32>
    %250 = tpu.matmul %246, %249, %cst_180 {dimension_numbers = #tpu.dot_dimension_numbers<[1], [0], [0], [1], [0, 0, 1, 1], [], []>} : vector<32x128xf32>, vector<128x128xf32>, vector<32x128xf32> -> vector<32x128xf32>
    %251 = arith.addf %248, %250 : vector<32x128xf32>
    %c0_181 = arith.constant 0 : index
    %c0_182 = arith.constant 0 : index
    %252 = vector.load %arg8[%c0_181, %c0_182] : memref<1x128xf32, #tpu.memory_space<vmem>>, vector<1x128xf32>
    %253 = vector.broadcast %252 : vector<1x128xf32> to vector<32x128xf32>
    %254 = arith.addf %251, %253 : vector<32x128xf32>
    %cst_183 = arith.constant 0.000000e+00 : f32
    %255 = vector.broadcast %cst_183 : f32 to vector<32x128xf32>
    %256 = arith.maximumf %254, %255 : vector<32x128xf32>
    %c0_184 = arith.constant 0 : index
    %c0_185 = arith.constant 0 : index
    %257 = vector.load %arg12[%c0_184, %c0_185] : memref<32x128xf32, #tpu.memory_space<vmem>>, vector<32x128xf32>
    tpu.vector_store %arg12[%c0_184, %c0_185], %256 {strides = array<i32>} : memref<32x128xf32, #tpu.memory_space<vmem>>, vector<32x128xf32>,
    %c0_186 = arith.constant 0 : index
    %c0_187 = arith.constant 0 : index
    %258 = vector.load %arg9[%c0_186, %c0_187] : memref<512x128xf32, #tpu.memory_space<vmem>>, vector<128x128xf32>
    %cst_188 = arith.constant dense<0.000000e+00> : vector<32x128xf32>
    %259 = tpu.matmul %0, %258, %cst_188 {dimension_numbers = #tpu.dot_dimension_numbers<[1], [0], [0], [1], [0, 0, 1, 1], [], []>} : vector<32x128xf32>, vector<128x128xf32>, vector<32x128xf32> -> vector<32x128xf32>
    %c0_189 = arith.constant 0 : index
    %c0_190 = arith.constant 0 : index
    %260 = vector.load %arg10[%c0_189, %c0_190] : memref<1x128xf32, #tpu.memory_space<vmem>>, vector<1x128xf32>
    %261 = vector.broadcast %260 : vector<1x128xf32> to vector<32x128xf32>
    %262 = arith.addf %259, %261 : vector<32x128xf32>
    %false = arith.constant false
    %263 = vector.broadcast %false : i1 to vector<32x128xi1>
    %cst_191 = arith.constant 0.000000e+00 : f32
    %264 = vector.broadcast %cst_191 : f32 to vector<32x128xf32>
    %cst_192 = arith.constant 0.000000e+00 : f32
    %265 = vector.broadcast %cst_192 : f32 to vector<32x128xf32>
    %c0_193 = arith.constant 0 : index
    %c0_194 = arith.constant 0 : index
    %c0_195 = arith.constant 0 : index
    %266 = vector.load %arg13[%c0_193, %c0_194, %c0_195] : memref<8x32x128xf32, #tpu.memory_space<vmem>>, vector<1x32x128xf32>
    %267 = vector.shape_cast %266 : vector<1x32x128xf32> to vector<32x128xf32>
    %268 = arith.cmpf oeq, %267, %239 : vector<32x128xf32>
    %cst_196 = arith.constant dense<true> : vector<32x128xi1>
    %269 = arith.xori %263, %cst_196 : vector<32x128xi1>
    %270 = arith.andi %268, %269 : vector<32x128xi1>
    %271 = arith.ori %263, %270 : vector<32x128xi1>
    %c0_197 = arith.constant 0 : index
    %c0_198 = arith.constant 0 : index
    %272 = vector.load %arg2[%c0_197, %c0_198] : memref<32x1024xf32, #tpu.memory_space<vmem>>, vector<32x128xf32>
    %cst_199 = arith.constant 0.000000e+00 : f32
    %273 = vector.broadcast %cst_199 : f32 to vector<32x128xf32>
    %274 = arith.select %270, %272, %273 : vector<32x128xi1>, vector<32x128xf32>
    %275 = arith.addf %264, %274 : vector<32x128xf32>
    %cst_200 = arith.constant -1.000000e+00 : f32
    %276 = vector.broadcast %cst_200 : f32 to vector<32x128xf32>
    %277 = arith.select %270, %276, %267 : vector<32x128xi1>, vector<32x128xf32>
    %c0_201 = arith.constant 0 : index
    %c0_202 = arith.constant 0 : index
    %c0_203 = arith.constant 0 : index
    %278 = vector.load %arg13[%c0_201, %c0_202, %c0_203] : memref<8x32x128xf32, #tpu.memory_space<vmem>>, vector<1x32x128xf32>
    %279 = vector.shape_cast %278 : vector<1x32x128xf32> to vector<32x128xf32>
    %280 = vector.shape_cast %277 : vector<32x128xf32> to vector<1x32x128xf32>
    tpu.vector_store %arg13[%c0_201, %c0_202, %c0_203], %280 {strides = array<i32>} : memref<8x32x128xf32, #tpu.memory_space<vmem>>, vector<1x32x128xf32>,
    %281 = arith.maximumf %265, %277 : vector<32x128xf32>
    %c1_204 = arith.constant 1 : index
    %c0_205 = arith.constant 0 : index
    %c0_206 = arith.constant 0 : index
    %282 = vector.load %arg13[%c1_204, %c0_205, %c0_206] : memref<8x32x128xf32, #tpu.memory_space<vmem>>, vector<1x32x128xf32>
    %283 = vector.shape_cast %282 : vector<1x32x128xf32> to vector<32x128xf32>
    %284 = arith.cmpf oeq, %283, %239 : vector<32x128xf32>
    %cst_207 = arith.constant dense<true> : vector<32x128xi1>
    %285 = arith.xori %271, %cst_207 : vector<32x128xi1>
    %286 = arith.andi %284, %285 : vector<32x128xi1>
    %287 = arith.ori %271, %286 : vector<32x128xi1>
    %c0_208 = arith.constant 0 : index
    %c128_209 = arith.constant 128 : index
    %288 = vector.load %arg2[%c0_208, %c128_209] : memref<32x1024xf32, #tpu.memory_space<vmem>>, vector<32x128xf32>
    %cst_210 = arith.constant 0.000000e+00 : f32
    %289 = vector.broadcast %cst_210 : f32 to vector<32x128xf32>
    %290 = arith.select %286, %288, %289 : vector<32x128xi1>, vector<32x128xf32>
    %291 = arith.addf %275, %290 : vector<32x128xf32>
    %cst_211 = arith.constant -1.000000e+00 : f32
    %292 = vector.broadcast %cst_211 : f32 to vector<32x128xf32>
    %293 = arith.select %286, %292, %283 : vector<32x128xi1>, vector<32x128xf32>
    %c1_212 = arith.constant 1 : index
    %c0_213 = arith.constant 0 : index
    %c0_214 = arith.constant 0 : index
    %294 = vector.load %arg13[%c1_212, %c0_213, %c0_214] : memref<8x32x128xf32, #tpu.memory_space<vmem>>, vector<1x32x128xf32>
    %295 = vector.shape_cast %294 : vector<1x32x128xf32> to vector<32x128xf32>
    %296 = vector.shape_cast %293 : vector<32x128xf32> to vector<1x32x128xf32>
    tpu.vector_store %arg13[%c1_212, %c0_213, %c0_214], %296 {strides = array<i32>} : memref<8x32x128xf32, #tpu.memory_space<vmem>>, vector<1x32x128xf32>,
    %297 = arith.maximumf %281, %293 : vector<32x128xf32>
    %c2_215 = arith.constant 2 : index
    %c0_216 = arith.constant 0 : index
    %c0_217 = arith.constant 0 : index
    %298 = vector.load %arg13[%c2_215, %c0_216, %c0_217] : memref<8x32x128xf32, #tpu.memory_space<vmem>>, vector<1x32x128xf32>
    %299 = vector.shape_cast %298 : vector<1x32x128xf32> to vector<32x128xf32>
    %300 = arith.cmpf oeq, %299, %239 : vector<32x128xf32>
    %cst_218 = arith.constant dense<true> : vector<32x128xi1>
    %301 = arith.xori %287, %cst_218 : vector<32x128xi1>
    %302 = arith.andi %300, %301 : vector<32x128xi1>
    %303 = arith.ori %287, %302 : vector<32x128xi1>
    %c0_219 = arith.constant 0 : index
    %c256_220 = arith.constant 256 : index
    %304 = vector.load %arg2[%c0_219, %c256_220] : memref<32x1024xf32, #tpu.memory_space<vmem>>, vector<32x128xf32>
    %cst_221 = arith.constant 0.000000e+00 : f32
    %305 = vector.broadcast %cst_221 : f32 to vector<32x128xf32>
    %306 = arith.select %302, %304, %305 : vector<32x128xi1>, vector<32x128xf32>
    %307 = arith.addf %291, %306 : vector<32x128xf32>
    %cst_222 = arith.constant -1.000000e+00 : f32
    %308 = vector.broadcast %cst_222 : f32 to vector<32x128xf32>
    %309 = arith.select %302, %308, %299 : vector<32x128xi1>, vector<32x128xf32>
    %c2_223 = arith.constant 2 : index
    %c0_224 = arith.constant 0 : index
    %c0_225 = arith.constant 0 : index
    %310 = vector.load %arg13[%c2_223, %c0_224, %c0_225] : memref<8x32x128xf32, #tpu.memory_space<vmem>>, vector<1x32x128xf32>
    %311 = vector.shape_cast %310 : vector<1x32x128xf32> to vector<32x128xf32>
    %312 = vector.shape_cast %309 : vector<32x128xf32> to vector<1x32x128xf32>
    tpu.vector_store %arg13[%c2_223, %c0_224, %c0_225], %312 {strides = array<i32>} : memref<8x32x128xf32, #tpu.memory_space<vmem>>, vector<1x32x128xf32>,
    %313 = arith.maximumf %297, %309 : vector<32x128xf32>
    %c3_226 = arith.constant 3 : index
    %c0_227 = arith.constant 0 : index
    %c0_228 = arith.constant 0 : index
    %314 = vector.load %arg13[%c3_226, %c0_227, %c0_228] : memref<8x32x128xf32, #tpu.memory_space<vmem>>, vector<1x32x128xf32>
    %315 = vector.shape_cast %314 : vector<1x32x128xf32> to vector<32x128xf32>
    %316 = arith.cmpf oeq, %315, %239 : vector<32x128xf32>
    %cst_229 = arith.constant dense<true> : vector<32x128xi1>
    %317 = arith.xori %303, %cst_229 : vector<32x128xi1>
    %318 = arith.andi %316, %317 : vector<32x128xi1>
    %319 = arith.ori %303, %318 : vector<32x128xi1>
    %c0_230 = arith.constant 0 : index
    %c384_231 = arith.constant 384 : index
    %320 = vector.load %arg2[%c0_230, %c384_231] : memref<32x1024xf32, #tpu.memory_space<vmem>>, vector<32x128xf32>
    %cst_232 = arith.constant 0.000000e+00 : f32
    %321 = vector.broadcast %cst_232 : f32 to vector<32x128xf32>
    %322 = arith.select %318, %320, %321 : vector<32x128xi1>, vector<32x128xf32>
    %323 = arith.addf %307, %322 : vector<32x128xf32>
    %cst_233 = arith.constant -1.000000e+00 : f32
    %324 = vector.broadcast %cst_233 : f32 to vector<32x128xf32>
    %325 = arith.select %318, %324, %315 : vector<32x128xi1>, vector<32x128xf32>
    %c3_234 = arith.constant 3 : index
    %c0_235 = arith.constant 0 : index
    %c0_236 = arith.constant 0 : index
    %326 = vector.load %arg13[%c3_234, %c0_235, %c0_236] : memref<8x32x128xf32, #tpu.memory_space<vmem>>, vector<1x32x128xf32>
    %327 = vector.shape_cast %326 : vector<1x32x128xf32> to vector<32x128xf32>
    %328 = vector.shape_cast %325 : vector<32x128xf32> to vector<1x32x128xf32>
    tpu.vector_store %arg13[%c3_234, %c0_235, %c0_236], %328 {strides = array<i32>} : memref<8x32x128xf32, #tpu.memory_space<vmem>>, vector<1x32x128xf32>,
    %329 = arith.maximumf %313, %325 : vector<32x128xf32>
    %c4_237 = arith.constant 4 : index
    %c0_238 = arith.constant 0 : index
    %c0_239 = arith.constant 0 : index
    %330 = vector.load %arg13[%c4_237, %c0_238, %c0_239] : memref<8x32x128xf32, #tpu.memory_space<vmem>>, vector<1x32x128xf32>
    %331 = vector.shape_cast %330 : vector<1x32x128xf32> to vector<32x128xf32>
    %332 = arith.cmpf oeq, %331, %239 : vector<32x128xf32>
    %cst_240 = arith.constant dense<true> : vector<32x128xi1>
    %333 = arith.xori %319, %cst_240 : vector<32x128xi1>
    %334 = arith.andi %332, %333 : vector<32x128xi1>
    %335 = arith.ori %319, %334 : vector<32x128xi1>
    %c0_241 = arith.constant 0 : index
    %c512_242 = arith.constant 512 : index
    %336 = vector.load %arg2[%c0_241, %c512_242] : memref<32x1024xf32, #tpu.memory_space<vmem>>, vector<32x128xf32>
    %cst_243 = arith.constant 0.000000e+00 : f32
    %337 = vector.broadcast %cst_243 : f32 to vector<32x128xf32>
    %338 = arith.select %334, %336, %337 : vector<32x128xi1>, vector<32x128xf32>
    %339 = arith.addf %323, %338 : vector<32x128xf32>
    %cst_244 = arith.constant -1.000000e+00 : f32
    %340 = vector.broadcast %cst_244 : f32 to vector<32x128xf32>
    %341 = arith.select %334, %340, %331 : vector<32x128xi1>, vector<32x128xf32>
    %c4_245 = arith.constant 4 : index
    %c0_246 = arith.constant 0 : index
    %c0_247 = arith.constant 0 : index
    %342 = vector.load %arg13[%c4_245, %c0_246, %c0_247] : memref<8x32x128xf32, #tpu.memory_space<vmem>>, vector<1x32x128xf32>
    %343 = vector.shape_cast %342 : vector<1x32x128xf32> to vector<32x128xf32>
    %344 = vector.shape_cast %341 : vector<32x128xf32> to vector<1x32x128xf32>
    tpu.vector_store %arg13[%c4_245, %c0_246, %c0_247], %344 {strides = array<i32>} : memref<8x32x128xf32, #tpu.memory_space<vmem>>, vector<1x32x128xf32>,
    %345 = arith.maximumf %329, %341 : vector<32x128xf32>
    %c5_248 = arith.constant 5 : index
    %c0_249 = arith.constant 0 : index
    %c0_250 = arith.constant 0 : index
    %346 = vector.load %arg13[%c5_248, %c0_249, %c0_250] : memref<8x32x128xf32, #tpu.memory_space<vmem>>, vector<1x32x128xf32>
    %347 = vector.shape_cast %346 : vector<1x32x128xf32> to vector<32x128xf32>
    %348 = arith.cmpf oeq, %347, %239 : vector<32x128xf32>
    %cst_251 = arith.constant dense<true> : vector<32x128xi1>
    %349 = arith.xori %335, %cst_251 : vector<32x128xi1>
    %350 = arith.andi %348, %349 : vector<32x128xi1>
    %351 = arith.ori %335, %350 : vector<32x128xi1>
    %c0_252 = arith.constant 0 : index
    %c640_253 = arith.constant 640 : index
    %352 = vector.load %arg2[%c0_252, %c640_253] : memref<32x1024xf32, #tpu.memory_space<vmem>>, vector<32x128xf32>
    %cst_254 = arith.constant 0.000000e+00 : f32
    %353 = vector.broadcast %cst_254 : f32 to vector<32x128xf32>
    %354 = arith.select %350, %352, %353 : vector<32x128xi1>, vector<32x128xf32>
    %355 = arith.addf %339, %354 : vector<32x128xf32>
    %cst_255 = arith.constant -1.000000e+00 : f32
    %356 = vector.broadcast %cst_255 : f32 to vector<32x128xf32>
    %357 = arith.select %350, %356, %347 : vector<32x128xi1>, vector<32x128xf32>
    %c5_256 = arith.constant 5 : index
    %c0_257 = arith.constant 0 : index
    %c0_258 = arith.constant 0 : index
    %358 = vector.load %arg13[%c5_256, %c0_257, %c0_258] : memref<8x32x128xf32, #tpu.memory_space<vmem>>, vector<1x32x128xf32>
    %359 = vector.shape_cast %358 : vector<1x32x128xf32> to vector<32x128xf32>
    %360 = vector.shape_cast %357 : vector<32x128xf32> to vector<1x32x128xf32>
    tpu.vector_store %arg13[%c5_256, %c0_257, %c0_258], %360 {strides = array<i32>} : memref<8x32x128xf32, #tpu.memory_space<vmem>>, vector<1x32x128xf32>,
    %361 = arith.maximumf %345, %357 : vector<32x128xf32>
    %c6_259 = arith.constant 6 : index
    %c0_260 = arith.constant 0 : index
    %c0_261 = arith.constant 0 : index
    %362 = vector.load %arg13[%c6_259, %c0_260, %c0_261] : memref<8x32x128xf32, #tpu.memory_space<vmem>>, vector<1x32x128xf32>
    %363 = vector.shape_cast %362 : vector<1x32x128xf32> to vector<32x128xf32>
    %364 = arith.cmpf oeq, %363, %239 : vector<32x128xf32>
    %cst_262 = arith.constant dense<true> : vector<32x128xi1>
    %365 = arith.xori %351, %cst_262 : vector<32x128xi1>
    %366 = arith.andi %364, %365 : vector<32x128xi1>
    %367 = arith.ori %351, %366 : vector<32x128xi1>
    %c0_263 = arith.constant 0 : index
    %c768_264 = arith.constant 768 : index
    %368 = vector.load %arg2[%c0_263, %c768_264] : memref<32x1024xf32, #tpu.memory_space<vmem>>, vector<32x128xf32>
    %cst_265 = arith.constant 0.000000e+00 : f32
    %369 = vector.broadcast %cst_265 : f32 to vector<32x128xf32>
    %370 = arith.select %366, %368, %369 : vector<32x128xi1>, vector<32x128xf32>
    %371 = arith.addf %355, %370 : vector<32x128xf32>
    %cst_266 = arith.constant -1.000000e+00 : f32
    %372 = vector.broadcast %cst_266 : f32 to vector<32x128xf32>
    %373 = arith.select %366, %372, %363 : vector<32x128xi1>, vector<32x128xf32>
    %c6_267 = arith.constant 6 : index
    %c0_268 = arith.constant 0 : index
    %c0_269 = arith.constant 0 : index
    %374 = vector.load %arg13[%c6_267, %c0_268, %c0_269] : memref<8x32x128xf32, #tpu.memory_space<vmem>>, vector<1x32x128xf32>
    %375 = vector.shape_cast %374 : vector<1x32x128xf32> to vector<32x128xf32>
    %376 = vector.shape_cast %373 : vector<32x128xf32> to vector<1x32x128xf32>
    tpu.vector_store %arg13[%c6_267, %c0_268, %c0_269], %376 {strides = array<i32>} : memref<8x32x128xf32, #tpu.memory_space<vmem>>, vector<1x32x128xf32>,
    %377 = arith.maximumf %361, %373 : vector<32x128xf32>
    %c7_270 = arith.constant 7 : index
    %c0_271 = arith.constant 0 : index
    %c0_272 = arith.constant 0 : index
    %378 = vector.load %arg13[%c7_270, %c0_271, %c0_272] : memref<8x32x128xf32, #tpu.memory_space<vmem>>, vector<1x32x128xf32>
    %379 = vector.shape_cast %378 : vector<1x32x128xf32> to vector<32x128xf32>
    %380 = arith.cmpf oeq, %379, %239 : vector<32x128xf32>
    %cst_273 = arith.constant dense<true> : vector<32x128xi1>
    %381 = arith.xori %367, %cst_273 : vector<32x128xi1>
    %382 = arith.andi %380, %381 : vector<32x128xi1>
    %c0_274 = arith.constant 0 : index
    %c896_275 = arith.constant 896 : index
    %383 = vector.load %arg2[%c0_274, %c896_275] : memref<32x1024xf32, #tpu.memory_space<vmem>>, vector<32x128xf32>
    %cst_276 = arith.constant 0.000000e+00 : f32
    %384 = vector.broadcast %cst_276 : f32 to vector<32x128xf32>
    %385 = arith.select %382, %383, %384 : vector<32x128xi1>, vector<32x128xf32>
    %386 = arith.addf %371, %385 : vector<32x128xf32>
    %cst_277 = arith.constant -1.000000e+00 : f32
    %387 = vector.broadcast %cst_277 : f32 to vector<32x128xf32>
    %388 = arith.select %382, %387, %379 : vector<32x128xi1>, vector<32x128xf32>
    %c7_278 = arith.constant 7 : index
    %c0_279 = arith.constant 0 : index
    %c0_280 = arith.constant 0 : index
    %389 = vector.load %arg13[%c7_278, %c0_279, %c0_280] : memref<8x32x128xf32, #tpu.memory_space<vmem>>, vector<1x32x128xf32>
    %390 = vector.shape_cast %389 : vector<1x32x128xf32> to vector<32x128xf32>
    %391 = vector.shape_cast %388 : vector<32x128xf32> to vector<1x32x128xf32>
    tpu.vector_store %arg13[%c7_278, %c0_279, %c0_280], %391 {strides = array<i32>} : memref<8x32x128xf32, #tpu.memory_space<vmem>>, vector<1x32x128xf32>,
    %392 = arith.maximumf %377, %388 : vector<32x128xf32>
    %c128_281 = arith.constant 128 : index
    %c0_282 = arith.constant 0 : index
    %393 = vector.load %arg9[%c128_281, %c0_282] : memref<512x128xf32, #tpu.memory_space<vmem>>, vector<128x128xf32>
    %cst_283 = arith.constant dense<0.000000e+00> : vector<32x128xf32>
    %394 = tpu.matmul %386, %393, %cst_283 {dimension_numbers = #tpu.dot_dimension_numbers<[1], [0], [0], [1], [0, 0, 1, 1], [], []>} : vector<32x128xf32>, vector<128x128xf32>, vector<32x128xf32> -> vector<32x128xf32>
    %395 = arith.addf %262, %394 : vector<32x128xf32>
    %false_284 = arith.constant false
    %396 = vector.broadcast %false_284 : i1 to vector<32x128xi1>
    %cst_285 = arith.constant 0.000000e+00 : f32
    %397 = vector.broadcast %cst_285 : f32 to vector<32x128xf32>
    %cst_286 = arith.constant 0.000000e+00 : f32
    %398 = vector.broadcast %cst_286 : f32 to vector<32x128xf32>
    %c0_287 = arith.constant 0 : index
    %c0_288 = arith.constant 0 : index
    %c0_289 = arith.constant 0 : index
    %399 = vector.load %arg13[%c0_287, %c0_288, %c0_289] : memref<8x32x128xf32, #tpu.memory_space<vmem>>, vector<1x32x128xf32>
    %400 = vector.shape_cast %399 : vector<1x32x128xf32> to vector<32x128xf32>
    %401 = arith.cmpf oeq, %400, %392 : vector<32x128xf32>
    %cst_290 = arith.constant dense<true> : vector<32x128xi1>
    %402 = arith.xori %396, %cst_290 : vector<32x128xi1>
    %403 = arith.andi %401, %402 : vector<32x128xi1>
    %404 = arith.ori %396, %403 : vector<32x128xi1>
    %c0_291 = arith.constant 0 : index
    %c0_292 = arith.constant 0 : index
    %405 = vector.load %arg2[%c0_291, %c0_292] : memref<32x1024xf32, #tpu.memory_space<vmem>>, vector<32x128xf32>
    %cst_293 = arith.constant 0.000000e+00 : f32
    %406 = vector.broadcast %cst_293 : f32 to vector<32x128xf32>
    %407 = arith.select %403, %405, %406 : vector<32x128xi1>, vector<32x128xf32>
    %408 = arith.addf %397, %407 : vector<32x128xf32>
    %cst_294 = arith.constant -1.000000e+00 : f32
    %409 = vector.broadcast %cst_294 : f32 to vector<32x128xf32>
    %410 = arith.select %403, %409, %400 : vector<32x128xi1>, vector<32x128xf32>
    %c0_295 = arith.constant 0 : index
    %c0_296 = arith.constant 0 : index
    %c0_297 = arith.constant 0 : index
    %411 = vector.load %arg13[%c0_295, %c0_296, %c0_297] : memref<8x32x128xf32, #tpu.memory_space<vmem>>, vector<1x32x128xf32>
    %412 = vector.shape_cast %411 : vector<1x32x128xf32> to vector<32x128xf32>
    %413 = vector.shape_cast %410 : vector<32x128xf32> to vector<1x32x128xf32>
    tpu.vector_store %arg13[%c0_295, %c0_296, %c0_297], %413 {strides = array<i32>} : memref<8x32x128xf32, #tpu.memory_space<vmem>>, vector<1x32x128xf32>,
    %414 = arith.maximumf %398, %410 : vector<32x128xf32>
    %c1_298 = arith.constant 1 : index
    %c0_299 = arith.constant 0 : index
    %c0_300 = arith.constant 0 : index
    %415 = vector.load %arg13[%c1_298, %c0_299, %c0_300] : memref<8x32x128xf32, #tpu.memory_space<vmem>>, vector<1x32x128xf32>
    %416 = vector.shape_cast %415 : vector<1x32x128xf32> to vector<32x128xf32>
    %417 = arith.cmpf oeq, %416, %392 : vector<32x128xf32>
    %cst_301 = arith.constant dense<true> : vector<32x128xi1>
    %418 = arith.xori %404, %cst_301 : vector<32x128xi1>
    %419 = arith.andi %417, %418 : vector<32x128xi1>
    %420 = arith.ori %404, %419 : vector<32x128xi1>
    %c0_302 = arith.constant 0 : index
    %c128_303 = arith.constant 128 : index
    %421 = vector.load %arg2[%c0_302, %c128_303] : memref<32x1024xf32, #tpu.memory_space<vmem>>, vector<32x128xf32>
    %cst_304 = arith.constant 0.000000e+00 : f32
    %422 = vector.broadcast %cst_304 : f32 to vector<32x128xf32>
    %423 = arith.select %419, %421, %422 : vector<32x128xi1>, vector<32x128xf32>
    %424 = arith.addf %408, %423 : vector<32x128xf32>
    %cst_305 = arith.constant -1.000000e+00 : f32
    %425 = vector.broadcast %cst_305 : f32 to vector<32x128xf32>
    %426 = arith.select %419, %425, %416 : vector<32x128xi1>, vector<32x128xf32>
    %c1_306 = arith.constant 1 : index
    %c0_307 = arith.constant 0 : index
    %c0_308 = arith.constant 0 : index
    %427 = vector.load %arg13[%c1_306, %c0_307, %c0_308] : memref<8x32x128xf32, #tpu.memory_space<vmem>>, vector<1x32x128xf32>
    %428 = vector.shape_cast %427 : vector<1x32x128xf32> to vector<32x128xf32>
    %429 = vector.shape_cast %426 : vector<32x128xf32> to vector<1x32x128xf32>
    tpu.vector_store %arg13[%c1_306, %c0_307, %c0_308], %429 {strides = array<i32>} : memref<8x32x128xf32, #tpu.memory_space<vmem>>, vector<1x32x128xf32>,
    %430 = arith.maximumf %414, %426 : vector<32x128xf32>
    %c2_309 = arith.constant 2 : index
    %c0_310 = arith.constant 0 : index
    %c0_311 = arith.constant 0 : index
    %431 = vector.load %arg13[%c2_309, %c0_310, %c0_311] : memref<8x32x128xf32, #tpu.memory_space<vmem>>, vector<1x32x128xf32>
    %432 = vector.shape_cast %431 : vector<1x32x128xf32> to vector<32x128xf32>
    %433 = arith.cmpf oeq, %432, %392 : vector<32x128xf32>
    %cst_312 = arith.constant dense<true> : vector<32x128xi1>
    %434 = arith.xori %420, %cst_312 : vector<32x128xi1>
    %435 = arith.andi %433, %434 : vector<32x128xi1>
    %436 = arith.ori %420, %435 : vector<32x128xi1>
    %c0_313 = arith.constant 0 : index
    %c256_314 = arith.constant 256 : index
    %437 = vector.load %arg2[%c0_313, %c256_314] : memref<32x1024xf32, #tpu.memory_space<vmem>>, vector<32x128xf32>
    %cst_315 = arith.constant 0.000000e+00 : f32
    %438 = vector.broadcast %cst_315 : f32 to vector<32x128xf32>
    %439 = arith.select %435, %437, %438 : vector<32x128xi1>, vector<32x128xf32>
    %440 = arith.addf %424, %439 : vector<32x128xf32>
    %cst_316 = arith.constant -1.000000e+00 : f32
    %441 = vector.broadcast %cst_316 : f32 to vector<32x128xf32>
    %442 = arith.select %435, %441, %432 : vector<32x128xi1>, vector<32x128xf32>
    %c2_317 = arith.constant 2 : index
    %c0_318 = arith.constant 0 : index
    %c0_319 = arith.constant 0 : index
    %443 = vector.load %arg13[%c2_317, %c0_318, %c0_319] : memref<8x32x128xf32, #tpu.memory_space<vmem>>, vector<1x32x128xf32>
    %444 = vector.shape_cast %443 : vector<1x32x128xf32> to vector<32x128xf32>
    %445 = vector.shape_cast %442 : vector<32x128xf32> to vector<1x32x128xf32>
    tpu.vector_store %arg13[%c2_317, %c0_318, %c0_319], %445 {strides = array<i32>} : memref<8x32x128xf32, #tpu.memory_space<vmem>>, vector<1x32x128xf32>,
    %446 = arith.maximumf %430, %442 : vector<32x128xf32>
    %c3_320 = arith.constant 3 : index
    %c0_321 = arith.constant 0 : index
    %c0_322 = arith.constant 0 : index
    %447 = vector.load %arg13[%c3_320, %c0_321, %c0_322] : memref<8x32x128xf32, #tpu.memory_space<vmem>>, vector<1x32x128xf32>
    %448 = vector.shape_cast %447 : vector<1x32x128xf32> to vector<32x128xf32>
    %449 = arith.cmpf oeq, %448, %392 : vector<32x128xf32>
    %cst_323 = arith.constant dense<true> : vector<32x128xi1>
    %450 = arith.xori %436, %cst_323 : vector<32x128xi1>
    %451 = arith.andi %449, %450 : vector<32x128xi1>
    %452 = arith.ori %436, %451 : vector<32x128xi1>
    %c0_324 = arith.constant 0 : index
    %c384_325 = arith.constant 384 : index
    %453 = vector.load %arg2[%c0_324, %c384_325] : memref<32x1024xf32, #tpu.memory_space<vmem>>, vector<32x128xf32>
    %cst_326 = arith.constant 0.000000e+00 : f32
    %454 = vector.broadcast %cst_326 : f32 to vector<32x128xf32>
    %455 = arith.select %451, %453, %454 : vector<32x128xi1>, vector<32x128xf32>
    %456 = arith.addf %440, %455 : vector<32x128xf32>
    %cst_327 = arith.constant -1.000000e+00 : f32
    %457 = vector.broadcast %cst_327 : f32 to vector<32x128xf32>
    %458 = arith.select %451, %457, %448 : vector<32x128xi1>, vector<32x128xf32>
    %c3_328 = arith.constant 3 : index
    %c0_329 = arith.constant 0 : index
    %c0_330 = arith.constant 0 : index
    %459 = vector.load %arg13[%c3_328, %c0_329, %c0_330] : memref<8x32x128xf32, #tpu.memory_space<vmem>>, vector<1x32x128xf32>
    %460 = vector.shape_cast %459 : vector<1x32x128xf32> to vector<32x128xf32>
    %461 = vector.shape_cast %458 : vector<32x128xf32> to vector<1x32x128xf32>
    tpu.vector_store %arg13[%c3_328, %c0_329, %c0_330], %461 {strides = array<i32>} : memref<8x32x128xf32, #tpu.memory_space<vmem>>, vector<1x32x128xf32>,
    %462 = arith.maximumf %446, %458 : vector<32x128xf32>
    %c4_331 = arith.constant 4 : index
    %c0_332 = arith.constant 0 : index
    %c0_333 = arith.constant 0 : index
    %463 = vector.load %arg13[%c4_331, %c0_332, %c0_333] : memref<8x32x128xf32, #tpu.memory_space<vmem>>, vector<1x32x128xf32>
    %464 = vector.shape_cast %463 : vector<1x32x128xf32> to vector<32x128xf32>
    %465 = arith.cmpf oeq, %464, %392 : vector<32x128xf32>
    %cst_334 = arith.constant dense<true> : vector<32x128xi1>
    %466 = arith.xori %452, %cst_334 : vector<32x128xi1>
    %467 = arith.andi %465, %466 : vector<32x128xi1>
    %468 = arith.ori %452, %467 : vector<32x128xi1>
    %c0_335 = arith.constant 0 : index
    %c512_336 = arith.constant 512 : index
    %469 = vector.load %arg2[%c0_335, %c512_336] : memref<32x1024xf32, #tpu.memory_space<vmem>>, vector<32x128xf32>
    %cst_337 = arith.constant 0.000000e+00 : f32
    %470 = vector.broadcast %cst_337 : f32 to vector<32x128xf32>
    %471 = arith.select %467, %469, %470 : vector<32x128xi1>, vector<32x128xf32>
    %472 = arith.addf %456, %471 : vector<32x128xf32>
    %cst_338 = arith.constant -1.000000e+00 : f32
    %473 = vector.broadcast %cst_338 : f32 to vector<32x128xf32>
    %474 = arith.select %467, %473, %464 : vector<32x128xi1>, vector<32x128xf32>
    %c4_339 = arith.constant 4 : index
    %c0_340 = arith.constant 0 : index
    %c0_341 = arith.constant 0 : index
    %475 = vector.load %arg13[%c4_339, %c0_340, %c0_341] : memref<8x32x128xf32, #tpu.memory_space<vmem>>, vector<1x32x128xf32>
    %476 = vector.shape_cast %475 : vector<1x32x128xf32> to vector<32x128xf32>
    %477 = vector.shape_cast %474 : vector<32x128xf32> to vector<1x32x128xf32>
    tpu.vector_store %arg13[%c4_339, %c0_340, %c0_341], %477 {strides = array<i32>} : memref<8x32x128xf32, #tpu.memory_space<vmem>>, vector<1x32x128xf32>,
    %478 = arith.maximumf %462, %474 : vector<32x128xf32>
    %c5_342 = arith.constant 5 : index
    %c0_343 = arith.constant 0 : index
    %c0_344 = arith.constant 0 : index
    %479 = vector.load %arg13[%c5_342, %c0_343, %c0_344] : memref<8x32x128xf32, #tpu.memory_space<vmem>>, vector<1x32x128xf32>
    %480 = vector.shape_cast %479 : vector<1x32x128xf32> to vector<32x128xf32>
    %481 = arith.cmpf oeq, %480, %392 : vector<32x128xf32>
    %cst_345 = arith.constant dense<true> : vector<32x128xi1>
    %482 = arith.xori %468, %cst_345 : vector<32x128xi1>
    %483 = arith.andi %481, %482 : vector<32x128xi1>
    %484 = arith.ori %468, %483 : vector<32x128xi1>
    %c0_346 = arith.constant 0 : index
    %c640_347 = arith.constant 640 : index
    %485 = vector.load %arg2[%c0_346, %c640_347] : memref<32x1024xf32, #tpu.memory_space<vmem>>, vector<32x128xf32>
    %cst_348 = arith.constant 0.000000e+00 : f32
    %486 = vector.broadcast %cst_348 : f32 to vector<32x128xf32>
    %487 = arith.select %483, %485, %486 : vector<32x128xi1>, vector<32x128xf32>
    %488 = arith.addf %472, %487 : vector<32x128xf32>
    %cst_349 = arith.constant -1.000000e+00 : f32
    %489 = vector.broadcast %cst_349 : f32 to vector<32x128xf32>
    %490 = arith.select %483, %489, %480 : vector<32x128xi1>, vector<32x128xf32>
    %c5_350 = arith.constant 5 : index
    %c0_351 = arith.constant 0 : index
    %c0_352 = arith.constant 0 : index
    %491 = vector.load %arg13[%c5_350, %c0_351, %c0_352] : memref<8x32x128xf32, #tpu.memory_space<vmem>>, vector<1x32x128xf32>
    %492 = vector.shape_cast %491 : vector<1x32x128xf32> to vector<32x128xf32>
    %493 = vector.shape_cast %490 : vector<32x128xf32> to vector<1x32x128xf32>
    tpu.vector_store %arg13[%c5_350, %c0_351, %c0_352], %493 {strides = array<i32>} : memref<8x32x128xf32, #tpu.memory_space<vmem>>, vector<1x32x128xf32>,
    %494 = arith.maximumf %478, %490 : vector<32x128xf32>
    %c6_353 = arith.constant 6 : index
    %c0_354 = arith.constant 0 : index
    %c0_355 = arith.constant 0 : index
    %495 = vector.load %arg13[%c6_353, %c0_354, %c0_355] : memref<8x32x128xf32, #tpu.memory_space<vmem>>, vector<1x32x128xf32>
    %496 = vector.shape_cast %495 : vector<1x32x128xf32> to vector<32x128xf32>
    %497 = arith.cmpf oeq, %496, %392 : vector<32x128xf32>
    %cst_356 = arith.constant dense<true> : vector<32x128xi1>
    %498 = arith.xori %484, %cst_356 : vector<32x128xi1>
    %499 = arith.andi %497, %498 : vector<32x128xi1>
    %500 = arith.ori %484, %499 : vector<32x128xi1>
    %c0_357 = arith.constant 0 : index
    %c768_358 = arith.constant 768 : index
    %501 = vector.load %arg2[%c0_357, %c768_358] : memref<32x1024xf32, #tpu.memory_space<vmem>>, vector<32x128xf32>
    %cst_359 = arith.constant 0.000000e+00 : f32
    %502 = vector.broadcast %cst_359 : f32 to vector<32x128xf32>
    %503 = arith.select %499, %501, %502 : vector<32x128xi1>, vector<32x128xf32>
    %504 = arith.addf %488, %503 : vector<32x128xf32>
    %cst_360 = arith.constant -1.000000e+00 : f32
    %505 = vector.broadcast %cst_360 : f32 to vector<32x128xf32>
    %506 = arith.select %499, %505, %496 : vector<32x128xi1>, vector<32x128xf32>
    %c6_361 = arith.constant 6 : index
    %c0_362 = arith.constant 0 : index
    %c0_363 = arith.constant 0 : index
    %507 = vector.load %arg13[%c6_361, %c0_362, %c0_363] : memref<8x32x128xf32, #tpu.memory_space<vmem>>, vector<1x32x128xf32>
    %508 = vector.shape_cast %507 : vector<1x32x128xf32> to vector<32x128xf32>
    %509 = vector.shape_cast %506 : vector<32x128xf32> to vector<1x32x128xf32>
    tpu.vector_store %arg13[%c6_361, %c0_362, %c0_363], %509 {strides = array<i32>} : memref<8x32x128xf32, #tpu.memory_space<vmem>>, vector<1x32x128xf32>,
    %510 = arith.maximumf %494, %506 : vector<32x128xf32>
    %c7_364 = arith.constant 7 : index
    %c0_365 = arith.constant 0 : index
    %c0_366 = arith.constant 0 : index
    %511 = vector.load %arg13[%c7_364, %c0_365, %c0_366] : memref<8x32x128xf32, #tpu.memory_space<vmem>>, vector<1x32x128xf32>
    %512 = vector.shape_cast %511 : vector<1x32x128xf32> to vector<32x128xf32>
    %513 = arith.cmpf oeq, %512, %392 : vector<32x128xf32>
    %cst_367 = arith.constant dense<true> : vector<32x128xi1>
    %514 = arith.xori %500, %cst_367 : vector<32x128xi1>
    %515 = arith.andi %513, %514 : vector<32x128xi1>
    %c0_368 = arith.constant 0 : index
    %c896_369 = arith.constant 896 : index
    %516 = vector.load %arg2[%c0_368, %c896_369] : memref<32x1024xf32, #tpu.memory_space<vmem>>, vector<32x128xf32>
    %cst_370 = arith.constant 0.000000e+00 : f32
    %517 = vector.broadcast %cst_370 : f32 to vector<32x128xf32>
    %518 = arith.select %515, %516, %517 : vector<32x128xi1>, vector<32x128xf32>
    %519 = arith.addf %504, %518 : vector<32x128xf32>
    %cst_371 = arith.constant -1.000000e+00 : f32
    %520 = vector.broadcast %cst_371 : f32 to vector<32x128xf32>
    %521 = arith.select %515, %520, %512 : vector<32x128xi1>, vector<32x128xf32>
    %c7_372 = arith.constant 7 : index
    %c0_373 = arith.constant 0 : index
    %c0_374 = arith.constant 0 : index
    %522 = vector.load %arg13[%c7_372, %c0_373, %c0_374] : memref<8x32x128xf32, #tpu.memory_space<vmem>>, vector<1x32x128xf32>
    %523 = vector.shape_cast %522 : vector<1x32x128xf32> to vector<32x128xf32>
    %524 = vector.shape_cast %521 : vector<32x128xf32> to vector<1x32x128xf32>
    tpu.vector_store %arg13[%c7_372, %c0_373, %c0_374], %524 {strides = array<i32>} : memref<8x32x128xf32, #tpu.memory_space<vmem>>, vector<1x32x128xf32>,
    %525 = arith.maximumf %510, %521 : vector<32x128xf32>
    %c256_375 = arith.constant 256 : index
    %c0_376 = arith.constant 0 : index
    %526 = vector.load %arg9[%c256_375, %c0_376] : memref<512x128xf32, #tpu.memory_space<vmem>>, vector<128x128xf32>
    %cst_377 = arith.constant dense<0.000000e+00> : vector<32x128xf32>
    %527 = tpu.matmul %519, %526, %cst_377 {dimension_numbers = #tpu.dot_dimension_numbers<[1], [0], [0], [1], [0, 0, 1, 1], [], []>} : vector<32x128xf32>, vector<128x128xf32>, vector<32x128xf32> -> vector<32x128xf32>
    %528 = arith.addf %395, %527 : vector<32x128xf32>
    %false_378 = arith.constant false
    %529 = vector.broadcast %false_378 : i1 to vector<32x128xi1>
    %cst_379 = arith.constant 0.000000e+00 : f32
    %530 = vector.broadcast %cst_379 : f32 to vector<32x128xf32>
    %c0_380 = arith.constant 0 : index
    %c0_381 = arith.constant 0 : index
    %c0_382 = arith.constant 0 : index
    %531 = vector.load %arg13[%c0_380, %c0_381, %c0_382] : memref<8x32x128xf32, #tpu.memory_space<vmem>>, vector<1x32x128xf32>
    %532 = vector.shape_cast %531 : vector<1x32x128xf32> to vector<32x128xf32>
    %533 = arith.cmpf oeq, %532, %525 : vector<32x128xf32>
    %cst_383 = arith.constant dense<true> : vector<32x128xi1>
    %534 = arith.xori %529, %cst_383 : vector<32x128xi1>
    %535 = arith.andi %533, %534 : vector<32x128xi1>
    %536 = arith.ori %529, %535 : vector<32x128xi1>
    %c0_384 = arith.constant 0 : index
    %c0_385 = arith.constant 0 : index
    %537 = vector.load %arg2[%c0_384, %c0_385] : memref<32x1024xf32, #tpu.memory_space<vmem>>, vector<32x128xf32>
    %cst_386 = arith.constant 0.000000e+00 : f32
    %538 = vector.broadcast %cst_386 : f32 to vector<32x128xf32>
    %539 = arith.select %535, %537, %538 : vector<32x128xi1>, vector<32x128xf32>
    %540 = arith.addf %530, %539 : vector<32x128xf32>
    %c1_387 = arith.constant 1 : index
    %c0_388 = arith.constant 0 : index
    %c0_389 = arith.constant 0 : index
    %541 = vector.load %arg13[%c1_387, %c0_388, %c0_389] : memref<8x32x128xf32, #tpu.memory_space<vmem>>, vector<1x32x128xf32>
    %542 = vector.shape_cast %541 : vector<1x32x128xf32> to vector<32x128xf32>
    %543 = arith.cmpf oeq, %542, %525 : vector<32x128xf32>
    %cst_390 = arith.constant dense<true> : vector<32x128xi1>
    %544 = arith.xori %536, %cst_390 : vector<32x128xi1>
    %545 = arith.andi %543, %544 : vector<32x128xi1>
    %546 = arith.ori %536, %545 : vector<32x128xi1>
    %c0_391 = arith.constant 0 : index
    %c128_392 = arith.constant 128 : index
    %547 = vector.load %arg2[%c0_391, %c128_392] : memref<32x1024xf32, #tpu.memory_space<vmem>>, vector<32x128xf32>
    %cst_393 = arith.constant 0.000000e+00 : f32
    %548 = vector.broadcast %cst_393 : f32 to vector<32x128xf32>
    %549 = arith.select %545, %547, %548 : vector<32x128xi1>, vector<32x128xf32>
    %550 = arith.addf %540, %549 : vector<32x128xf32>
    %c2_394 = arith.constant 2 : index
    %c0_395 = arith.constant 0 : index
    %c0_396 = arith.constant 0 : index
    %551 = vector.load %arg13[%c2_394, %c0_395, %c0_396] : memref<8x32x128xf32, #tpu.memory_space<vmem>>, vector<1x32x128xf32>
    %552 = vector.shape_cast %551 : vector<1x32x128xf32> to vector<32x128xf32>
    %553 = arith.cmpf oeq, %552, %525 : vector<32x128xf32>
    %cst_397 = arith.constant dense<true> : vector<32x128xi1>
    %554 = arith.xori %546, %cst_397 : vector<32x128xi1>
    %555 = arith.andi %553, %554 : vector<32x128xi1>
    %556 = arith.ori %546, %555 : vector<32x128xi1>
    %c0_398 = arith.constant 0 : index
    %c256_399 = arith.constant 256 : index
    %557 = vector.load %arg2[%c0_398, %c256_399] : memref<32x1024xf32, #tpu.memory_space<vmem>>, vector<32x128xf32>
    %cst_400 = arith.constant 0.000000e+00 : f32
    %558 = vector.broadcast %cst_400 : f32 to vector<32x128xf32>
    %559 = arith.select %555, %557, %558 : vector<32x128xi1>, vector<32x128xf32>
    %560 = arith.addf %550, %559 : vector<32x128xf32>
    %c3_401 = arith.constant 3 : index
    %c0_402 = arith.constant 0 : index
    %c0_403 = arith.constant 0 : index
    %561 = vector.load %arg13[%c3_401, %c0_402, %c0_403] : memref<8x32x128xf32, #tpu.memory_space<vmem>>, vector<1x32x128xf32>
    %562 = vector.shape_cast %561 : vector<1x32x128xf32> to vector<32x128xf32>
    %563 = arith.cmpf oeq, %562, %525 : vector<32x128xf32>
    %cst_404 = arith.constant dense<true> : vector<32x128xi1>
    %564 = arith.xori %556, %cst_404 : vector<32x128xi1>
    %565 = arith.andi %563, %564 : vector<32x128xi1>
    %566 = arith.ori %556, %565 : vector<32x128xi1>
    %c0_405 = arith.constant 0 : index
    %c384_406 = arith.constant 384 : index
    %567 = vector.load %arg2[%c0_405, %c384_406] : memref<32x1024xf32, #tpu.memory_space<vmem>>, vector<32x128xf32>
    %cst_407 = arith.constant 0.000000e+00 : f32
    %568 = vector.broadcast %cst_407 : f32 to vector<32x128xf32>
    %569 = arith.select %565, %567, %568 : vector<32x128xi1>, vector<32x128xf32>
    %570 = arith.addf %560, %569 : vector<32x128xf32>
    %c4_408 = arith.constant 4 : index
    %c0_409 = arith.constant 0 : index
    %c0_410 = arith.constant 0 : index
    %571 = vector.load %arg13[%c4_408, %c0_409, %c0_410] : memref<8x32x128xf32, #tpu.memory_space<vmem>>, vector<1x32x128xf32>
    %572 = vector.shape_cast %571 : vector<1x32x128xf32> to vector<32x128xf32>
    %573 = arith.cmpf oeq, %572, %525 : vector<32x128xf32>
    %cst_411 = arith.constant dense<true> : vector<32x128xi1>
    %574 = arith.xori %566, %cst_411 : vector<32x128xi1>
    %575 = arith.andi %573, %574 : vector<32x128xi1>
    %576 = arith.ori %566, %575 : vector<32x128xi1>
    %c0_412 = arith.constant 0 : index
    %c512_413 = arith.constant 512 : index
    %577 = vector.load %arg2[%c0_412, %c512_413] : memref<32x1024xf32, #tpu.memory_space<vmem>>, vector<32x128xf32>
    %cst_414 = arith.constant 0.000000e+00 : f32
    %578 = vector.broadcast %cst_414 : f32 to vector<32x128xf32>
    %579 = arith.select %575, %577, %578 : vector<32x128xi1>, vector<32x128xf32>
    %580 = arith.addf %570, %579 : vector<32x128xf32>
    %c5_415 = arith.constant 5 : index
    %c0_416 = arith.constant 0 : index
    %c0_417 = arith.constant 0 : index
    %581 = vector.load %arg13[%c5_415, %c0_416, %c0_417] : memref<8x32x128xf32, #tpu.memory_space<vmem>>, vector<1x32x128xf32>
    %582 = vector.shape_cast %581 : vector<1x32x128xf32> to vector<32x128xf32>
    %583 = arith.cmpf oeq, %582, %525 : vector<32x128xf32>
    %cst_418 = arith.constant dense<true> : vector<32x128xi1>
    %584 = arith.xori %576, %cst_418 : vector<32x128xi1>
    %585 = arith.andi %583, %584 : vector<32x128xi1>
    %586 = arith.ori %576, %585 : vector<32x128xi1>
    %c0_419 = arith.constant 0 : index
    %c640_420 = arith.constant 640 : index
    %587 = vector.load %arg2[%c0_419, %c640_420] : memref<32x1024xf32, #tpu.memory_space<vmem>>, vector<32x128xf32>
    %cst_421 = arith.constant 0.000000e+00 : f32
    %588 = vector.broadcast %cst_421 : f32 to vector<32x128xf32>
    %589 = arith.select %585, %587, %588 : vector<32x128xi1>, vector<32x128xf32>
    %590 = arith.addf %580, %589 : vector<32x128xf32>
    %c6_422 = arith.constant 6 : index
    %c0_423 = arith.constant 0 : index
    %c0_424 = arith.constant 0 : index
    %591 = vector.load %arg13[%c6_422, %c0_423, %c0_424] : memref<8x32x128xf32, #tpu.memory_space<vmem>>, vector<1x32x128xf32>
    %592 = vector.shape_cast %591 : vector<1x32x128xf32> to vector<32x128xf32>
    %593 = arith.cmpf oeq, %592, %525 : vector<32x128xf32>
    %cst_425 = arith.constant dense<true> : vector<32x128xi1>
    %594 = arith.xori %586, %cst_425 : vector<32x128xi1>
    %595 = arith.andi %593, %594 : vector<32x128xi1>
    %596 = arith.ori %586, %595 : vector<32x128xi1>
    %c0_426 = arith.constant 0 : index
    %c768_427 = arith.constant 768 : index
    %597 = vector.load %arg2[%c0_426, %c768_427] : memref<32x1024xf32, #tpu.memory_space<vmem>>, vector<32x128xf32>
    %cst_428 = arith.constant 0.000000e+00 : f32
    %598 = vector.broadcast %cst_428 : f32 to vector<32x128xf32>
    %599 = arith.select %595, %597, %598 : vector<32x128xi1>, vector<32x128xf32>
    %600 = arith.addf %590, %599 : vector<32x128xf32>
    %c7_429 = arith.constant 7 : index
    %c0_430 = arith.constant 0 : index
    %c0_431 = arith.constant 0 : index
    %601 = vector.load %arg13[%c7_429, %c0_430, %c0_431] : memref<8x32x128xf32, #tpu.memory_space<vmem>>, vector<1x32x128xf32>
    %602 = vector.shape_cast %601 : vector<1x32x128xf32> to vector<32x128xf32>
    %603 = arith.cmpf oeq, %602, %525 : vector<32x128xf32>
    %cst_432 = arith.constant dense<true> : vector<32x128xi1>
    %604 = arith.xori %596, %cst_432 : vector<32x128xi1>
    %605 = arith.andi %603, %604 : vector<32x128xi1>
    %c0_433 = arith.constant 0 : index
    %c896_434 = arith.constant 896 : index
    %606 = vector.load %arg2[%c0_433, %c896_434] : memref<32x1024xf32, #tpu.memory_space<vmem>>, vector<32x128xf32>
    %cst_435 = arith.constant 0.000000e+00 : f32
    %607 = vector.broadcast %cst_435 : f32 to vector<32x128xf32>
    %608 = arith.select %605, %606, %607 : vector<32x128xi1>, vector<32x128xf32>
    %609 = arith.addf %600, %608 : vector<32x128xf32>
    %c384_436 = arith.constant 384 : index
    %c0_437 = arith.constant 0 : index
    %610 = vector.load %arg9[%c384_436, %c0_437] : memref<512x128xf32, #tpu.memory_space<vmem>>, vector<128x128xf32>
    %cst_438 = arith.constant dense<0.000000e+00> : vector<32x128xf32>
    %611 = tpu.matmul %609, %610, %cst_438 {dimension_numbers = #tpu.dot_dimension_numbers<[1], [0], [0], [1], [0, 0, 1, 1], [], []>} : vector<32x128xf32>, vector<128x128xf32>, vector<32x128xf32> -> vector<32x128xf32>
    %612 = arith.addf %528, %611 : vector<32x128xf32>
    %cst_439 = arith.constant 0.000000e+00 : f32
    %613 = vector.broadcast %cst_439 : f32 to vector<32x128xf32>
    %614 = arith.maximumf %612, %613 : vector<32x128xf32>
    %c0_440 = arith.constant 0 : index
    %c0_441 = arith.constant 0 : index
    %615 = vector.load %arg11[%c0_440, %c0_441] : memref<32x128xf32, #tpu.memory_space<vmem>>, vector<32x128xf32>
    tpu.vector_store %arg11[%c0_440, %c0_441], %614 {strides = array<i32>} : memref<32x128xf32, #tpu.memory_space<vmem>>, vector<32x128xf32>,
    return
  }
  func.func @transform_0(%arg0: i32) -> (i32, i32) {
    %c0_i32 = arith.constant 0 : i32
    %c0_i32_0 = arith.constant 0 : i32
    return %arg0, %c0_i32 : i32, i32
  }
  func.func @transform_1(%arg0: i32) -> (i32, i32) {
    %c0_i32 = arith.constant 0 : i32
    %c0_i32_0 = arith.constant 0 : i32
    return %arg0, %c0_i32 : i32, i32
  }
  func.func @transform_2(%arg0: i32) -> (i32, i32) {
    %c0_i32 = arith.constant 0 : i32
    %c0_i32_0 = arith.constant 0 : i32
    return %arg0, %c0_i32 : i32, i32
  }
  func.func @transform_3(%arg0: i32) -> (i32, i32) {
    %c0_i32 = arith.constant 0 : i32
    %c0_i32_0 = arith.constant 0 : i32
    %c0_i32_1 = arith.constant 0 : i32
    return %c0_i32, %c0_i32_0 : i32, i32
  }
  func.func @transform_4(%arg0: i32) -> (i32, i32) {
    %c0_i32 = arith.constant 0 : i32
    %c0_i32_0 = arith.constant 0 : i32
    %c0_i32_1 = arith.constant 0 : i32
    return %c0_i32, %c0_i32_0 : i32, i32
  }
  func.func @transform_5(%arg0: i32) -> (i32, i32) {
    %c0_i32 = arith.constant 0 : i32
    %c0_i32_0 = arith.constant 0 : i32
    %c0_i32_1 = arith.constant 0 : i32
    return %c0_i32, %c0_i32_0 : i32, i32
  }
  func.func @transform_6(%arg0: i32) -> (i32, i32) {
    %c0_i32 = arith.constant 0 : i32
    %c0_i32_0 = arith.constant 0 : i32
    %c0_i32_1 = arith.constant 0 : i32
    return %c0_i32, %c0_i32_0 : i32, i32
  }
  func.func @transform_7(%arg0: i32) -> (i32, i32) {
    %c0_i32 = arith.constant 0 : i32
    %c0_i32_0 = arith.constant 0 : i32
    %c0_i32_1 = arith.constant 0 : i32
    return %c0_i32, %c0_i32_0 : i32, i32
  }
  func.func @transform_8(%arg0: i32) -> (i32, i32) {
    %c0_i32 = arith.constant 0 : i32
    %c0_i32_0 = arith.constant 0 : i32
    %c0_i32_1 = arith.constant 0 : i32
    return %c0_i32, %c0_i32_0 : i32, i32
  }
  func.func @transform_9(%arg0: i32) -> (i32, i32) {
    %c0_i32 = arith.constant 0 : i32
    %c0_i32_0 = arith.constant 0 : i32
    %c0_i32_1 = arith.constant 0 : i32
    return %c0_i32, %c0_i32_0 : i32, i32
  }
  func.func @transform_10(%arg0: i32) -> (i32, i32) {
    %c0_i32 = arith.constant 0 : i32
    %c0_i32_0 = arith.constant 0 : i32
    return %arg0, %c0_i32 : i32, i32
  }
  func.func @transform_11(%arg0: i32) -> (i32, i32) {
    %c0_i32 = arith.constant 0 : i32
    %c0_i32_0 = arith.constant 0 : i32
    return %arg0, %c0_i32 : i32, i32
  }
}

</mosaic_0001>

<bundles_post_ra>
// kernel: tpu_custom_call.1
= control target key start
LH: loop header
LB: loop body
LE: loop exit
PB: predicated region body
PF: predicated region fallthrough
CT: control target
= control target key end

     0   :  { %17 = vsyncpa [#allocation4], 0  ;;  %s7958_s0 = inlined_call_operand.hbm [shape: f32[32,128], index: 0, kind: input, shape index: {}]   ;;  %s7959_s1 = inlined_call_operand.hbm [shape: f32[32,1024], index: 1, kind: input, shape index: {}]   ;;  %s7960_s2 = inlined_call_operand.hbm [shape: s8[32,1024], index: 2, kind: input, shape index: {}]   ;;  %s7961_s3 = inlined_call_operand.hbm [shape: f32[128,128], index: 3, kind: input, shape index: {}]   ;;  %s7962_s4 = inlined_call_operand.hbm [shape: f32[128,128], index: 4, kind: input, shape index: {}]   ;;  %s7963_s5 = inlined_call_operand.hbm [shape: f32[128,128], index: 5, kind: input, shape index: {}]   ;;  %s7964_s6 = inlined_call_operand.hbm [shape: f32[256,128], index: 6, kind: input, shape index: {}]   ;;  %s7965_s7 = inlined_call_operand.vmem [shape: f32[1,128], index: 7, kind: input, shape index: {}]   ;;  %s7966_s8 = inlined_call_operand.hbm [shape: f32[512,128], index: 8, kind: input, shape index: {}]   ;;  %s7967_s9 = inlined_call_operand.vmem [shape: f32[1,128], index: 9, kind: input, shape index: {}]   ;;  %s7968_s10 = inlined_call_operand.hbm [shape: f32[32,128], index: 10, kind: output, shape index: {0}]   ;;  %s7969_s11 = inlined_call_operand.hbm [shape: f32[32,128], index: 11, kind: output, shape index: {1}]  }
   0x1   :  { %18 = vsyncpa [#allocation7], 0 }
   0x2   :  { %19 = vsyncpa [#allocation10], 0 }
   0x3   :  { %20 = vsyncpa [#allocation13], 0 }
   0x4   :  { %21 = vsyncpa [#allocation16], 0 }
   0x5   :  { %22 = vsyncpa [#allocation5], 0 }
   0x6   :  { %23 = vsyncpa [#allocation19], 0  ;;  %s4923_s17 = smov [#allocation6]  }
   0x7   :  { %s41_s18 = sshll.u32 %s4923_s17, 4  ;;  %s42_s18 = int_to_ptr.vmem [resolvable:$true] %s41_s18 }
   0x8   :  { %s4717_s19 = scalar_lea.vmem %s42_s18, 4096  ;;  %p4722_p1 = scmp.lt.s32.totalorder %s42_s18, %s42_s18 }
   0x9   :  { %p4718_p0 = scmp.ne.s32.totalorder %s42_s18, %s4717_s19  ;;  %p4723_p2 = scmp.lt.s32.totalorder %s4717_s19, %s4717_s19 }
   0xb   :  { %p4724_p3 = por %p4723_p2, %p4722_p1 }
   0xd   :  { %p4725_p4 = pnand %p4724_p3, %p4718_p0 }
   0xf   :  { %4728 = shalt.err (!%p4725_p4)
}
  0x10   :  { %s4924_s20 = smov 1024   ;;  %s4925_s21 = smov 64  }
  0x11   :  { %47 = dma.hbm_to_vmem [thread:$0]  %s7959_s1, 4096, %s42_s18, [#allocation7], %s4924_s20, %s4924_s20, %s4925_s21  }
  0x12   :  { %s4926_s24 = smov [#allocation9]   ;;  %s4927_s26 = smov [#allocation12]  }
  0x13   :  { %s63_s25 = sshll.u32 %s4926_s24, 4  ;;  %s87_s27 = sshll.u32 %s4927_s26, 4  ;;  %s64_s25 = int_to_ptr.vmem [resolvable:$true] %s63_s25  ;;  %s88_s27 = int_to_ptr.vmem [resolvable:$true] %s87_s27 }
  0x14   :  { %s4737_s28 = scalar_lea.vmem %s64_s25, 2048  ;;  %p4742_p6 = scmp.lt.s32.totalorder %s64_s25, %s64_s25 }
  0x15   :  { %p4738_p5 = scmp.ne.s32.totalorder %s64_s25, %s4737_s28  ;;  %p4743_p7 = scmp.lt.s32.totalorder %s4737_s28, %s4737_s28 }
  0x17   :  { %p4744_p8 = por %p4743_p7, %p4742_p6 }
  0x19   :  { %p4745_p9 = pnand %p4744_p8, %p4738_p5 }
  0x1b   :  { %4748 = shalt.err (!%p4745_p9)
}
  0x1c   :  { %s4928_s29 = smov 128   ;;  %s4929_s30 = smov 8  }
  0x1d   :  { %69 = dma.hbm_to_vmem [thread:$0]  %s7961_s3, 2048, %s64_s25, [#allocation10], %s4928_s29, %s4928_s29, %s4929_s30  }
  0x1e   :  { %s4757_s1 = scalar_lea.vmem %s88_s27, 2048  ;;  %p4762_p11 = scmp.lt.s32.totalorder %s88_s27, %s88_s27 }
  0x1f   :  { %p4758_p10 = scmp.ne.s32.totalorder %s88_s27, %s4757_s1  ;;  %p4763_p12 = scmp.lt.s32.totalorder %s4757_s1, %s4757_s1 }
  0x21   :  { %p4764_p13 = por %p4763_p12, %p4762_p11 }
  0x23   :  { %p4765_p0 = pnand %p4764_p13, %p4758_p10 }
  0x25   :  { %4768 = shalt.err (!%p4765_p0)
}
  0x26   :  { %93 = dma.hbm_to_vmem [thread:$0]  %s7963_s5, 2048, %s88_s27, [#allocation13], %s4928_s29, %s4928_s29, %s4929_s30  }
  0x27   :  { %s4930_s16 = smov [#allocation3]   ;;  %s4931_s18 = smov [#allocation8]  }
  0x28   :  { %s29_s17 = sshll.u32 %s4930_s16, 4  ;;  %s54_s3 = sshll.u32 %s4931_s18, 4  ;;  %s30_s17 = int_to_ptr.vmem [resolvable:$true] %s29_s17  ;;  %s55_s3 = int_to_ptr.vmem [resolvable:$true] %s54_s3 }
  0x29   :  { %s4777_s19 = scalar_lea.vmem %s30_s17, 512  ;;  %p4782_p2 = scmp.lt.s32.totalorder %s30_s17, %s30_s17 }
  0x2a   :  { %p4778_p1 = scmp.ne.s32.totalorder %s30_s17, %s4777_s19  ;;  %p4783_p3 = scmp.lt.s32.totalorder %s4777_s19, %s4777_s19 }
  0x2c   :  { %p4784_p4 = por %p4783_p3, %p4782_p2 }
  0x2e   :  { %p4785_p5 = pnand %p4784_p4, %p4778_p1 }
  0x30   :  { %4788 = shalt.err (!%p4785_p5)
}
  0x31   :  { %35 = dma.hbm_to_vmem [thread:$0]  %s7958_s0, 512, %s30_s17, [#allocation4], %s4928_s29, %s4928_s29, %s4929_s30  }
  0x32   :  { %s4797_s5 = scalar_lea.vmem %s55_s3, 1024  ;;  %p4802_p7 = scmp.lt.s32.totalorder %s55_s3, %s55_s3 }
  0x33   :  { %p4798_p6 = scmp.ne.s32.totalorder %s55_s3, %s4797_s5  ;;  %p4803_p8 = scmp.lt.s32.totalorder %s4797_s5, %s4797_s5 }
  0x35   :  { %p4804_p9 = por %p4803_p8, %p4802_p7 }
  0x37   :  { %p4805_p10 = pnand %p4804_p9, %p4798_p6 }
  0x39   :  { %4808 = shalt.err (!%p4805_p10)
}
  0x3a   :  { %57 = dma.hbm_to_vmem [thread:$0]  %s7960_s2, 1024, %s55_s3, [#allocation7]  }
  0x3b   :  { %s4932_s24 = smov [#allocation11]   ;;  %s4933_s26 = smov [#allocation14]  }
  0x3c   :  { %s75_s25 = sshll.u32 %s4932_s24, 4  ;;  %s99_s27 = sshll.u32 %s4933_s26, 4  ;;  %s76_s25 = int_to_ptr.vmem [resolvable:$true] %s75_s25  ;;  %s100_s27 = int_to_ptr.vmem [resolvable:$true] %s99_s27 }
  0x3d   :  { %s4817_s28 = scalar_lea.vmem %s76_s25, 2048  ;;  %p4822_p12 = scmp.lt.s32.totalorder %s76_s25, %s76_s25 }
  0x3e   :  { %p4818_p11 = scmp.ne.s32.totalorder %s76_s25, %s4817_s28  ;;  %p4823_p13 = scmp.lt.s32.totalorder %s4817_s28, %s4817_s28 }
  0x40   :  { %p4824_p0 = por %p4823_p13, %p4822_p12 }
  0x42   :  { %p4825_p1 = pnand %p4824_p0, %p4818_p11 }
  0x44   :  { %4828 = shalt.err (!%p4825_p1)
}
  0x45   :  { %81 = dma.hbm_to_vmem [thread:$0]  %s7962_s4, 2048, %s76_s25, [#allocation10], %s4928_s29, %s4928_s29, %s4929_s30  }
  0x46   :  { %s4837_s2 = scalar_lea.vmem %s100_s27, 4096  ;;  %p4842_p3 = scmp.lt.s32.totalorder %s100_s27, %s100_s27 }
  0x47   :  { %p4838_p2 = scmp.ne.s32.totalorder %s100_s27, %s4837_s2  ;;  %p4843_p4 = scmp.lt.s32.totalorder %s4837_s2, %s4837_s2 }
  0x49   :  { %p4844_p5 = por %p4843_p4, %p4842_p3 }
  0x4b   :  { %p4845_p6 = pnand %p4844_p5, %p4838_p2 }
  0x4d   :  { %4848 = shalt.err (!%p4845_p6)
}
  0x4e   :  { %105 = dma.hbm_to_vmem [thread:$0]  %s7964_s6, 4096, %s100_s27, [#allocation13], %s4928_s29, %s4928_s29, %s4929_s30  }
  0x4f   :  { %s4934_s14 = smov [#allocation15]  }
  0x50   :  { %s113_s15 = sshll.u32 %s4934_s14, 4  ;;  %s114_s15 = int_to_ptr.vmem [resolvable:$true] %s113_s15 }
  0x51   :  { %s4857_s16 = scalar_lea.vmem %s114_s15, 8192  ;;  %p4862_p8 = scmp.lt.s32.totalorder %s114_s15, %s114_s15 }
  0x52   :  { %p4858_p7 = scmp.ne.s32.totalorder %s114_s15, %s4857_s16  ;;  %p4863_p9 = scmp.lt.s32.totalorder %s4857_s16, %s4857_s16 }
  0x54   :  { %p4864_p10 = por %p4863_p9, %p4862_p8 }
  0x56   :  { %p4865_p11 = pnand %p4864_p10, %p4858_p7 }
  0x58   :  { %4868 = shalt.err (!%p4865_p11)
}
  0x59   :  { %119 = dma.hbm_to_vmem [thread:$0]  %s7966_s8, 8192, %s114_s15, [#allocation16], %s4928_s29, %s4928_s29, %s4929_s30  }
  0x5a   :  { %4909 = dma.done.wait [#allocation4], 512  }
  0x5b   :  { %4910 = vsyncadd [#allocation4], 4294966784 }
  0x5c   :  { %4911 = dma.done.wait [#allocation7], 5120  }
  0x5d   :  { %4912 = vsyncadd [#allocation7], 4294962176 }
  0x5e   :  { %4913 = dma.done.wait [#allocation10], 4096  }
  0x5f   :  { %4914 = vsyncadd [#allocation10], 4294963200 }
  0x60   :  { %4915 = dma.done.wait [#allocation13], 6144  }
  0x61   :  { %4916 = vsyncadd [#allocation13], 4294961152 }
  0x62   :  { %4917 = dma.done.wait [#allocation16], 8192  }
  0x63   :  { %4918 = vsyncadd [#allocation16], 4294959104  ;;  %v167_v0 = vld [vmem:[#allocation9 + $0x78] sm:$0xff]  ;;  %v166_v1 = vld [vmem:[#allocation9 + $0x70] sm:$0xff]  ;;  %s4937_s18 = smov [#allocation18]  }
  0x64   :  { %4004 = vmatprep.subr.mxu0 %v167_v0  ;;  %v165_v2 = vld [vmem:[#allocation9 + $0x68] sm:$0xff]  ;;  %v164_v3 = vld [vmem:[#allocation9 + $0x60] sm:$0xff]  ;;  %v163_v5 = vld [vmem:[#allocation9 + $0x58] sm:$0xff]  ;;  %s3662_s3 = sshll.u32 %s4937_s18, 4  ;;  %s3663_s3 = int_to_ptr.vmem [resolvable:$true] %s3662_s3 }
  0x65   :  { %4005 = vmatpush3.msra.mxu0 %v167_v0  ;;  %v148_v4 = vld [vmem:[#allocation3] sm:$0xff]  ;;  %v5041_v6 = vld [vmem:[#allocation11 + $0x78] sm:$0xff]  ;;  %v5044_v7 = vld [vmem:[#allocation11 + $0x70] sm:$0xff]  ;;  %p4874_p13 = scmp.lt.s32.totalorder %s3663_s3, %s3663_s3 }
  0x66   :  { %4006 = vmatprep.subr.mxu0 %v166_v1  ;;  %4036 = vmatprep.mubr.f32.mxu0 %v148_v4  ;;  %v162_v8 = vld [vmem:[#allocation9 + $0x50] sm:$0xff]  ;;  %v5047_v9 = vld [vmem:[#allocation11 + $0x68] sm:$0xff]  ;;  %v5051_v11 = vld [vmem:[#allocation11 + $0x60] sm:$0xff] }
  0x67   :  { %4007 = vmatpush3.msra.mxu0 %v166_v1  ;;  %4042 = vmatprep.subr.mxu1 %v5041_v6  ;;  %v161_v10 = vld [vmem:[#allocation9 + $0x48] sm:$0xff]  ;;  %v160_v12 = vld [vmem:[#allocation9 + $0x40] sm:$0xff]  ;;  %v5055_v13 = vld [vmem:[#allocation11 + $0x58] sm:$0xff] }
  0x68   :  { %4008 = vmatprep.subr.mxu0 %v165_v2  ;;  %4043 = vmatpush3.msra.mxu1 %v5041_v6  ;;  %v159_v14 = vld [vmem:[#allocation9 + $0x38] sm:$0xff]  ;;  %v5059_v15 = vld [vmem:[#allocation11 + $0x50] sm:$0xff]  ;;  %v5063_v17 = vld [vmem:[#allocation11 + $0x48] sm:$0xff] }
  0x69   :  { %4009 = vmatpush3.msra.mxu0 %v165_v2  ;;  %4044 = vmatprep.subr.mxu1 %v5044_v7  ;;  %v158_v16 = vld [vmem:[#allocation9 + $0x30] sm:$0xff]  ;;  %v157_v18 = vld [vmem:[#allocation9 + $0x28] sm:$0xff]  ;;  %v5067_v19 = vld [vmem:[#allocation11 + $0x40] sm:$0xff] }
  0x6a   :  { %4010 = vmatprep.subr.mxu0 %v164_v3  ;;  %4045 = vmatpush3.msra.mxu1 %v5044_v7  ;;  %v156_v20 = vld [vmem:[#allocation9 + $0x20] sm:$0xff]  ;;  %v5071_v21 = vld [vmem:[#allocation11 + $0x38] sm:$0xff]  ;;  %v5075_v23 = vld [vmem:[#allocation11 + $0x30] sm:$0xff] }
  0x6b   :  { %4011 = vmatpush3.msra.mxu0 %v164_v3  ;;  %4046 = vmatprep.subr.mxu1 %v5047_v9  ;;  %v155_v22 = vld [vmem:[#allocation9 + $0x18] sm:$0xff]  ;;  %v154_v24 = vld [vmem:[#allocation9 + $0x10] sm:$0xff]  ;;  %v5079_v25 = vld [vmem:[#allocation11 + $0x28] sm:$0xff] }
  0x6c   :  { %4012 = vmatprep.subr.mxu0 %v163_v5  ;;  %4047 = vmatpush3.msra.mxu1 %v5047_v9  ;;  %v153_v26 = vld [vmem:[#allocation9 + $0x8] sm:$0xff]  ;;  %v5083_v27 = vld [vmem:[#allocation11 + $0x20] sm:$0xff]  ;;  %v5087_v29 = vld [vmem:[#allocation11 + $0x18] sm:$0xff] }
  0x6d   :  { %4013 = vmatpush3.msra.mxu0 %v163_v5  ;;  %4048 = vmatprep.subr.mxu1 %v5051_v11  ;;  %v152_v28 = vld [vmem:[#allocation9] sm:$0xff]  ;;  %v149_v30 = vld [vmem:[#allocation3 + $0x8] sm:$0xff]  ;;  %v150_v31 = vld [vmem:[#allocation3 + $0x10] sm:$0xff] }
  0x6e   :  { %4014 = vmatprep.subr.mxu0 %v162_v8  ;;  %4049 = vmatpush3.msra.mxu1 %v5051_v11  ;;  %v5093_v32 = vld [vmem:[#allocation11 + $0x10] sm:$0xff]  ;;  %v151_v33 = vld [vmem:[#allocation3 + $0x18] sm:$0xff]  ;;  %v5125_v34 = vld [vmem:[#allocation11 + $0x8] sm:$0xff] }
  0x6f   :  { %4015 = vmatpush3.msra.mxu0 %v162_v8  ;;  %4050 = vmatprep.subr.mxu1 %v5055_v13  ;;  %v5131_v35 = vld [vmem:[#allocation11] sm:$0xff]  ;;  %v405_v38 = vld [vmem:[#allocation6 + $0x8] sm:$0xff]  ;;  %v542_v56 = vld [vmem:[#allocation6 + $0x10] sm:$0xff] }
  0x70   :  { %4016 = vmatprep.subr.mxu0 %v161_v10  ;;  %4051 = vmatpush3.msra.mxu1 %v5055_v13  ;;  %v269_v37 = vld [vmem:[#allocation6] sm:$0xff]  ;;  %v406_v40 = vld [vmem:[#allocation6 + $0x48] sm:$0xff]  ;;  %v679_v57 = vld [vmem:[#allocation6 + $0x18] sm:$0xff] }
  0x71   :  { %4017 = vmatpush3.msra.mxu0 %v161_v10  ;;  %4052 = vmatprep.subr.mxu1 %v5059_v15  ;;  %v270_v39 = vld [vmem:[#allocation6 + $0x40] sm:$0xff]  ;;  %v407_v48 = vld [vmem:[#allocation6 + $0x88] sm:$0xff]  ;;  %v543_v60 = vld [vmem:[#allocation6 + $0x50] sm:$0xff] }
  0x72   :  { %4018 = vmatprep.subr.mxu0 %v160_v12  ;;  %4053 = vmatpush3.msra.mxu1 %v5059_v15  ;;  %v271_v47 = vld [vmem:[#allocation6 + $0x80] sm:$0xff]  ;;  %v408_v50 = vld [vmem:[#allocation6 + $0xc8] sm:$0xff]  ;;  %v680_v61 = vld [vmem:[#allocation6 + $0x58] sm:$0xff] }
  0x73   :  { %4019 = vmatpush3.msra.mxu0 %v160_v12  ;;  %4054 = vmatprep.subr.mxu1 %v5063_v17  ;;  %v272_v49 = vld [vmem:[#allocation6 + $0xc0] sm:$0xff]  ;;  %v544_v62 = vld [vmem:[#allocation6 + $0x90] sm:$0xff]  ;;  %v681_v63 = vld [vmem:[#allocation6 + $0x98] sm:$0xff] }
  0x74   :  { %4020 = vmatprep.subr.mxu0 %v159_v14  ;;  %4055 = vmatpush3.msra.mxu1 %v5063_v17  ;;  %v545_v4 = vld [vmem:[#allocation6 + $0xd0] sm:$0xff]  ;;  %v682_v5 = vld [vmem:[#allocation6 + $0xd8] sm:$0xff]  ;;  %v816_v8 = vld [vmem:[#allocation6 + $0x20] sm:$0xff] }
  0x75   :  { %4021 = vmatpush3.msra.mxu0 %v159_v14  ;;  %4056 = vmatprep.subr.mxu1 %v5067_v19  ;;  %v953_v14 = vld [vmem:[#allocation6 + $0x28] sm:$0xff] }
  0x76   :  { %4022 = vmatprep.subr.mxu0 %v158_v16  ;;  %4057 = vmatpush3.msra.mxu1 %v5067_v19 }
  0x77   :  { %4023 = vmatpush3.msra.mxu0 %v158_v16  ;;  %4058 = vmatprep.subr.mxu1 %v5071_v21 }
  0x78   :  { %4024 = vmatprep.subr.mxu0 %v157_v18  ;;  %4059 = vmatpush3.msra.mxu1 %v5071_v21 }
  0x79   :  { %4025 = vmatpush3.msra.mxu0 %v157_v18  ;;  %4060 = vmatprep.subr.mxu1 %v5075_v23 }
  0x7a   :  { %4026 = vmatprep.subr.mxu0 %v156_v20  ;;  %4061 = vmatpush3.msra.mxu1 %v5075_v23 }
  0x7b   :  { %4027 = vmatpush3.msra.mxu0 %v156_v20  ;;  %4062 = vmatprep.subr.mxu1 %v5079_v25  ;;  %v817_v20 = vld [vmem:[#allocation6 + $0x60] sm:$0xff] }
  0x7c   :  { %4028 = vmatprep.subr.mxu0 %v155_v22  ;;  %4063 = vmatpush3.msra.mxu1 %v5079_v25 }
  0x7d   :  { %4029 = vmatpush3.msra.mxu0 %v155_v22  ;;  %4064 = vmatprep.subr.mxu1 %v5083_v27  ;;  %v954_v22 = vld [vmem:[#allocation6 + $0x68] sm:$0xff] }
  0x7e   :  { %4030 = vmatprep.subr.mxu0 %v154_v24  ;;  %4065 = vmatpush3.msra.mxu1 %v5083_v27 }
  0x7f   :  { %4031 = vmatpush3.msra.mxu0 %v154_v24  ;;  %4066 = vmatprep.subr.mxu1 %v5087_v29  ;;  %v818_v24 = vld [vmem:[#allocation6 + $0xa0] sm:$0xff] }
  0x80   :  { %4032 = vmatprep.subr.mxu0 %v153_v26  ;;  %4067 = vmatpush3.msra.mxu1 %v5087_v29 }
  0x81   :  { %4033 = vmatpush3.msra.mxu0 %v153_v26  ;;  %4068 = vmatprep.subr.mxu1 %v5093_v32  ;;  %v955_v26 = vld [vmem:[#allocation6 + $0xa8] sm:$0xff] }
  0x82   :  { %4034 = vmatprep.subr.mxu0 %v152_v28  ;;  %4069 = vmatpush3.msra.mxu1 %v5093_v32 }
  0x83   :  { %4035 = vmatpush3.msra.mxu0 %v152_v28  ;;  %4070 = vmatprep.subr.mxu1 %v5125_v34 }
  0x84   :  { %4037 = vmatmul.mubr.f32.vlgmr.msra.gmra.mxu0 %v149_v30  ;;  %4080 = vmatprep.subr.mxu0 %v5041_v6 }
  0x85   :  { %4039 = vmatprep.mubr.f32.mxu0 %v150_v31  ;;  %4081 = vmatpush3.msra.mxu0 %v5041_v6 }
  0x86   :  { %4082 = vmatprep.subr.mxu0 %v5044_v7  ;;  %4071 = vmatpush3.msra.mxu1 %v5125_v34 }
  0x87   :  { %4083 = vmatpush3.msra.mxu0 %v5044_v7  ;;  %4072 = vmatprep.subr.mxu1 %v5131_v35 }
  0x88   :  { %4040 = vmatmul.mubr.f32.gmra.mxu0 %v151_v33  ;;  %4084 = vmatprep.subr.mxu0 %v5047_v9 }
  0x89   :  { %4085 = vmatpush3.msra.mxu0 %v5047_v9  ;;  %4073 = vmatpush3.msra.mxu1 %v5131_v35 }
  0x8a   :  { %4086 = vmatprep.subr.mxu0 %v5051_v11  ;;  %4118 = vmatprep.subr.mxu1 %v5041_v6 }
  0x8b   :  { %4087 = vmatpush3.msra.mxu0 %v5051_v11 }
  0x8c   :  { %4088 = vmatprep.subr.mxu0 %v5055_v13 }
  0x8d   :  { %4089 = vmatpush3.msra.mxu0 %v5055_v13 }
  0x8e   :  { %4090 = vmatprep.subr.mxu0 %v5059_v15 }
  0x8f   :  { %4091 = vmatpush3.msra.mxu0 %v5059_v15 }
  0x90   :  { %4092 = vmatprep.subr.mxu0 %v5063_v17 }
  0x91   :  { %4093 = vmatpush3.msra.mxu0 %v5063_v17 }
  0x92   :  { %4094 = vmatprep.subr.mxu0 %v5067_v19 }
  0x93   :  { %4095 = vmatpush3.msra.mxu0 %v5067_v19 }
  0x94   :  { %4096 = vmatprep.subr.mxu0 %v5071_v21 }
  0x95   :  { %4097 = vmatpush3.msra.mxu0 %v5071_v21 }
  0x96   :  { %4098 = vmatprep.subr.mxu0 %v5075_v23 }
  0x97   :  { %4099 = vmatpush3.msra.mxu0 %v5075_v23 }
  0x98   :  { %4100 = vmatprep.subr.mxu0 %v5079_v25 }
  0x99   :  { %4101 = vmatpush3.msra.mxu0 %v5079_v25 }
  0x9a   :  { %4102 = vmatprep.subr.mxu0 %v5083_v27 }
  0x9b   :  { %4103 = vmatpush3.msra.mxu0 %v5083_v27 }
  0x9c   :  { %4104 = vmatprep.subr.mxu0 %v5087_v29 }
  0x9d   :  { %4105 = vmatpush3.msra.mxu0 %v5087_v29 }
  0x9e   :  { %4106 = vmatprep.subr.mxu0 %v5093_v32 }
  0x9f   :  { %4107 = vmatpush3.msra.mxu0 %v5093_v32 }
  0xa0   :  { %4108 = vmatprep.subr.mxu0 %v5125_v34 }
  0xa1   :  { %4109 = vmatpush3.msra.mxu0 %v5125_v34 }
  0xa2   :  { %4110 = vmatprep.subr.mxu0 %v5131_v35 }
  0xa3   :  { %4111 = vmatpush3.msra.mxu0 %v5131_v35 }
  0xa4   :  { %4156 = vmatprep.subr.mxu0 %v5041_v6 }
 0x144   :  { %v5139_v36 = vpop.f32.mrf.mxu0 }
 0x145   :  { %v274_v45 = vmul.f32 %v5139_v36, %v270_v39  ;;  %v410_v46 = vmul.f32 %v5139_v36, %v406_v40  ;;  %v547_v0 = vmul.f32 %v5139_v36, %v543_v60  ;;  %v684_v1 = vmul.f32 %v5139_v36, %v680_v61  ;;  %v1090_v39 = vld [vmem:[#allocation6 + $0x30] sm:$0xff] }
 0x146   :  { %v5141_v41 = vpop.f32.mrf.mxu0  ;;  %v821_v28 = vmul.f32 %v5139_v36, %v817_v20  ;;  %v958_v30 = vmul.f32 %v5139_v36, %v954_v22  ;;  %v1986_v20 = vld [vmem:[#allocation12 + $0x30] sm:$0xff] }
 0x147   :  { %v273_v42 = vmul.f32 %v269_v37, %v5141_v41  ;;  %v409_v43 = vmul.f32 %v405_v38, %v5141_v41  ;;  %v546_v58 = vmul.f32 %v542_v56, %v5141_v41  ;;  %v683_v59 = vmul.f32 %v679_v57, %v5141_v41  ;;  %v819_v37 = vld [vmem:[#allocation6 + $0xe0] sm:$0xff]  ;;  %v956_v38 = vld [vmem:[#allocation6 + $0xe8] sm:$0xff]  ;;  %v1990_v56 = vld [vmem:[#allocation12 + $0x50] sm:$0xff] }
 0x148   :  { %v5145_v44 = vpop.f32.mrf.mxu0  ;;  %v820_v16 = vmul.f32 %v816_v8, %v5141_v41  ;;  %v957_v18 = vmul.f32 %v953_v14, %v5141_v41 }
 0x149   :  { %4074 = vmatprep.mubr.f32.mxu1 %v273_v42  ;;  %4112 = vmatprep.mubr.f32.mxu0 %v409_v43  ;;  %v276_v54 = vmul.f32 %v5145_v44, %v272_v49  ;;  %v412_v55 = vmul.f32 %v5145_v44, %v408_v50  ;;  %v549_v10 = vmul.f32 %v5145_v44, %v545_v4  ;;  %v1227_v43 = vld [vmem:[#allocation6 + $0x38] sm:$0xff]  ;;  %v635_v50 = vld [vmem:[#allocation8 + $0x10] sm:$0xff] }
 0x14a   :  { %v5149_v51 = vpop.f32.mrf.mxu0  ;;  %4075 = vmatmul.mubr.f32.vlgmr.msra.gmra.mxu1 %v274_v45  ;;  %4113 = vmatmul.mubr.f32.vlgmr.msra.gmra.mxu0 %v410_v46  ;;  %v686_v12 = vmul.f32 %v5145_v44, %v682_v5  ;;  %v823_v40 = vmul.f32 %v5145_v44, %v819_v37  ;;  %v960_v42 = vmul.f32 %v5145_v44, %v956_v38 }
 0x14b   :  { %4119 = vmatpush3.msra.mxu1 %v5041_v6  ;;  %4157 = vmatpush3.msra.mxu0 %v5041_v6  ;;  %v275_v52 = vmul.f32 %v271_v47, %v5149_v51  ;;  %v411_v53 = vmul.f32 %v407_v48, %v5149_v51  ;;  %v548_v2 = vmul.f32 %v544_v62, %v5149_v51  ;;  %v1993_v47 = vld [vmem:[#allocation12 + $0x68] sm:$0xff] }
 0x14c   :  { %4120 = vmatprep.subr.mxu1 %v5044_v7  ;;  %4158 = vmatprep.subr.mxu0 %v5044_v7  ;;  %v685_v3 = vmul.f32 %v681_v63, %v5149_v51  ;;  %v822_v31 = vmul.f32 %v818_v24, %v5149_v51  ;;  %v959_v33 = vmul.f32 %v955_v26, %v5149_v51 }
 0x14d   :  { %4121 = vmatpush3.msra.mxu1 %v5044_v7  ;;  %4159 = vmatpush3.msra.mxu0 %v5044_v7  ;;  %v1094_v45 = vmul.f32 %v1090_v39, %v5141_v41  ;;  %vm636_vm2 = vnez %v635_v50 }
 0x14e   :  { %4077 = vmatprep.mubr.f32.mxu1 %v275_v52  ;;  %4115 = vmatprep.mubr.f32.mxu0 %v411_v53  ;;  %v1991_v52 = vld [vmem:[#allocation12 + $0x58] sm:$0xff] }
 0x14f   :  { %4122 = vmatprep.subr.mxu1 %v5047_v9  ;;  %4160 = vmatprep.subr.mxu0 %v5047_v9 }
 0x150   :  { %4078 = vmatmul.mubr.f32.gmra.mxu1 %v276_v54  ;;  %4116 = vmatmul.mubr.f32.gmra.mxu0 %v412_v55 }
 0x151   :  { %4123 = vmatpush3.msra.mxu1 %v5047_v9  ;;  %4161 = vmatpush3.msra.mxu0 %v5047_v9 }
 0x152   :  { %4124 = vmatprep.subr.mxu1 %v5051_v11  ;;  %4150 = vmatprep.mubr.f32.mxu1 %v546_v58  ;;  %v1989_v58 = vld [vmem:[#allocation12 + $0x48] sm:$0xff] }
 0x153   :  { %4162 = vmatprep.subr.mxu0 %v5051_v11  ;;  %4188 = vmatprep.mubr.f32.mxu0 %v683_v59 }
 0x154   :  { %4125 = vmatpush3.msra.mxu1 %v5051_v11  ;;  %4163 = vmatpush3.msra.mxu0 %v5051_v11 }
 0x155   :  { %4126 = vmatprep.subr.mxu1 %v5055_v13  ;;  %4164 = vmatprep.subr.mxu0 %v5055_v13 }
 0x156   :  { %4127 = vmatpush3.msra.mxu1 %v5055_v13  ;;  %4165 = vmatpush3.msra.mxu0 %v5055_v13 }
 0x157   :  { %4128 = vmatprep.subr.mxu1 %v5059_v15  ;;  %4166 = vmatprep.subr.mxu0 %v5059_v15 }
 0x158   :  { %4129 = vmatpush3.msra.mxu1 %v5059_v15  ;;  %4167 = vmatpush3.msra.mxu0 %v5059_v15 }
 0x159   :  { %4130 = vmatprep.subr.mxu1 %v5063_v17  ;;  %4168 = vmatprep.subr.mxu0 %v5063_v17 }
 0x15a   :  { %4131 = vmatpush3.msra.mxu1 %v5063_v17  ;;  %4169 = vmatpush3.msra.mxu0 %v5063_v17 }
 0x15b   :  { %4132 = vmatprep.subr.mxu1 %v5067_v19  ;;  %4170 = vmatprep.subr.mxu0 %v5067_v19 }
 0x15c   :  { %4133 = vmatpush3.msra.mxu1 %v5067_v19  ;;  %4171 = vmatpush3.msra.mxu0 %v5067_v19 }
 0x15d   :  { %4134 = vmatprep.subr.mxu1 %v5071_v21  ;;  %4172 = vmatprep.subr.mxu0 %v5071_v21 }
 0x15e   :  { %4135 = vmatpush3.msra.mxu1 %v5071_v21  ;;  %4173 = vmatpush3.msra.mxu0 %v5071_v21 }
 0x15f   :  { %4136 = vmatprep.subr.mxu1 %v5075_v23  ;;  %4174 = vmatprep.subr.mxu0 %v5075_v23 }
 0x160   :  { %4137 = vmatpush3.msra.mxu1 %v5075_v23  ;;  %4175 = vmatpush3.msra.mxu0 %v5075_v23 }
 0x161   :  { %4138 = vmatprep.subr.mxu1 %v5079_v25  ;;  %4176 = vmatprep.subr.mxu0 %v5079_v25 }
 0x162   :  { %4139 = vmatpush3.msra.mxu1 %v5079_v25  ;;  %4177 = vmatpush3.msra.mxu0 %v5079_v25 }
 0x163   :  { %4140 = vmatprep.subr.mxu1 %v5083_v27  ;;  %4178 = vmatprep.subr.mxu0 %v5083_v27 }
 0x164   :  { %4141 = vmatpush3.msra.mxu1 %v5083_v27  ;;  %4179 = vmatpush3.msra.mxu0 %v5083_v27 }
 0x165   :  { %4142 = vmatprep.subr.mxu1 %v5087_v29  ;;  %4180 = vmatprep.subr.mxu0 %v5087_v29 }
 0x166   :  { %4143 = vmatpush3.msra.mxu1 %v5087_v29  ;;  %4181 = vmatpush3.msra.mxu0 %v5087_v29 }
 0x167   :  { %4144 = vmatprep.subr.mxu1 %v5093_v32  ;;  %4182 = vmatprep.subr.mxu0 %v5093_v32 }
 0x168   :  { %4145 = vmatpush3.msra.mxu1 %v5093_v32  ;;  %4183 = vmatpush3.msra.mxu0 %v5093_v32 }
 0x169   :  { %4146 = vmatprep.subr.mxu1 %v5125_v34  ;;  %4184 = vmatprep.subr.mxu0 %v5125_v34 }
 0x16a   :  { %4147 = vmatpush3.msra.mxu1 %v5125_v34  ;;  %4185 = vmatpush3.msra.mxu0 %v5125_v34 }
 0x16b   :  { %4148 = vmatprep.subr.mxu1 %v5131_v35  ;;  %4186 = vmatprep.subr.mxu0 %v5131_v35 }
 0x16c   :  { %4149 = vmatpush3.msra.mxu1 %v5131_v35  ;;  %4187 = vmatpush3.msra.mxu0 %v5131_v35 }
 0x16d   :  { %4151 = vmatmul.mubr.f32.vlgmr.msra.gmra.mxu1 %v547_v0  ;;  %4189 = vmatmul.mubr.f32.vlgmr.msra.gmra.mxu0 %v684_v1  ;;  %v1988_v1 = vld [vmem:[#allocation12 + $0x40] sm:$0xff] }
 0x16e   :  { %4194 = vmatprep.subr.mxu1 %v5041_v6  ;;  %4232 = vmatprep.subr.mxu0 %v5041_v6 }
 0x16f   :  { %4153 = vmatprep.mubr.f32.mxu1 %v548_v2  ;;  %4191 = vmatprep.mubr.f32.mxu0 %v685_v3 }
 0x170   :  { %4195 = vmatpush3.msra.mxu1 %v5041_v6  ;;  %4233 = vmatpush3.msra.mxu0 %v5041_v6 }
 0x171   :  { %4196 = vmatprep.subr.mxu1 %v5044_v7  ;;  %4234 = vmatprep.subr.mxu0 %v5044_v7 }
 0x172   :  { %4197 = vmatpush3.msra.mxu1 %v5044_v7  ;;  %4235 = vmatpush3.msra.mxu0 %v5044_v7 }
 0x173   :  { %4154 = vmatmul.mubr.f32.gmra.mxu1 %v549_v10  ;;  %4192 = vmatmul.mubr.f32.gmra.mxu0 %v686_v12  ;;  %v1987_v12 = vld [vmem:[#allocation12 + $0x38] sm:$0xff] }
 0x174   :  { %4198 = vmatprep.subr.mxu1 %v5047_v9  ;;  %4236 = vmatprep.subr.mxu0 %v5047_v9 }
 0x175   :  { %4199 = vmatpush3.msra.mxu1 %v5047_v9  ;;  %4226 = vmatprep.mubr.f32.mxu1 %v820_v16 }
 0x176   :  { %4237 = vmatpush3.msra.mxu0 %v5047_v9  ;;  %4264 = vmatprep.mubr.f32.mxu0 %v957_v18 }
 0x177   :  { %4200 = vmatprep.subr.mxu1 %v5051_v11  ;;  %4238 = vmatprep.subr.mxu0 %v5051_v11 }
 0x178   :  { %4201 = vmatpush3.msra.mxu1 %v5051_v11  ;;  %4239 = vmatpush3.msra.mxu0 %v5051_v11 }
 0x179   :  { %4202 = vmatprep.subr.mxu1 %v5055_v13  ;;  %4240 = vmatprep.subr.mxu0 %v5055_v13 }
 0x17a   :  { %4203 = vmatpush3.msra.mxu1 %v5055_v13  ;;  %4241 = vmatpush3.msra.mxu0 %v5055_v13 }
 0x17b   :  { %4204 = vmatprep.subr.mxu1 %v5059_v15  ;;  %4242 = vmatprep.subr.mxu0 %v5059_v15 }
 0x17c   :  { %4205 = vmatpush3.msra.mxu1 %v5059_v15  ;;  %4243 = vmatpush3.msra.mxu0 %v5059_v15 }
 0x17d   :  { %4206 = vmatprep.subr.mxu1 %v5063_v17  ;;  %4244 = vmatprep.subr.mxu0 %v5063_v17 }
 0x17e   :  { %4207 = vmatpush3.msra.mxu1 %v5063_v17  ;;  %4245 = vmatpush3.msra.mxu0 %v5063_v17 }
 0x17f   :  { %4208 = vmatprep.subr.mxu1 %v5067_v19  ;;  %4246 = vmatprep.subr.mxu0 %v5067_v19 }
 0x180   :  { %4209 = vmatpush3.msra.mxu1 %v5067_v19  ;;  %4247 = vmatpush3.msra.mxu0 %v5067_v19 }
 0x181   :  { %4210 = vmatprep.subr.mxu1 %v5071_v21  ;;  %4248 = vmatprep.subr.mxu0 %v5071_v21 }
 0x182   :  { %4211 = vmatpush3.msra.mxu1 %v5071_v21  ;;  %4249 = vmatpush3.msra.mxu0 %v5071_v21 }
 0x183   :  { %4212 = vmatprep.subr.mxu1 %v5075_v23  ;;  %4250 = vmatprep.subr.mxu0 %v5075_v23 }
 0x184   :  { %4213 = vmatpush3.msra.mxu1 %v5075_v23  ;;  %4251 = vmatpush3.msra.mxu0 %v5075_v23 }
 0x185   :  { %4214 = vmatprep.subr.mxu1 %v5079_v25  ;;  %4252 = vmatprep.subr.mxu0 %v5079_v25 }
 0x186   :  { %4215 = vmatpush3.msra.mxu1 %v5079_v25  ;;  %4253 = vmatpush3.msra.mxu0 %v5079_v25 }
 0x187   :  { %4216 = vmatprep.subr.mxu1 %v5083_v27  ;;  %4254 = vmatprep.subr.mxu0 %v5083_v27 }
 0x188   :  { %4217 = vmatpush3.msra.mxu1 %v5083_v27  ;;  %4255 = vmatpush3.msra.mxu0 %v5083_v27 }
 0x189   :  { %4218 = vmatprep.subr.mxu1 %v5087_v29  ;;  %4256 = vmatprep.subr.mxu0 %v5087_v29 }
 0x18a   :  { %4219 = vmatpush3.msra.mxu1 %v5087_v29  ;;  %4257 = vmatpush3.msra.mxu0 %v5087_v29 }
 0x18b   :  { %4220 = vmatprep.subr.mxu1 %v5093_v32  ;;  %4258 = vmatprep.subr.mxu0 %v5093_v32 }
 0x18c   :  { %4221 = vmatpush3.msra.mxu1 %v5093_v32  ;;  %4259 = vmatpush3.msra.mxu0 %v5093_v32 }
 0x18d   :  { %4222 = vmatprep.subr.mxu1 %v5125_v34  ;;  %4260 = vmatprep.subr.mxu0 %v5125_v34 }
 0x18e   :  { %4223 = vmatpush3.msra.mxu1 %v5125_v34  ;;  %4261 = vmatpush3.msra.mxu0 %v5125_v34 }
 0x18f   :  { %4224 = vmatprep.subr.mxu1 %v5131_v35  ;;  %4262 = vmatprep.subr.mxu0 %v5131_v35 }
 0x190   :  { %4225 = vmatpush3.msra.mxu1 %v5131_v35  ;;  %4263 = vmatpush3.msra.mxu0 %v5131_v35 }
 0x191   :  { %4227 = vmatmul.mubr.f32.vlgmr.msra.gmra.mxu1 %v821_v28  ;;  %4265 = vmatmul.mubr.f32.vlgmr.msra.gmra.mxu0 %v958_v30 }
 0x192   :  { %4270 = vmatprep.subr.mxu1 %v5041_v6  ;;  %4308 = vmatprep.subr.mxu0 %v5041_v6 }
 0x193   :  { %4229 = vmatprep.mubr.f32.mxu1 %v822_v31  ;;  %4267 = vmatprep.mubr.f32.mxu0 %v959_v33  ;;  %v1985_v33 = vld [vmem:[#allocation12 + $0x28] sm:$0xff] }
 0x194   :  { %4271 = vmatpush3.msra.mxu1 %v5041_v6  ;;  %4309 = vmatpush3.msra.mxu0 %v5041_v6  ;;  %v1231_v6 = vmul.f32 %v1227_v43, %v5141_v41  ;;  %v4935_v41 = vmov 0   ;;  %v1984_v43 = vld [vmem:[#allocation12 + $0x20] sm:$0xff] }
 0x195   :  { %4272 = vmatprep.subr.mxu1 %v5044_v7  ;;  %4310 = vmatprep.subr.mxu0 %v5044_v7  ;;  %v5372_v60 = vsel %vm636_vm2, 16843009, %v4935_v41 }
 0x196   :  { %4273 = vmatpush3.msra.mxu1 %v5044_v7  ;;  %4311 = vmatpush3.msra.mxu0 %v5044_v7  ;;  %v1091_v7 = vld [vmem:[#allocation6 + $0x70] sm:$0xff]  ;;  %v639_v8 = vunpack.c.1.s8 %v5372_v60  ;;  %v638_v38 = vunpack.c.0.s8 %v5372_v60 }
 0x197   :  { %4230 = vmatmul.mubr.f32.gmra.mxu1 %v823_v40  ;;  %4268 = vmatmul.mubr.f32.gmra.mxu0 %v960_v42 }
 0x198   :  { %4274 = vmatprep.subr.mxu1 %v5047_v9  ;;  %4312 = vmatprep.subr.mxu0 %v5047_v9  ;;  %v644_v30 = vpack.c.b16 %v639_v8, %v639_v8 }
 0x199   :  { %4275 = vmatpush3.msra.mxu1 %v5047_v9  ;;  %4302 = vmatprep.mubr.f32.mxu1 %v1094_v45 }
 0x19a   :  { %4313 = vmatpush3.msra.mxu0 %v5047_v9  ;;  %4340 = vmatprep.mubr.f32.mxu0 %v1231_v6  ;;  %v1228_v9 = vld [vmem:[#allocation6 + $0x78] sm:$0xff] }
 0x19b   :  { %4276 = vmatprep.subr.mxu1 %v5051_v11  ;;  %4314 = vmatprep.subr.mxu0 %v5051_v11 }
 0x19c   :  { %4277 = vmatpush3.msra.mxu1 %v5051_v11  ;;  %4315 = vmatpush3.msra.mxu0 %v5051_v11  ;;  %v1092_v11 = vld [vmem:[#allocation6 + $0xb0] sm:$0xff] }
 0x19d   :  { %4278 = vmatprep.subr.mxu1 %v5055_v13  ;;  %4316 = vmatprep.subr.mxu0 %v5055_v13 }
 0x19e   :  { %4279 = vmatpush3.msra.mxu1 %v5055_v13  ;;  %4317 = vmatpush3.msra.mxu0 %v5055_v13  ;;  %v1229_v13 = vld [vmem:[#allocation6 + $0xb8] sm:$0xff] }
 0x19f   :  { %4280 = vmatprep.subr.mxu1 %v5059_v15  ;;  %4318 = vmatprep.subr.mxu0 %v5059_v15 }
 0x1a0   :  { %4281 = vmatpush3.msra.mxu1 %v5059_v15  ;;  %4319 = vmatpush3.msra.mxu0 %v5059_v15  ;;  %v1095_v15 = vmul.f32 %v5139_v36, %v1091_v7 }
 0x1a1   :  { %4282 = vmatprep.subr.mxu1 %v5063_v17  ;;  %4320 = vmatprep.subr.mxu0 %v5063_v17 }
 0x1a2   :  { %4283 = vmatpush3.msra.mxu1 %v5063_v17  ;;  %4321 = vmatpush3.msra.mxu0 %v5063_v17  ;;  %v1232_v17 = vmul.f32 %v5139_v36, %v1228_v9  ;;  %v1994_v36 = vld [vmem:[#allocation12 + $0x70] sm:$0xff] }
 0x1a3   :  { %4284 = vmatprep.subr.mxu1 %v5067_v19  ;;  %4322 = vmatprep.subr.mxu0 %v5067_v19 }
 0x1a4   :  { %4285 = vmatpush3.msra.mxu1 %v5067_v19  ;;  %4323 = vmatpush3.msra.mxu0 %v5067_v19  ;;  %v1096_v19 = vmul.f32 %v1092_v11, %v5149_v51 }
 0x1a5   :  { %4286 = vmatprep.subr.mxu1 %v5071_v21  ;;  %4324 = vmatprep.subr.mxu0 %v5071_v21 }
 0x1a6   :  { %4287 = vmatpush3.msra.mxu1 %v5071_v21  ;;  %4325 = vmatpush3.msra.mxu0 %v5071_v21  ;;  %v1233_v21 = vmul.f32 %v1229_v13, %v5149_v51  ;;  %v772_v51 = vld [vmem:[#allocation8 + $0x18] sm:$0xff] }
 0x1a7   :  { %4288 = vmatprep.subr.mxu1 %v5075_v23  ;;  %4326 = vmatprep.subr.mxu0 %v5075_v23  ;;  %vm773_vm3 = vnez %v772_v51 }
 0x1a8   :  { %4289 = vmatpush3.msra.mxu1 %v5075_v23  ;;  %4327 = vmatpush3.msra.mxu0 %v5075_v23  ;;  %v1093_v23 = vld [vmem:[#allocation6 + $0xf0] sm:$0xff]  ;;  %v5375_v61 = vsel %vm773_vm3, 16843009, %v4935_v41 }
 0x1a9   :  { %4290 = vmatprep.subr.mxu1 %v5079_v25  ;;  %4328 = vmatprep.subr.mxu0 %v5079_v25  ;;  %v776_v10 = vunpack.c.1.s8 %v5375_v61  ;;  %v775_v42 = vunpack.c.0.s8 %v5375_v61 }
 0x1aa   :  { %4291 = vmatpush3.msra.mxu1 %v5079_v25  ;;  %4329 = vmatpush3.msra.mxu0 %v5079_v25  ;;  %v1230_v25 = vld [vmem:[#allocation6 + $0xf8] sm:$0xff] }
 0x1ab   :  { %4292 = vmatprep.subr.mxu1 %v5083_v27  ;;  %4330 = vmatprep.subr.mxu0 %v5083_v27  ;;  %v781_v31 = vpack.c.b16 %v776_v10, %v776_v10 }
 0x1ac   :  { %4293 = vmatpush3.msra.mxu1 %v5083_v27  ;;  %4331 = vmatpush3.msra.mxu0 %v5083_v27  ;;  %v1097_v27 = vmul.f32 %v5145_v44, %v1093_v23  ;;  %v641_v23 = vunpack.c.3.s8 %v5372_v60 }
 0x1ad   :  { %4294 = vmatprep.subr.mxu1 %v5087_v29  ;;  %4332 = vmatprep.subr.mxu0 %v5087_v29 }
 0x1ae   :  { %4295 = vmatpush3.msra.mxu1 %v5087_v29  ;;  %4333 = vmatpush3.msra.mxu0 %v5087_v29  ;;  %v1234_v29 = vmul.f32 %v5145_v44, %v1230_v25  ;;  %v1992_v44 = vld [vmem:[#allocation12 + $0x60] sm:$0xff]  ;;  %v778_v25 = vunpack.c.3.s8 %v5375_v61 }
 0x1af   :  { %4296 = vmatprep.subr.mxu1 %v5093_v32  ;;  %4334 = vmatprep.subr.mxu0 %v5093_v32 }
 0x1b0   :  { %4297 = vmatpush3.msra.mxu1 %v5093_v32  ;;  %4335 = vmatpush3.msra.mxu0 %v5093_v32  ;;  %v362_v32 = vld [vmem:[#allocation8] sm:$0xff] }
 0x1b1   :  { %4298 = vmatprep.subr.mxu1 %v5125_v34  ;;  %4336 = vmatprep.subr.mxu0 %v5125_v34  ;;  %vm363_vm0 = vnez %v362_v32  ;;  %v1046_v32 = vld [vmem:[#allocation8 + $0x28] sm:$0xff] }
 0x1b2   :  { %4299 = vmatpush3.msra.mxu1 %v5125_v34  ;;  %4337 = vmatpush3.msra.mxu0 %v5125_v34  ;;  %v498_v34 = vld [vmem:[#allocation8 + $0x8] sm:$0xff]  ;;  %v364_v46 = vsel %vm363_vm0, 16843009, %v4935_v41  ;;  %vm1047_vm15 = vnez %v1046_v32 }
 0x1b3   :  { %4300 = vmatprep.subr.mxu1 %v5131_v35  ;;  %4338 = vmatprep.subr.mxu0 %v5131_v35  ;;  %vm499_vm1 = vnez %v498_v34  ;;  %v366_v48 = vunpack.c.1.s8 %v364_v46  ;;  %v365_v55 = vunpack.c.0.s8 %v364_v46  ;;  %v368_v0 = vunpack.c.3.s8 %v364_v46 }
 0x1b4   :  { %4301 = vmatpush3.msra.mxu1 %v5131_v35  ;;  %4339 = vmatpush3.msra.mxu0 %v5131_v35  ;;  %v1995_v35 = vld [vmem:[#allocation12 + $0x78] sm:$0xff]  ;;  %v500_v49 = vsel %vm499_vm1, 16843009, %v4935_v41  ;;  %v367_v3 = vunpack.c.2.s8 %v364_v46  ;;  %v777_v46 = vunpack.c.2.s8 %v5375_v61 }
 0x1b5   :  { %4303 = vmatmul.mubr.f32.vlgmr.msra.gmra.mxu1 %v1095_v15  ;;  %4341 = vmatmul.mubr.f32.vlgmr.msra.gmra.mxu0 %v1232_v17  ;;  %v502_v53 = vunpack.c.1.s8 %v500_v49  ;;  %v371_v54 = vpack.c.b16 %v366_v48, %v366_v48  ;;  %v501_v57 = vunpack.c.0.s8 %v500_v49  ;;  %v369_v63 = vpack.c.b16 %v365_v55, %v365_v55 }
 0x1b6   :  { %4305 = vmatprep.mubr.f32.mxu1 %v1096_v19  ;;  %4343 = vmatprep.mubr.f32.mxu0 %v1233_v21  ;;  %v504_v4 = vunpack.c.3.s8 %v500_v49  ;;  %v503_v5 = vunpack.c.2.s8 %v500_v49  ;;  %v375_v18 = vpack.c.b16 %v368_v0, %v368_v0  ;;  %v373_v24 = vpack.c.b16 %v367_v3, %v367_v3  ;;  %v1983_v19 = vld [vmem:[#allocation12 + $0x18] sm:$0xff] }
 0x1b7   :  { %4346 = vmatprep.subr.mxu1 %v1995_v35  ;;  %v507_v59 = vpack.c.b16 %v502_v53, %v502_v53  ;;  %v372_v62 = vpack.c.b8 %v371_v54, %v371_v54  ;;  %v505_v2 = vpack.c.b16 %v501_v57, %v501_v57  ;;  %v370_v16 = vpack.c.b8 %v369_v63, %v369_v63  ;;  %v1981_v53 = vld [vmem:[#allocation12 + $0x8] sm:$0xff] }
 0x1b8   :  { %4347 = vmatpush3.msra.mxu1 %v1995_v35  ;;  %v511_v26 = vpack.c.b16 %v504_v4, %v504_v4  ;;  %v509_v28 = vpack.c.b16 %v503_v5, %v503_v5  ;;  %v376_v40 = vpack.c.b8 %v375_v18, %v375_v18  ;;  %v374_v6 = vpack.c.b8 %v373_v24, %v373_v24 }
 0x1b9   :  { %4306 = vmatmul.mubr.f32.gmra.mxu1 %v1097_v27  ;;  %4344 = vmatmul.mubr.f32.gmra.mxu0 %v1234_v29  ;;  %v508_v14 = vpack.c.b8 %v507_v59, %v507_v59  ;;  %vm378_vm4 = vnez %v372_v62  ;;  %v506_v22 = vpack.c.b8 %v505_v2, %v505_v2  ;;  %vm5383_vm6 = vnez %v370_v16  ;;  %v909_v29 = vld [vmem:[#allocation8 + $0x20] sm:$0xff] }
 0x1ba   :  { %4348 = vmatprep.subr.mxu1 %v1994_v36  ;;  %v5380_v37 = vsel %vm378_vm4, 16843009, %v4935_v41  ;;  %v512_v7 = vpack.c.b8 %v511_v26, %v511_v26  ;;  %v510_v9 = vpack.c.b8 %v509_v28, %v509_v28  ;;  %v645_v15 = vpack.c.b8 %v644_v30, %v644_v30  ;;  %v1980_v62 = vld [vmem:[#allocation12] sm:$0xff] }
 0x1bb   :  { %4349 = vmatpush3.msra.mxu1 %v1994_v36  ;;  %vm514_vm5 = vnez %v508_v14  ;;  %vm5388_vm7 = vnez %v506_v22  ;;  %v386_v11 = vunpack.c.0.s8 %v5380_v37  ;;  %v782_v17 = vpack.c.b8 %v781_v31, %v781_v31 }
 0x1bc   :  { %4350 = vmatprep.subr.mxu1 %v1993_v47  ;;  %v5394_v13 = vsel %vm514_vm5, 16843009, %v4935_v41  ;;  %v642_v21 = vpack.c.b16 %v638_v38, %v638_v38  ;;  %v640_v27 = vunpack.c.2.s8 %v5372_v60  ;;  %v5402_v34 = vsel %vm5383_vm6, 16843009, %v4935_v41 }
 0x1bd   :  { %4351 = vmatpush3.msra.mxu1 %v1993_v47  ;;  %v5407_v35 = vsel %vm5388_vm7, 16843009, %v4935_v41  ;;  %v779_v36 = vpack.c.b16 %v775_v42, %v775_v42  ;;  %v1982_v47 = vld [vmem:[#allocation12 + $0x10] sm:$0xff]  ;;  %vm5410_vm8 = vnez %v376_v40  ;;  %vm5414_vm9 = vnez %v374_v6  ;;  %v1320_v42 = vld [vmem:[#allocation8 + $0x38] sm:$0xff] }
 0x1be   :  { %4352 = vmatprep.subr.mxu1 %v1992_v44  ;;  %vm5418_vm10 = vnez %v512_v7  ;;  %vm5422_vm11 = vnez %v510_v9  ;;  %vm5426_vm12 = vnez %v645_v15  ;;  %vm5430_vm13 = vnez %v782_v17  ;;  %v1183_v40 = vld [vmem:[#allocation8 + $0x30] sm:$0xff]  ;;  %v2096_v9 = vld [vmem:[#allocation14 + $0x78] sm:$0xff] }
 0x1bf   :  { %4353 = vmatpush3.msra.mxu1 %v1992_v44  ;;  %vm910_vm14 = vnez %v909_v29  ;;  %v643_v54 = vpack.c.b8 %v642_v21, %v642_v21  ;;  %v648_v55 = vpack.c.b16 %v641_v23, %v641_v23  ;;  %v646_v57 = vpack.c.b16 %v640_v27, %v640_v27 }
 0x1c0   :  { %4354 = vmatprep.subr.mxu1 %v1991_v52  ;;  %v5442_v59 = vsel %vm5414_vm9, 16843009, %v4935_v41  ;;  %v780_v60 = vpack.c.b8 %v779_v36, %v779_v36  ;;  %v783_v61 = vpack.c.b16 %v777_v46, %v777_v46  ;;  %v522_v63 = vunpack.c.0.s8 %v5394_v13 }
 0x1c1   :  { %4355 = vmatpush3.msra.mxu1 %v1991_v52  ;;  %v5448_v0 = vsel %vm5418_vm10, 16843009, %v4935_v41  ;;  %v1048_v2 = vsel %vm1047_vm15, 16843009, %v4935_v41  ;;  %v385_v3 = vunpack.c.0.s8 %v5402_v34  ;;  %v5458_v4 = vsel %vm5422_vm11, 16843009, %v4935_v41 }
 0x1c2   :  { %4356 = vmatprep.subr.mxu1 %v1990_v56  ;;  %v5463_v5 = vsel %vm5426_vm12, 16843009, %v4935_v41  ;;  %v5468_v8 = vsel %vm5430_vm13, 16843009, %v4935_v41  ;;  %vm5470_vm0 = vnez %v643_v54  ;;  %v647_v16 = vpack.c.b8 %v646_v57, %v646_v57 }
 0x1c3   :  { %4357 = vmatpush3.msra.mxu1 %v1990_v56  ;;  %v785_v56 = vpack.c.b16 %v778_v25, %v778_v25  ;;  %vm787_vm1 = vnez %v780_v60  ;;  %v784_v18 = vpack.c.b8 %v783_v61, %v783_v61  ;;  %v1050_v22 = vunpack.c.1.s8 %v1048_v2 }
 0x1c4   :  { %4358 = vmatprep.subr.mxu1 %v1989_v58  ;;  %v521_v24 = vunpack.c.0.s8 %v5407_v35  ;;  %v387_v28 = vunpack.c.0.s8 %v5442_v59  ;;  %v524_v30 = vunpack.c.0.s8 %v5448_v0  ;;  %v523_v31 = vunpack.c.0.s8 %v5458_v4 }
 0x1c5   :  { %4359 = vmatpush3.msra.mxu1 %v1989_v58  ;;  %v5437_v58 = vsel %vm5410_vm8, 16843009, %v4935_v41  ;;  %v786_v14 = vpack.c.b8 %v785_v56, %v785_v56  ;;  %v796_v38 = vunpack.c.0.s8 %v5468_v8  ;;  %v5484_v39 = vsel %vm5470_vm0, 16843009, %v4935_v41 }
 0x1c6   :  { %4360 = vmatprep.subr.mxu1 %v1988_v1  ;;  %v388_v26 = vunpack.c.0.s8 %v5437_v58  ;;  %vm5497_vm4 = vnez %v647_v16  ;;  %vm5501_vm5 = vnez %v784_v18  ;;  %v1049_v23 = vunpack.c.0.s8 %v1048_v2 }
 0x1c7   :  { %4361 = vmatpush3.msra.mxu1 %v1988_v1  ;;  %v911_v1 = vsel %vm910_vm14, 16843009, %v4935_v41  ;;  %vm5493_vm3 = vnez %v786_v14  ;;  %vm1184_vm6 = vnez %v1183_v40  ;;  %vm1321_vm7 = vnez %v1320_v42 }
 0x1c8   :  { %4362 = vmatprep.subr.mxu1 %v1987_v12  ;;  %v912_v21 = vunpack.c.0.s8 %v911_v1  ;;  %v915_v25 = vunpack.c.3.s8 %v911_v1  ;;  %v658_v27 = vunpack.c.0.s8 %v5484_v39  ;;  %v1052_v29 = vunpack.c.3.s8 %v1048_v2 }
 0x1c9   :  { %4363 = vmatpush3.msra.mxu1 %v1987_v12  ;;  %v649_v12 = vpack.c.b8 %v648_v55, %v648_v55  ;;  %v914_v32 = vunpack.c.2.s8 %v911_v1  ;;  %v1051_v36 = vunpack.c.2.s8 %v1048_v2  ;;  %v5515_v48 = vsel %vm5493_vm3, 16843009, %v4935_v41 }
 0x1ca   :  { %4364 = vmatprep.subr.mxu1 %v1986_v20  ;;  %v5520_v49 = vsel %vm5497_vm4, 16843009, %v4935_v41  ;;  %v5525_v44 = vsel %vm5501_vm5, 16843009, %v4935_v41  ;;  %v1185_v51 = vsel %vm1184_vm6, 16843009, %v4935_v41  ;;  %v916_v54 = vpack.c.b16 %v912_v21, %v912_v21 }
 0x1cb   :  { %4365 = vmatpush3.msra.mxu1 %v1986_v20  ;;  %v913_v20 = vunpack.c.1.s8 %v911_v1  ;;  %vm5489_vm2 = vnez %v649_v12  ;;  %v1322_v52 = vsel %vm1321_vm7, 16843009, %v4935_v41  ;;  %v1053_v55 = vpack.c.b16 %v1049_v23, %v1049_v23 }
 0x1cc   :  { %4366 = vmatprep.subr.mxu1 %v1985_v33  ;;  %v922_v56 = vpack.c.b16 %v915_v25, %v915_v25  ;;  %v1059_v60 = vpack.c.b16 %v1052_v29, %v1052_v29  ;;  %v920_v61 = vpack.c.b16 %v914_v32, %v914_v32  ;;  %v1187_v1 = vunpack.c.1.s8 %v1185_v51 }
 0x1cd   :  { %4367 = vmatpush3.msra.mxu1 %v1985_v33  ;;  %v659_v33 = vunpack.c.0.s8 %v5463_v5  ;;  %v918_v17 = vpack.c.b16 %v913_v20, %v913_v20  ;;  %v1324_v2 = vunpack.c.1.s8 %v1322_v52  ;;  %v1186_v10 = vunpack.c.0.s8 %v1185_v51 }
 0x1ce   :  { %4368 = vmatprep.subr.mxu1 %v1984_v43  ;;  %v1323_v12 = vunpack.c.0.s8 %v1322_v52  ;;  %v798_v14 = vunpack.c.0.s8 %v5515_v48  ;;  %v660_v16 = vunpack.c.0.s8 %v5520_v49  ;;  %v1054_v40 = vpack.c.b8 %v1053_v55, %v1053_v55 }
 0x1cf   :  { %4369 = vmatpush3.msra.mxu1 %v1984_v43  ;;  %v5487_v43 = vsel %vm787_vm1, 16843009, %v4935_v41  ;;  %v919_v50 = vpack.c.b8 %v918_v17, %v918_v17  ;;  %v923_v42 = vpack.c.b8 %v922_v56, %v922_v56  ;;  %v1060_v7 = vpack.c.b8 %v1059_v60, %v1059_v60 }
 0x1d0   :  { %4370 = vmatprep.subr.mxu1 %v1983_v19  ;;  %v795_v46 = vunpack.c.0.s8 %v5487_v43  ;;  %v1189_v17 = vunpack.c.3.s8 %v1185_v51  ;;  %v1329_v21 = vpack.c.b16 %v1324_v2, %v1324_v2  ;;  %v1190_v23 = vpack.c.b16 %v1186_v10, %v1186_v10 }
 0x1d1   :  { %4371 = vmatpush3.msra.mxu1 %v1983_v19  ;;  %v1055_v19 = vpack.c.b16 %v1050_v22, %v1050_v22  ;;  %vm925_vm8 = vnez %v919_v50  ;;  %v917_v22 = vpack.c.b8 %v916_v54, %v916_v54  ;;  %v1327_v25 = vpack.c.b16 %v1323_v12, %v1323_v12 }
 0x1d2   :  { %4372 = vmatprep.subr.mxu1 %v1982_v47  ;;  %v5542_v29 = vsel %vm925_vm8, 16843009, %v4935_v41  ;;  %v1326_v32 = vunpack.c.3.s8 %v1322_v52  ;;  %v1325_v50 = vunpack.c.2.s8 %v1322_v52  ;;  %vm5553_vm11 = vnez %v1054_v40 }
 0x1d3   :  { %4373 = vmatpush3.msra.mxu1 %v1982_v47  ;;  %v5510_v47 = vsel %vm5489_vm2, 16843009, %v4935_v41  ;;  %vm5549_vm10 = vnez %v917_v22  ;;  %vm5557_vm12 = vnez %v923_v42  ;;  %vm5565_vm13 = vnez %v1060_v7 }
 0x1d4   :  { %4374 = vmatprep.subr.mxu1 %v1981_v53  ;;  %v661_v57 = vunpack.c.0.s8 %v5510_v47  ;;  %v1330_v10 = vpack.c.b8 %v1329_v21, %v1329_v21  ;;  %v1191_v12 = vpack.c.b8 %v1190_v23, %v1190_v23  ;;  %v1328_v20 = vpack.c.b8 %v1327_v25, %v1327_v25 }
 0x1d5   :  { %4375 = vmatpush3.msra.mxu1 %v1981_v53  ;;  %v1056_v53 = vpack.c.b8 %v1055_v19, %v1055_v19  ;;  %v1192_v19 = vpack.c.b16 %v1187_v1, %v1187_v1  ;;  %v1196_v1 = vpack.c.b16 %v1189_v17, %v1189_v17  ;;  %v933_v42 = vunpack.c.0.s8 %v5542_v29 }
 0x1d6   :  { %4376 = vmatprep.subr.mxu1 %v1980_v62  ;;  %v1333_v7 = vpack.c.b16 %v1326_v32, %v1326_v32  ;;  %v1331_v18 = vpack.c.b16 %v1325_v50, %v1325_v50  ;;  %vm5584_vm0 = vcmp.ne.s32.totalorder %v386_v11, 0  ;;  %v5597_v21 = vsel %vm5553_vm11, 16843009, %v4935_v41 }
 0x1d7   :  { %4377 = vmatpush3.msra.mxu1 %v1980_v62  ;;  %v1057_v62 = vpack.c.b16 %v1051_v36, %v1051_v36  ;;  %vm5533_vm9 = vnez %v1056_v53  ;;  %v1188_v36 = vunpack.c.2.s8 %v1185_v51  ;;  %v1193_v2 = vpack.c.b8 %v1192_v19, %v1192_v19 }
 0x1d8   :  { %4422 = vmatprep.subr.mxu1 %v2096_v9  ;;  %v921_v9 = vpack.c.b8 %v920_v61, %v920_v61  ;;  %v5547_v53 = vsel %vm5533_vm9, 16843009, %v4935_v41  ;;  %v5592_v19 = vsel %vm5549_vm10, 16843009, %v4935_v41  ;;  %v5602_v37 = vsel %vm5557_vm12, 16843009, %v4935_v41 }
 0x1d9   :  { %v1058_v15 = vpack.c.b8 %v1057_v62, %v1057_v62  ;;  %v1070_v17 = vunpack.c.0.s8 %v5547_v53  ;;  %v5607_v11 = vsel %vm5565_vm13, 16843009, %v4935_v41  ;;  %v1197_v32 = vpack.c.b8 %v1196_v1, %v1196_v1 }
 0x1da   :  { %vm5569_vm14 = vnez %v921_v9  ;;  %v1194_v9 = vpack.c.b16 %v1188_v36, %v1188_v36  ;;  %vm5619_vm1 = vnez %v1193_v2  ;;  %vm5623_vm2 = vnez %v1330_v10 }
 0x1db   :  { %vm5573_vm15 = vnez %v1058_v15  ;;  %v5612_v23 = vsel %vm5569_vm14, 16843009, %v4935_v41  ;;  %vm5627_vm3 = vnez %v1191_v12  ;;  %vm5631_vm4 = vnez %v1328_v20 }
 0x1dc   :  { %v5617_v25 = vsel %vm5573_vm15, 16843009, %v4935_v41  ;;  %vm5637_vm5 = vcmp.ne.s32.totalorder %v385_v3, 0  ;;  %v8084_v56 = vmov 0  ;;  %vm5643_vm6 = vcmp.ne.s32.totalorder %v388_v26, 0 }
 0x1dd   :  { %v8085_v56 = vsel %vm5637_vm5, 4294967295, %v8084_v56  ;;  %v8086_v52 = vmov 0  ;;  %v1334_v1 = vpack.c.b8 %v1333_v7, %v1333_v7  ;;  %v1195_v2 = vpack.c.b8 %v1194_v9, %v1194_v9 }
 0x1de   :  { %v8087_v52 = vsel %vm5643_vm6, 4294967295, %v8086_v52  ;;  %v1332_v10 = vpack.c.b8 %v1331_v18, %v1331_v18  ;;  %vm5649_vm7 = vcmp.ne.s32.totalorder %v522_v63, 0  ;;  %vm5655_vm8 = vcmp.ne.s32.totalorder %v387_v28, 0 }
 0x1df   :  { %8088 = vst [vmem:[#allocation27_spill] sm:$0xff] %v8087_v52  ;;  %v8091_v34 = vmov 0  ;;  %v932_v58 = vunpack.c.0.s8 %v5592_v19  ;;  %v1069_v3 = vunpack.c.0.s8 %v5597_v21  ;;  %v935_v26 = vunpack.c.0.s8 %v5602_v37 }
 0x1e0   :  { %v8092_v34 = vsel %vm5655_vm8, 4294967295, %v8091_v34  ;;  %v5669_v59 = vsel %vm5619_vm1, 16843009, %v4935_v41  ;;  %vm1201_vm9 = vnez %v1197_v32  ;;  %vm5673_vm10 = vcmp.ne.s32.totalorder %v521_v24, 0 }
 0x1e1   :  { %8093 = vst [vmem:[#allocation28_spill] sm:$0xff] %v8092_v34  ;;  %v8094_v28 = vmov 0  ;;  %v5681_v9 = vsel %vm5623_vm2, 16843009, %v4935_v41  ;;  %v5686_v19 = vsel %vm5627_vm3, 16843009, %v4935_v41  ;;  %vm1338_vm12 = vnez %v1334_v1 }
 0x1e2   :  { %v8095_v28 = vsel %vm5673_vm10, 4294967295, %v8094_v28  ;;  %v5691_v35 = vsel %vm5631_vm4, 16843009, %v4935_v41  ;;  %vm5695_vm11 = vcmp.ne.s32.totalorder %v524_v30, 0  ;;  %v8096_v24 = vmov 0 }
 0x1e3   :  { %v8097_v24 = vsel %vm5695_vm11, 4294967295, %v8096_v24  ;;  %vm1200_vm13 = vnez %v1195_v2  ;;  %vm1337_vm14 = vnez %v1332_v10  ;;  %vm5701_vm15 = vcmp.ne.s32.totalorder %v523_v31, 0 }
 0x1e4   :  { %8098 = vst [vmem:[#allocation29_spill] sm:$0xff] %v8097_v24  ;;  %v8099_v32 = vmov 0  ;;  %v1207_v36 = vunpack.c.0.s8 %v5669_v59  ;;  %v5707_v50 = vsel %vm1201_vm9, 16843009, %v4935_v41  ;;  %vm5711_vm1 = vcmp.ne.s32.totalorder %v659_v33, 0 }
 0x1e5   :  { %v8100_v32 = vsel %vm5701_vm15, 4294967295, %v8099_v32  ;;  %v8102_v0 = vmov 0  ;;  %v1344_v55 = vunpack.c.0.s8 %v5681_v9  ;;  %v1206_v4 = vunpack.c.0.s8 %v5686_v19 }
 0x1e6   :  { %8101 = vst [vmem:[#allocation30_spill] sm:$0xff] %v8100_v32  ;;  %v8103_v0 = vsel %vm5711_vm1, 4294967295, %v8102_v0  ;;  %v1343_v31 = vunpack.c.0.s8 %v5691_v35  ;;  %v5719_v1 = vsel %vm1338_vm12, 16843009, %v4935_v41  ;;  %v5722_v2 = vsel %vm1200_vm13, 16843009, %v4935_v41 }
 0x1e7   :  { %v5725_v5 = vsel %vm1337_vm14, 16843009, %v4935_v41  ;;  %vm5734_vm2 = vcmp.ne.s32.totalorder %v658_v27, 0  ;;  %v8104_v10 = vmov 0  ;;  %vm5764_vm3 = vcmp.ne.s32.totalorder %v796_v38, 0 }
 0x1e8   :  { %v8105_v10 = vsel %vm5734_vm2, 4294967295, %v8104_v10  ;;  %vm5770_vm4 = vcmp.ne.s32.totalorder %v933_v42, 0  ;;  %vm5776_vm9 = vcmp.ne.s32.totalorder %v795_v46, 0  ;;  %vm5789_vm12 = vcmp.ne.s32.totalorder %v661_v57, 0 }
 0x1e9   :  { %v8112_v29 = vmov 0  ;;  %vm5793_vm13 = vcmp.ne.s32.totalorder %v932_v58, 0  ;;  %v8115_v42 = vmov 0  ;;  %vm5814_vm14 = vcmp.ne.s32.totalorder %v660_v16, 0 }
 0x1ea   :  { %v8113_v29 = vsel %vm5789_vm12, 4294967295, %v8112_v29  ;;  %v8116_v42 = vsel %vm5793_vm13, 4294967295, %v8115_v42  ;;  %v8137_v21 = vmov 0 }
 0x1eb   :  { %8114 = vst [vmem:[#allocation31_spill] sm:$0xff] %v8113_v29  ;;  %8117 = vst [vmem:[#allocation32_spill] sm:$0xff] %v8116_v42 }
 0x20a   :  { %v5537_v45 = vpop.f32.mrf.mxu1  ;;  %v5539_v6 = vpop.f32.mrf.mxu0 }
 0x20b   :  { %v5730_v33 = vsel %vm5584_vm0, -1e+30, %v5537_v45  ;;  %v5756_v45 = vsel %vm5649_vm7, -1e+30, %v5539_v6  ;;  %v8110_v6 = vmov 0 }
 0x20c   :  { %v5561_v60 = vpop.f32.mrf.mxu1  ;;  %v5563_v51 = vpop.f32.mrf.mxu0  ;;  %v402_v13 = vmax.f32 %v5730_v33, -1e+30  ;;  %v8111_v6 = vsel %vm5776_vm9, 4294967295, %v8110_v6 }
 0x20d   :  { %v5746_v39 = vsel %vm5637_vm5, -1e+30, %v5561_v60  ;;  %v5784_v8 = vsel %vm5673_vm10, -1e+30, %v5563_v51  ;;  %vm5859_vm5 = vcmp.ne.s32.totalorder %v1206_v4, 0 }
 0x20e   :  { %v8138_v21 = vsel %vm5859_vm5, 4294967295, %v8137_v21 }
 0x20f   :  { %8139 = vst [vmem:[#allocation37_spill] sm:$0xff] %v8138_v21 }
 0x210   :  { %v5577_v22 = vpop.f32.mrf.mxu1  ;;  %v5579_v40 = vpop.f32.mrf.mxu0 }
 0x211   :  { %v5751_v27 = vsel %vm5643_vm6, -1e+30, %v5577_v22  ;;  %v401_v22 = vmax.f32 %v5746_v39, -1e+30  ;;  %v5802_v51 = vsel %vm5695_vm11, -1e+30, %v5579_v40 }
 0x212   :  { %v353_v61 = vpop.f32.mrf.mxu1  ;;  %v489_v62 = vpop.f32.mrf.mxu0  ;;  %v404_v38 = vmax.f32 %v5751_v27, -1e+30  ;;  %vm5822_vm11 = vcmp.ne.s32.totalorder %v798_v14, 0  ;;  %vm5828_vm6 = vcmp.ne.s32.totalorder %v1070_v17, 0  ;;  %v8126_v14 = vmov 0 }
 0x213   :  { %v5760_v7 = vsel %vm5655_vm8, -1e+30, %v353_v61  ;;  %v539_v61 = vmax.f32 %v402_v13, %v5756_v45  ;;  %v5806_v47 = vsel %vm5701_vm15, -1e+30, %v489_v62  ;;  %v8118_v13 = vmov 0 }
 0x214   :  { %v403_v41 = vmax.f32 %v5760_v7, -1e+30  ;;  %v8119_v13 = vsel %vm5814_vm14, 4294967295, %v8118_v13  ;;  %v538_v63 = vmax.f32 %v401_v22, %v5784_v8  ;;  %v541_v40 = vmax.f32 %v404_v38, %v5802_v51 }
 0x215   :  { %8120 = vst [vmem:[#allocation33_spill] sm:$0xff] %v8119_v13  ;;  %v8121_v62 = vmov 0  ;;  %vm5840_vm15 = vcmp.ne.s32.totalorder %v1069_v3, 0  ;;  %vm5844_vm8 = vcmp.ne.s32.totalorder %v1207_v36, 0  ;;  %v8131_v17 = vunpack.c.0.s8 %v5525_v44 }
 0x216   :  { %v8122_v62 = vsel %vm5822_vm11, 4294967295, %v8121_v62  ;;  %v540_v49 = vmax.f32 %v403_v41, %v5806_v47  ;;  %v8127_v14 = vsel %vm5840_vm15, 4294967295, %v8126_v14  ;;  %v8132_v41 = vmov 0 }
 0x217   :  { %8123 = vst [vmem:[#allocation34_spill] sm:$0xff] %v8122_v62  ;;  %8128 = vst [vmem:[#allocation35_spill] sm:$0xff] %v8127_v14  ;;  %vm5850_vm10 = vcmp.ne.s32.totalorder %v8131_v17, 0 }
 0x218   :  { %v8133_v41 = vsel %vm5850_vm10, 4294967295, %v8132_v41 }
 0x219   :  { %8134 = vst [vmem:[#allocation36_spill] sm:$0xff] %v8133_v41  ;;  %v8157_v41 = vunpack.c.0.s8 %v5722_v2 }
 0x22d   :  { %v4152_v20 = vpop.f32.mrf.mxu1  ;;  %v5662_v18 = vpop.f32.mrf.mxu0 }
 0x22e   :  { %v5810_v58 = vsel %vm5711_vm1, -1e+30, %v4152_v20  ;;  %v804_v3 = vsel %vm5764_vm3, -1e+30, %v5662_v18  ;;  %vm5874_vm1 = vcmp.ne.s32.totalorder %v935_v26, 0 }
 0x22f   :  { %v616_v30 = vpop.f32.mrf.mxu1  ;;  %v753_v54 = vpop.f32.mrf.mxu0  ;;  %v676_v22 = vmax.f32 %v539_v61, %v5810_v58 }
 0x230   :  { %v5835_v16 = vsel %vm5734_vm2, -1e+30, %v616_v30  ;;  %vm5855_vm2 = vcmp.ne.s32.totalorder %v1344_v55, 0  ;;  %v5870_v17 = vsel %vm5776_vm9, -1e+30, %v753_v54  ;;  %v8140_v55 = vmov 0 }
 0x231   :  { %v675_v30 = vmax.f32 %v538_v63, %v5835_v16  ;;  %v813_v36 = vmax.f32 %v676_v22, %v804_v3  ;;  %v8141_v55 = vsel %vm5874_vm1, 4294967295, %v8140_v55  ;;  %vm5887_vm9 = vcmp.ne.s32.totalorder %v1343_v31, 0 }
 0x232   :  { %8142 = vst [vmem:[#allocation38_spill] sm:$0xff] %v8141_v55 }
 0x233   :  { %v4155_v9 = vpop.f32.mrf.mxu1  ;;  %v4193_v19 = vpop.f32.mrf.mxu0 }
 0x234   :  { %v5880_v24 = vsel %vm5789_vm12, -1e+30, %v4155_v9 }
 0x235   :  { %v626_v43 = vpop.f32.mrf.mxu1  ;;  %v763_v46 = vpop.f32.mrf.mxu0  ;;  %v678_v37 = vmax.f32 %v541_v40, %v5880_v24 }
 0x236   :  { %v5894_v26 = vsel %vm5814_vm14, -1e+30, %v626_v43 }
 0x251   :  { %v4228_v57 = vpop.f32.mrf.mxu1  ;;  %v4266_v59 = vpop.f32.mrf.mxu0 }
 0x252   :  { %v941_v44 = vsel %vm5770_vm4, -1e+30, %v4228_v57  ;;  %v812_v57 = vmax.f32 %v675_v30, %v5870_v17  ;;  %v1078_v31 = vsel %vm5828_vm6, -1e+30, %v4266_v59  ;;  %v8145_v30 = vunpack.c.0.s8 %v5612_v23 }
 0x253   :  { %v890_v38 = vpop.f32.mrf.mxu1  ;;  %v1027_v48 = vpop.f32.mrf.mxu0  ;;  %v950_v54 = vmax.f32 %v813_v36, %v941_v44  ;;  %v8151_v59 = vunpack.c.0.s8 %v5707_v50 }
 0x254   :  { %v5884_v18 = vsel %vm5793_vm13, -1e+30, %v890_v38  ;;  %v5901_v38 = vsel %vm5822_vm11, -1e+30, %v4193_v19  ;;  %vm5907_vm12 = vcmp.ne.s32.totalorder %v8145_v30, 0  ;;  %v8148_v19 = vunpack.c.0.s8 %v5607_v11 }
 0x255   :  { %v949_v9 = vmax.f32 %v812_v57, %v5884_v18  ;;  %v1087_v43 = vmax.f32 %v950_v54, %v1078_v31  ;;  %v677_v57 = vmax.f32 %v540_v49, %v5894_v26  ;;  %v5914_v42 = vsel %vm5840_vm15, -1e+30, %v1027_v48 }
 0x256   :  { %vm5918_vm11 = vcmp.ne.s32.totalorder %v8148_v19, 0  ;;  %vm5926_vm14 = vcmp.ne.s32.totalorder %v8151_v59, 0  ;;  %v815_v49 = vmax.f32 %v678_v37, %v5901_v38  ;;  %v5933_v48 = vsel %vm5850_vm10, -1e+30, %v763_v46 }
 0x257   :  { %v4231_v63 = vpop.f32.mrf.mxu1  ;;  %v4269_v4 = vpop.f32.mrf.mxu0  ;;  %v1086_v11 = vmax.f32 %v949_v9, %v5914_v42  ;;  %v814_v37 = vmax.f32 %v677_v57, %v5933_v48  ;;  %v8154_v9 = vunpack.c.0.s8 %v5617_v25 }
 0x258   :  { %v5946_v46 = vsel %vm5874_vm1, -1e+30, %v4231_v63 }
 0x259   :  { %v900_v29 = vpop.f32.mrf.mxu1  ;;  %v5897_v52 = vpop.f32.mrf.mxu0  ;;  %vm5950_vm10 = vcmp.ne.s32.totalorder %v8154_v9, 0  ;;  %v8160_v9 = vunpack.c.0.s8 %v5719_v1  ;;  %v952_v2 = vmax.f32 %v815_v49, %v5946_v46  ;;  %v8163_v1 = vunpack.c.0.s8 %v5725_v5 }
 0x25a   :  { %v5990_v49 = vsel %vm5918_vm11, -1e+30, %v4269_v4 }
 0x25b   :  { %vm5967_vm1 = vcmp.ne.s32.totalorder %v8160_v9, 0  ;;  %vm5982_vm15 = vcmp.ne.s32.totalorder %v8163_v1, 0  ;;  %v1089_v5 = vmax.f32 %v952_v2, %v5990_v49 }
 0x275   :  { %v4304_v36 = vpop.f32.mrf.mxu1  ;;  %v4342_v13 = vpop.f32.mrf.mxu0 }
 0x276   :  { %v1215_v23 = vsel %vm5844_vm8, -1e+30, %v4304_v36  ;;  %v1352_v14 = vsel %vm5855_vm2, -1e+30, %v4342_v13 }
 0x277   :  { %v1224_v30 = vmax.f32 %v1087_v43, %v1215_v23  ;;  %v1164_v19 = vpop.f32.mrf.mxu1  ;;  %v1301_v32 = vpop.f32.mrf.mxu0 }
 0x278   :  { %v5940_v50 = vsel %vm5859_vm5, -1e+30, %v1164_v19  ;;  %vm5959_vm5 = vcmp.ne.s32.totalorder %v8157_v41, 0  ;;  %v1351_v25 = vsel %vm5887_vm9, -1e+30, %v1301_v32 }
 0x279   :  { %v1361_v36 = vmax.f32 %v1224_v30, %v1352_v14  ;;  %v1223_v59 = vmax.f32 %v1086_v11, %v5940_v50  ;;  %v4345_v9 = vpop.f32.mrf.mxu0 }
 0x27b   :  { %v1371_v13 = vsub.f32 %v5730_v33, %v1361_v36  ;;  %v1446_v19 = vsub.f32 %v5756_v45, %v1361_v36  ;;  %v1521_v30 = vsub.f32 %v5810_v58, %v1361_v36  ;;  %v1596_v11 = vsub.f32 %v804_v3, %v1361_v36 }
 0x27c   :  { %v1671_v63 = vsub.f32 %v941_v44, %v1361_v36  ;;  %v1746_v55 = vsub.f32 %v1078_v31, %v1361_v36  ;;  %v5971_v21 = vmax.f32 %v1223_v59, %v1351_v25  ;;  %v1821_v34 = vsub.f32 %v1215_v23, %v1361_v36  ;;  %v4307_v44 = vpop.f32.mrf.mxu1 }
 0x27d   :  { %v1376_v45 = vmul.f32 1.442695, %v1371_v13  ;;  %v1451_v58 = vmul.f32 1.442695, %v1446_v19  ;;  %v1526_v3 = vmul.f32 1.442695, %v1521_v30 }
 0x27e   :  { %v1601_v41 = vmul.f32 1.442695, %v1596_v11  ;;  %v5976_v31 = vsel %vm5907_vm12, -1e+30, %v900_v29  ;;  %v1370_v32 = vsub.f32 %v5746_v39, %v5971_v21  ;;  %v1676_v59 = vmul.f32 1.442695, %v1671_v63 }
 0x27f   :  { %4628 = vpow2.f32 %v1376_v45  ;;  %v1445_v23 = vsub.f32 %v5784_v8, %v5971_v21  ;;  %v1751_v29 = vmul.f32 1.442695, %v1746_v55  ;;  %v5994_v39 = vsel %vm5926_vm14, -1e+30, %v4307_v44  ;;  %v1174_v8 = vpop.f32.mrf.mxu1 }
 0x280   :  { %4630 = vpow2.f32 %v1451_v58  ;;  %v951_v19 = vmax.f32 %v814_v37, %v5976_v31  ;;  %v1826_v30 = vmul.f32 1.442695, %v1821_v34  ;;  %v1896_v11 = vsub.f32 %v1352_v14, %v1361_v36 }
 0x281   :  { %4632 = vpow2.f32 %v1526_v3  ;;  %v1374_v63 = vmul.f32 1.442695, %v1370_v32  ;;  %v1449_v45 = vmul.f32 1.442695, %v1445_v23  ;;  %v1226_v4 = vmax.f32 %v1089_v5, %v5994_v39  ;;  %v1311_v3 = vpop.f32.mrf.mxu0 }
 0x282   :  { %4634 = vpow2.f32 %v1601_v41  ;;  %v6002_v55 = vsel %vm5950_vm10, -1e+30, %v5897_v52  ;;  %v1520_v58 = vsub.f32 %v5835_v16, %v5971_v21  ;;  %v6009_v34 = vsel %vm5959_vm5, -1e+30, %v1174_v8 }
 0x283   :  { %4636 = vpow2.f32 %v1676_v59  ;;  %v1088_v37 = vmax.f32 %v951_v19, %v6002_v55  ;;  %v1901_v14 = vmul.f32 1.442695, %v1896_v11  ;;  %v1595_v36 = vsub.f32 %v5870_v17, %v5971_v21 }
 0x284   :  { %4638 = vpow2.f32 %v1751_v29  ;;  %v6015_v52 = vsel %vm5967_vm1, -1e+30, %v4345_v9  ;;  %v1670_v16 = vsub.f32 %v5884_v18, %v5971_v21  ;;  %v1895_v2 = vsub.f32 %v1351_v25, %v5971_v21 }
 0x285   :  { %4640 = vpow2.f32 %v1826_v30  ;;  %v6021_v41 = vmax.f32 %v1226_v4, %v6015_v52  ;;  %v1524_v44 = vmul.f32 1.442695, %v1520_v58  ;;  %v1225_v32 = vmax.f32 %v1088_v37, %v6009_v34 }
 0x286   :  { %4642 = vpow2.f32 %v1374_v63  ;;  %v6026_v17 = vsel %vm5982_vm15, -1e+30, %v1311_v3  ;;  %v1599_v1 = vmul.f32 1.442695, %v1595_v36  ;;  %v1674_v29 = vmul.f32 1.442695, %v1670_v16 }
 0x287   :  { %4644 = vpow2.f32 %v1449_v45  ;;  %v6029_v59 = vmax.f32 %v1225_v32, %v6026_v17  ;;  %v1899_v18 = vmul.f32 1.442695, %v1895_v2  ;;  %v1373_v25 = vsub.f32 %v5751_v27, %v6021_v41 }
 0x288   :  { %4646 = vpow2.f32 %v1901_v14  ;;  %v1745_v5 = vsub.f32 %v5914_v42, %v5971_v21  ;;  %v1448_v42 = vsub.f32 %v5802_v51, %v6021_v41  ;;  %v1523_v15 = vsub.f32 %v5880_v24, %v6021_v41 }
 0x289   :  { %4648 = vpow2.f32 %v1524_v44  ;;  %v1372_v11 = vsub.f32 %v5760_v7, %v6029_v59  ;;  %v1447_v63 = vsub.f32 %v5806_v47, %v6029_v59  ;;  %v1598_v47 = vsub.f32 %v5901_v38, %v6021_v41 }
 0x28a   :  { %v1673_v4 = vsub.f32 %v5946_v46, %v6021_v41  ;;  %v1898_v24 = vsub.f32 %v6015_v52, %v6021_v41  ;;  %4650 = vpow2.f32 %v1599_v1  ;;  %v1380_v3 = vmul.f32 1.442695, %v1373_v25 }
 0x28b   :  { %v1378_v58 = vmul.f32 1.442695, %v1372_v11  ;;  %v1453_v51 = vmul.f32 1.442695, %v1447_v63  ;;  %v1522_v38 = vsub.f32 %v5894_v26, %v6029_v59  ;;  %v1530_v2 = vmul.f32 1.442695, %v1523_v15 }
 0x28c   :  { %v4629_v23 = vpop.eup %4628  ;;  %v1597_v44 = vsub.f32 %v5933_v48, %v6029_v59  ;;  %v1820_v25 = vsub.f32 %v5940_v50, %v5971_v21 }
 0x28d   :  { %v4631_v19 = vpop.eup %4630  ;;  %v6037_v30 = vsel %vm5584_vm0, 0.0, %v4629_v23  ;;  %vm8166_vm0 = vnez %v8103_v0  ;;  %v1455_v0 = vmul.f32 1.442695, %v1448_v42  ;;  %v1605_v23 = vmul.f32 1.442695, %v1598_v47  ;;  %v6107_v47 = vld [vmem:[#allocation6] sm:$0xff] }
 0x28e   :  { %v4633_v9 = vpop.eup %4632  ;;  %v1436_v8 = vmax.f32 %v6037_v30, 0.0  ;;  %v6046_v27 = vsel %vm5649_vm7, 0.0, %v4631_v19  ;;  %v6075_v19 = vmul.f32 1.442695, %v1673_v4  ;;  %4652 = vpow2.f32 %v1378_v58 }
 0x28f   :  { %v4635_v45 = vpop.eup %4634  ;;  %v1495_v7 = vadd.f32 %v6046_v27, %v6037_v30  ;;  %v6061_v37 = vsel %vm8166_vm0, 0.0, %v4633_v9  ;;  %4654 = vpow2.f32 %v1453_v51  ;;  %v1528_v63 = vmul.f32 1.442695, %v1522_v38 }
 0x290   :  { %v1511_v12 = vmax.f32 %v1436_v8, %v6046_v27  ;;  %v4637_v14 = vpop.eup %4636  ;;  %v6070_v16 = vsel %vm5764_vm3, 0.0, %v4635_v45  ;;  %vm8169_vm7 = vnez %v8085_v56  ;;  %4656 = vpow2.f32 %v1674_v29 }
 0x291   :  { %v1570_v36 = vadd.f32 %v6061_v37, %v1495_v7  ;;  %v4639_v46 = vpop.eup %4638  ;;  %8167 = vst [vmem:[#allocation39_spill] sm:$0xff] %v6070_v16  ;;  %v6080_v35 = vsel %vm5770_vm4, 0.0, %v4637_v14  ;;  %v1603_v60 = vmul.f32 1.442695, %v1597_v44  ;;  %v1749_v42 = vmul.f32 1.442695, %v1745_v5 }
 0x292   :  { %v4641_v52 = vpop.eup %4640  ;;  %v1586_v26 = vmax.f32 %v1511_v12, %v6061_v37  ;;  %8168 = vst [vmem:[#allocation40_spill] sm:$0xff] %v6080_v35  ;;  %v6091_v8 = vsel %vm5828_vm6, 0.0, %v4639_v46  ;;  %4658 = vpow2.f32 %v1899_v18  ;;  %vm8171_vm3 = vnez %v8095_v28  ;;  %v6109_v28 = vld [vmem:[#allocation6 + $0x8] sm:$0xff]  ;;  %v6114_v12 = vld [vmem:[#allocation6 + $0x40] sm:$0xff] }
 0x293   :  { %v1645_v32 = vadd.f32 %v6070_v16, %v1570_v36  ;;  %v4643_v1 = vpop.eup %4642  ;;  %8170 = vst [vmem:[#allocation41_spill] sm:$0xff] %v6091_v8  ;;  %v6102_v29 = vsel %vm5844_vm8, 0.0, %v4641_v52  ;;  %4660 = vpow2.f32 %v1380_v3  ;;  %v1824_v20 = vmul.f32 1.442695, %v1820_v25  ;;  %v6124_v14 = vld [vmem:[#allocation6 + $0x48] sm:$0xff] }
 0x294   :  { %v4645_v11 = vpop.eup %4644  ;;  %v6087_v9 = vsel %vm8169_vm7, 0.0, %v4643_v1  ;;  %v1661_v56 = vmax.f32 %v1586_v26, %v6070_v16  ;;  %v1905_v7 = vmul.f32 1.442695, %v1898_v24  ;;  %4662 = vpow2.f32 %v1528_v63 }
 0x295   :  { %v1720_v48 = vadd.f32 %v6080_v35, %v1645_v32  ;;  %v1435_v21 = vmax.f32 %v6087_v9, 0.0  ;;  %v6097_v50 = vsel %vm8171_vm3, 0.0, %v4645_v11  ;;  %v4647_v45 = vpop.eup %4646  ;;  %v1897_v18 = vsub.f32 %v6026_v17, %v6029_v59  ;;  %v6143_v32 = vld [vmem:[#allocation6 + $0x10] sm:$0xff] }
 0x296   :  { %v4649_v4 = vpop.eup %4648  ;;  %4664 = vpow2.f32 %v1603_v60  ;;  %v1494_v53 = vadd.f32 %v6097_v50, %v6087_v9  ;;  %v1748_v24 = vsub.f32 %v5990_v49, %v6021_v41  ;;  %v6120_v51 = vsel %vm5855_vm2, 0.0, %v4647_v45 }
 0x297   :  { %v1795_v15 = vadd.f32 %v6091_v8, %v1720_v48  ;;  %v1510_v58 = vmax.f32 %v1435_v21, %v6097_v50  ;;  %8172 = vst [vmem:[#allocation42_spill] sm:$0xff] %v6120_v51  ;;  %v1672_v17 = vsub.f32 %v5976_v31, %v6029_v59  ;;  %4666 = vpow2.f32 %v1749_v42  ;;  %v6154_v42 = vld [vmem:[#allocation6 + $0x58] sm:$0xff] }
 0x298   :  { %v1823_v36 = vsub.f32 %v5994_v39, %v6021_v41  ;;  %v1736_v3 = vmax.f32 %v1661_v56, %v6080_v35  ;;  %v1427_v38 = vmul.f32 %v6107_v47, %v6087_v9  ;;  %v1502_v49 = vmul.f32 %v6109_v28, %v6097_v50  ;;  %v6140_v39 = vld [vmem:[#allocation6 + $0x50] sm:$0xff]  ;;  %v4651_v41 = vpop.eup %4650  ;;  %8174 = vst [vmem:[#allocation43_spill] sm:$0xff] %v6154_v42 }
 0x299   :  { %v1870_v5 = vadd.f32 %v6102_v29, %v1795_v15  ;;  %4668 = vpow2.f32 %v1824_v20  ;;  %v1903_v46 = vmul.f32 1.442695, %v1897_v18  ;;  %vm8173_vm6 = vnez %v8105_v10  ;;  %v6164_v20 = vld [vmem:[#allocation6 + $0x18] sm:$0xff] }
 0x29a   :  { %v6136_v31 = vsel %vm8173_vm6, 0.0, %v4649_v4  ;;  %v1428_v44 = vmul.f32 %v6114_v12, %v6037_v30  ;;  %4670 = vpow2.f32 %v1455_v0  ;;  %v1503_v26 = vmul.f32 %v6124_v14, %v6046_v27 }
 0x29b   :  { %v1945_v61 = vadd.f32 %v6120_v51, %v1870_v5  ;;  %v1569_v52 = vadd.f32 %v6136_v31, %v1494_v53  ;;  %v1585_v1 = vmax.f32 %v1510_v58, %v6136_v31  ;;  %4672 = vpow2.f32 %v1530_v2  ;;  %v4653_v48 = vpop.eup %4652  ;;  %v8176_v53 = vld [vmem:[#allocation28_spill] sm:$0xff] }
 0x29c   :  { %v1678_v10 = vmul.f32 1.442695, %v1672_v17  ;;  %v6148_v25 = vmul.f32 1.442695, %v1748_v24  ;;  %v6150_v11 = vmul.f32 1.442695, %v1823_v36  ;;  %4674 = vpow2.f32 %v1605_v23  ;;  %v4655_v15 = vpop.eup %4654 }
 0x29d   :  { %v1506_v63 = vadd.f32 %v1502_v49, %v1427_v38  ;;  %v1507_v60 = vadd.f32 %v1503_v26, %v1428_v44  ;;  %v1578_v0 = vmul.f32 %v6140_v39, %v6061_v37  ;;  %v1811_v21 = vmax.f32 %v1736_v3, %v6091_v8  ;;  %v4657_v45 = vpop.eup %4656  ;;  %v6175_v3 = vld [vmem:[#allocation6 + $0x60] sm:$0xff]  ;;  %v8179_v38 = vld [vmem:[#allocation30_spill] sm:$0xff] }
 0x29e   :  { %vm1965_vm8 = vcmp.gt.f32.partialorder %v1945_v61, 0.0  ;;  %4676 = vpow2.f32 %v1903_v46  ;;  %vm8175_vm2 = vnez %v8111_v6  ;;  %v1577_v23 = vmul.f32 %v6143_v32, %v6136_v31  ;;  %8178 = vst [vmem:[#allocation28_spill] sm:$0xff] %v6175_v3 }
 0x29f   :  { %v6159_v2 = vsel %vm8175_vm2, 0.0, %v4651_v41  ;;  %v1582_v18 = vadd.f32 %v1578_v0, %v1507_v60  ;;  %v1653_v4 = vmul.f32 %v6154_v42, %v6070_v16  ;;  %vm8177_vm4 = vnez %v8176_v53  ;;  %v4659_v24 = vpop.eup %4658  ;;  %v8201_v16 = vld [vmem:[#allocation27_spill] sm:$0xff] }
 0x2a0   :  { %v1644_v56 = vadd.f32 %v6159_v2, %v1569_v52  ;;  %v1660_v5 = vmax.f32 %v1585_v1, %v6159_v2  ;;  %v6171_v58 = vsel %vm8177_vm4, 0.0, %v4653_v48  ;;  %4678 = vpow2.f32 %v1678_v10  ;;  %v4661_v46 = vpop.eup %4660 }
 0x2a1   :  { %v1747_v6 = vsub.f32 %v6002_v55, %v6029_v59  ;;  %v1969_v17 = vsel %vm1965_vm8, %v1945_v61, 1.0  ;;  %4680 = vpow2.f32 %v1905_v7  ;;  %v1581_v36 = vadd.f32 %v1577_v23, %v1506_v63  ;;  %v6188_v61 = vld [vmem:[#allocation6 + $0x80] sm:$0xff]  ;;  %v4663_v7 = vpop.eup %4662 }
 0x2a2   :  { %vm8180_vm0 = vnez %v8179_v38  ;;  %v1886_v44 = vmax.f32 %v1811_v21, %v6102_v29  ;;  %v1652_v41 = vmul.f32 %v6164_v20, %v6159_v2  ;;  %v6186_v1 = vsel %vm5793_vm13, 0.0, %v4657_v45  ;;  %8183 = vst [vmem:[#allocation32_spill] sm:$0xff] %v6188_v61  ;;  %v6197_v21 = vld [vmem:[#allocation6 + $0x88] sm:$0xff]  ;;  %v6213_v38 = vld [vmem:[#allocation6 + $0x38] sm:$0xff] }
 0x2a3   :  { %v6179_v49 = vsel %vm8180_vm0, 0.0, %v4655_v15  ;;  %v1657_v55 = vadd.f32 %v1653_v4, %v1582_v18  ;;  %v1719_v26 = vadd.f32 %v6186_v1, %v1644_v56  ;;  %v1735_v10 = vmax.f32 %v1660_v5, %v6186_v1  ;;  %v4665_v60 = vpop.eup %4664  ;;  %8184 = vst [vmem:[#allocation44_spill] sm:$0xff] %v6197_v21  ;;  %v6205_v18 = vld [vmem:[#allocation6 + $0x68] sm:$0xff] }
 0x2a4   :  { %8181 = vst [vmem:[#allocation30_spill] sm:$0xff] %v6179_v49  ;;  %v1437_v48 = vmax.f32 %v6171_v58, 0.0  ;;  %v1753_v63 = vmul.f32 1.442695, %v1747_v6  ;;  %4682 = vrcp.f32 %v1969_v17  ;;  %v1728_v0 = vmul.f32 %v6175_v3, %v6080_v35  ;;  %v4667_v23 = vpop.eup %4666  ;;  %8185 = vst [vmem:[#allocation45_spill] sm:$0xff] %v6205_v18  ;;  %v8186_v6 = vld [vmem:[#allocation35_spill] sm:$0xff] }
 0x2a5   :  { %v1496_v15 = vadd.f32 %v6179_v49, %v6171_v58  ;;  %v1822_v45 = vsub.f32 %v6009_v34, %v6029_v59  ;;  %v1656_v56 = vadd.f32 %v1652_v41, %v1581_v36  ;;  %v6203_v5 = vsel %vm5887_vm9, 0.0, %v4659_v24  ;;  %8188 = vst [vmem:[#allocation35_spill] sm:$0xff] %v6213_v38  ;;  %v8189_v59 = vld [vmem:[#allocation33_spill] sm:$0xff]  ;;  %v6219_v24 = vld [vmem:[#allocation6 + $0x20] sm:$0xff] }
 0x2a6   :  { %v1429_v4 = vmul.f32 %v6188_v61, %v6171_v58  ;;  %4684 = vpow2.f32 %v1753_v63  ;;  %v4669_v53 = vpop.eup %4668  ;;  %vm8187_vm13 = vnez %v8186_v6  ;;  %v1732_v34 = vadd.f32 %v1728_v0, %v1657_v55  ;;  %8192 = vst [vmem:[#allocation46_spill] sm:$0xff] %v6219_v24  ;;  %v6223_v63 = vld [vmem:[#allocation6 + $0x70] sm:$0xff] }
 0x2a7   :  { %v6211_v17 = vsel %vm8187_vm13, 0.0, %v4667_v23  ;;  %vm8190_vm7 = vnez %v8189_v59  ;;  %v1828_v22 = vmul.f32 1.442695, %v1822_v45  ;;  %8193 = vst [vmem:[#allocation47_spill] sm:$0xff] %v6223_v63  ;;  %v1504_v23 = vmul.f32 %v6197_v21, %v6179_v49  ;;  %v4671_v61 = vpop.eup %4670  ;;  %v8194_v55 = vld [vmem:[#allocation37_spill] sm:$0xff] }
 0x2a8   :  { %v6217_v36 = vsel %vm8190_vm7, 0.0, %v4663_v7  ;;  %v1794_v41 = vadd.f32 %v6211_v17, %v1719_v26  ;;  %v1810_v52 = vmax.f32 %v1735_v10, %v6211_v17  ;;  %v1512_v6 = vmax.f32 %v1437_v48, %v6179_v49  ;;  %v4673_v26 = vpop.eup %4672 }
 0x2a9   :  { %8191 = vst [vmem:[#allocation33_spill] sm:$0xff] %v6217_v36  ;;  %vm8195_vm9 = vnez %v8194_v55  ;;  %v1803_v7 = vmul.f32 %v6205_v18, %v6091_v8  ;;  %v1571_v45 = vadd.f32 %v6217_v36, %v1496_v15  ;;  %4686 = vpow2.f32 %v1828_v22  ;;  %v6246_v55 = vld [vmem:[#allocation6 + $0x90] sm:$0xff]  ;;  %v4675_v49 = vpop.eup %4674  ;;  %v6250_v22 = vld [vmem:[#allocation6 + $0x28] sm:$0xff] }
 0x2aa   :  { %v6230_v0 = vsel %vm8195_vm9, 0.0, %v4669_v53  ;;  %v6236_v10 = vmax.f32 %v1886_v44, %v6120_v51  ;;  %v6242_v48 = vmul.f32 %v6213_v38, %v6203_v5  ;;  %v6244_v53 = vld [vmem:[#allocation6 + $0x78] sm:$0xff]  ;;  %8197 = vst [vmem:[#allocation48_spill] sm:$0xff] %v6246_v55  ;;  %v1727_v15 = vmul.f32 %v6219_v24, %v6186_v1  ;;  %v8198_v18 = vld [vmem:[#allocation36_spill] sm:$0xff] }
 0x2ab   :  { %v1869_v59 = vadd.f32 %v6230_v0, %v1794_v41  ;;  %v1885_v21 = vmax.f32 %v1810_v52, %v6230_v0  ;;  %8196 = vst [vmem:[#allocation37_spill] sm:$0xff] %v6244_v53  ;;  %v1807_v44 = vadd.f32 %v1803_v7, %v1732_v34  ;;  %v1878_v41 = vmul.f32 %v6223_v63, %v6102_v29  ;;  %v6258_v38 = vld [vmem:[#allocation6 + $0x98] sm:$0xff]  ;;  %v4677_v8 = vpop.eup %4676 }
 0x2ac   :  { %vm8199_vm3 = vnez %v8198_v18  ;;  %8200 = vst [vmem:[#allocation36_spill] sm:$0xff] %v6258_v38  ;;  %v1508_v35 = vadd.f32 %v1504_v23, %v1429_v4  ;;  %v1587_v42 = vmax.f32 %v1512_v6, %v6217_v36  ;;  %vm8202_vm6 = vnez %v8201_v16 }
 0x2ad   :  { %v6256_v52 = vsel %vm8199_vm3, 0.0, %v4665_v60  ;;  %v1944_v3 = vadd.f32 %v6203_v5, %v1869_v59  ;;  %v6264_v24 = vsel %vm8202_vm6, 0.0, %v4661_v46  ;;  %v1731_v34 = vadd.f32 %v1727_v15, %v1656_v56  ;;  %v4679_v63 = vpop.eup %4678  ;;  %v6280_v56 = vld [vmem:[#allocation6 + $0x30] sm:$0xff] }
 0x2ae   :  { %v1953_v7 = vmul.f32 %v6244_v53, %v6120_v51  ;;  %v1579_v60 = vmul.f32 %v6246_v55, %v6217_v36  ;;  %v1646_v18 = vadd.f32 %v6256_v52, %v1571_v45  ;;  %v1802_v59 = vmul.f32 %v6250_v22, %v6211_v17  ;;  %v6278_v46 = vpop.eup %4680  ;;  %v8203_v45 = vld [vmem:[#allocation29_spill] sm:$0xff] }
 0x2af   :  { %v6274_v4 = vmax.f32 %v1885_v21, %v6203_v5  ;;  %vm1964_vm8 = vcmp.gt.f32.partialorder %v1944_v3, 0.0  ;;  %v1654_v16 = vmul.f32 %v6258_v38, %v6256_v52  ;;  %v1882_v6 = vadd.f32 %v1878_v41, %v1807_v44  ;;  %v6292_v38 = vld [vmem:[#allocation6 + $0xc0] sm:$0xff] }
 0x2b0   :  { %v1968_v23 = vsel %vm1964_vm8, %v1944_v3, 1.0  ;;  %v1438_v15 = vmax.f32 %v6264_v24, 0.0  ;;  %vm8204_vm2 = vnez %v8203_v45  ;;  %v1583_v36 = vadd.f32 %v1579_v60, %v1508_v35  ;;  %8206 = vst [vmem:[#allocation29_spill] sm:$0xff] %v6292_v38  ;;  %v8208_v41 = vld [vmem:[#allocation31_spill] sm:$0xff]  ;;  %v8214_v45 = vld [vmem:[#allocation34_spill] sm:$0xff] }
 0x2b1   :  { %v6285_v55 = vsel %vm8204_vm2, 0.0, %v4671_v61  ;;  %4688 = vrcp.f32 %v1968_v23  ;;  %v1662_v21 = vmax.f32 %v1587_v42, %v6256_v52  ;;  %v6290_v53 = vsel %vm5907_vm12, 0.0, %v4679_v63  ;;  %v4683_v61 = vpop.eup %4682  ;;  %v6304_v42 = vld [vmem:[#allocation6 + $0xc8] sm:$0xff] }
 0x2b2   :  { %8205 = vst [vmem:[#allocation27_spill] sm:$0xff] %v6285_v55  ;;  %v1806_v51 = vadd.f32 %v1802_v59, %v1731_v34  ;;  %v1721_v3 = vadd.f32 %v6290_v53, %v1646_v18  ;;  %v6297_v44 = vsel %vm5982_vm15, 0.0, %v4677_v8  ;;  %4690 = vpow2.f32 %v6075_v19  ;;  %8207 = vst [vmem:[#allocation49_spill] sm:$0xff] %v6304_v42  ;;  %v6336_v18 = vld [vmem:[#allocation6 + $0xd0] sm:$0xff] }
 0x2b3   :  { %v1877_v35 = vmul.f32 %v6280_v56, %v6230_v0  ;;  %v1497_v40 = vadd.f32 %v6285_v55, %v6264_v24  ;;  %4692 = vpow2.f32 %v6148_v25  ;;  %vm2414_vm12 = vcmp.eq.f32.partialorder %v6087_v9, %v6274_v4  ;;  %v4685_v63 = vpop.eup %4684  ;;  %8211 = vst [vmem:[#allocation50_spill] sm:$0xff] %v6336_v18 }
 0x2b4   :  { %v1957_v13 = vadd.f32 %v1953_v7, %v1882_v6  ;;  %v1430_v8 = vmul.f32 %v6292_v38, %v6264_v24  ;;  %v1513_v19 = vmax.f32 %v1438_v15, %v6285_v55  ;;  %4694 = vpow2.f32 %v6150_v11 }
 0x2b5   :  { %vm4936_vm15 = vmmov 1   ;;  %v6319_v25 = vsel %vm5950_vm10, 0.0, %v4685_v63  ;;  %vm8209_vm0 = vnez %v8208_v41  ;;  %v6329_v7 = vsel %vm2414_vm12, -1.0, %v6087_v9 }
 0x2b6   :  { %vm2450_vm4 = vmxor %vm2414_vm12, %vm4936_vm15  ;;  %v6323_v34 = vsel %vm8209_vm0, 0.0, %v4673_v26  ;;  %vm2446_vm13 = vcmp.eq.f32.partialorder %v6097_v50, %v6274_v4  ;;  %v1881_v11 = vadd.f32 %v1877_v35, %v1806_v51  ;;  %v1796_v60 = vadd.f32 %v6319_v25, %v1721_v3  ;;  %v4687_v23 = vpop.eup %4686  ;;  %v6349_v3 = vld [vmem:[#allocation6 + $0xd8] sm:$0xff] }
 0x2b7   :  { %8210 = vst [vmem:[#allocation31_spill] sm:$0xff] %v6323_v34  ;;  %v1505_v43 = vmul.f32 %v6304_v42, %v6285_v55  ;;  %v2438_v26 = vmax.f32 %v6329_v7, 0.0  ;;  %vm6339_vm10 = vmand %vm2446_vm13, %vm2450_vm4  ;;  %v1737_v6 = vmax.f32 %v1662_v21, %v6290_v53  ;;  %v1572_v15 = vadd.f32 %v6323_v34, %v1497_v40  ;;  %v6365_v40 = vld [vmem:[#allocation6 + $0xa0] sm:$0xff] }
 0x2b8   :  { %vm8215_vm7 = vnez %v8214_v45  ;;  %8217 = vst [vmem:[#allocation51_spill] sm:$0xff] %v6349_v3  ;;  %vm6356_vm9 = vmor %vm2414_vm12, %vm6339_vm10  ;;  %v6363_v21 = vsel %vm6339_vm10, -1.0, %v6097_v50  ;;  %v1588_v63 = vmax.f32 %v1513_v19, %v6323_v34  ;;  %vm2490_vm3 = vcmp.eq.f32.partialorder %v6136_v31, %v6274_v4 }
 0x2b9   :  { %v6347_v51 = vsel %vm8215_vm7, 0.0, %v4675_v49  ;;  %v6369_v49 = vsel %vm5959_vm5, 0.0, %v4687_v23  ;;  %v2482_v41 = vmax.f32 %v2438_v26, %v6363_v21  ;;  %vm2494_vm6 = vmxor %vm6356_vm9, %vm4936_vm15  ;;  %v1975_v45 = vmul.f32 %v4683_v61, %v1957_v13  ;;  %v6386_v26 = vld [vmem:[#allocation6 + $0xa8] sm:$0xff] }
 0x2ba   :  { %8216 = vst [vmem:[#allocation34_spill] sm:$0xff] %v6347_v51  ;;  %v1658_v50 = vadd.f32 %v1654_v16, %v1583_v36  ;;  %v1871_v42 = vadd.f32 %v6369_v49, %v1796_v60  ;;  %v1580_v57 = vmul.f32 %v6336_v18, %v6323_v34  ;;  %vm6381_vm5 = vmand %vm2490_vm3, %vm2494_vm6  ;;  %v1956_v19 = vadd.f32 %v6242_v48, %v1881_v11  ;;  %v8228_v34 = vld [vmem:[#allocation38_spill] sm:$0xff] }
 0x2bb   :  { %v1509_v38 = vadd.f32 %v1505_v43, %v1430_v8  ;;  %v6390_v55 = vmul.f32 %v6349_v3, %v6347_v51  ;;  %vm2502_vm8 = vmor %vm6356_vm9, %vm6381_vm5  ;;  %v6399_v36 = vsel %vm6381_vm5, -1.0, %v6136_v31  ;;  %v1729_v48 = vmul.f32 %v6365_v40, %v6290_v53  ;;  %v8246_v3 = vld [vmem:[#allocation43_spill] sm:$0xff] }
 0x2bc   :  { %v1812_v16 = vmax.f32 %v1737_v6, %v6319_v25  ;;  %v1946_v61 = vadd.f32 %v6297_v44, %v1871_v42  ;;  %vm2534_vm2 = vcmp.eq.f32.partialorder %v6159_v2, %v6274_v4  ;;  %vm2538_vm4 = vmxor %vm2502_vm8, %vm4936_vm15  ;;  %v1647_v31 = vadd.f32 %v6347_v51, %v1572_v15 }
 0x2bd   :  { %v1663_v13 = vmax.f32 %v1588_v63, %v6347_v51  ;;  %v2526_v8 = vmax.f32 %v2482_v41, %v6399_v36  ;;  %vm6416_vm0 = vmand %vm2534_vm2, %vm2538_vm4  ;;  %vm2415_vm13 = vcmp.eq.f32.partialorder %v6037_v30, %v6236_v10  ;;  %v1733_v42 = vadd.f32 %v1729_v48, %v1658_v50  ;;  %v6452_v48 = vld [vmem:[#allocation6 + $0xb0] sm:$0xff] }
 0x2be   :  { %v1804_v60 = vmul.f32 %v6386_v26, %v6319_v25  ;;  %vm1966_vm7 = vcmp.gt.f32.partialorder %v1946_v61, 0.0  ;;  %vm6431_vm3 = vmor %vm2502_vm8, %vm6416_vm0  ;;  %v6438_v6 = vsel %vm6416_vm0, -1.0, %v6159_v2  ;;  %v4689_v15 = vpop.eup %4688  ;;  %vm2578_vm6 = vcmp.eq.f32.partialorder %v6186_v1, %v6274_v4 }
 0x2bf   :  { %v1970_v63 = vsel %vm1966_vm7, %v1946_v61, 1.0  ;;  %v2570_v41 = vmax.f32 %v2526_v8, %v6438_v6  ;;  %vm2582_vm9 = vmxor %vm6431_vm3, %vm4936_vm15  ;;  %v6450_v35 = vsel %vm2415_vm13, %v6114_v12, 0.0  ;;  %v4691_v50 = vpop.eup %4690  ;;  %v1973_v2 = vmul.f32 %v4689_v15, %v1956_v19  ;;  %v2094_v15 = vld [vmem:[#allocation14 + $0x68] sm:$0xff] }
 0x2c0   :  { %v1887_v61 = vmax.f32 %v1812_v16, %v6369_v49  ;;  %4696 = vrcp.f32 %v1970_v63  ;;  %v2466_v8 = vsel %vm6339_vm10, %v6109_v28, 0.0  ;;  %vm6458_vm8 = vmand %vm2578_vm6, %vm2582_vm9  ;;  %v4693_v51 = vpop.eup %4692  ;;  %v1584_v18 = vadd.f32 %v1580_v57, %v1509_v38 }
 0x2c1   :  { %vm8229_vm2 = vnez %v8228_v34  ;;  %v2422_v19 = vsel %vm2414_vm12, %v6107_v47, 0.0  ;;  %vm2590_vm10 = vmor %vm6431_vm3, %vm6458_vm8  ;;  %v6477_v28 = vsel %vm6458_vm8, -1.0, %v6186_v1  ;;  %v4695_v38 = vpop.eup %4694  ;;  %4378 = vmatprep.mubr.f32.mxu1 %v1973_v2  ;;  %v2095_v34 = vld [vmem:[#allocation14 + $0x70] sm:$0xff]  ;;  %v1808_v59 = vadd.f32 %v1804_v60, %v1733_v42  ;;  %v6491_v47 = vld [vmem:[#allocation6 + $0xb8] sm:$0xff] }
 0x2c2   :  { %v6464_v12 = vsel %vm8229_vm2, 0.0, %v4691_v50  ;;  %vm2622_vm12 = vcmp.eq.f32.partialorder %v6211_v17, %v6274_v4  ;;  %vm2626_vm4 = vmxor %vm2590_vm10, %vm4936_vm15  ;;  %4379 = vmatmul.mubr.f32.vlgmr.msra.gmra.mxu1 %v1975_v45  ;;  %v1879_v9 = vmul.f32 %v6452_v48, %v6369_v49  ;;  %v6495_v1 = vsel %vm5918_vm11, 0.0, %v4693_v51  ;;  %v4700_v60 = vld [vmem:[#allocation14 + $0x78] sm:$0xff]  ;;  %v6543_v2 = vld [vmem:[#allocation6 + $0xe0] sm:$0xff] }
 0x2c3   :  { %v1722_v57 = vadd.f32 %v6464_v12, %v1647_v31  ;;  %v1738_v16 = vmax.f32 %v1663_v13, %v6464_v12  ;;  %v2470_v31 = vadd.f32 %v2466_v8, %v2422_v19  ;;  %v2614_v13 = vmax.f32 %v2570_v41, %v6477_v28  ;;  %vm6498_vm7 = vmand %vm2622_vm12, %vm2626_vm4  ;;  %4423 = vmatpush3.msra.mxu1 %v4700_v60  ;;  %v2093_v8 = vld [vmem:[#allocation14 + $0x60] sm:$0xff]  ;;  %v2090_v51 = vld [vmem:[#allocation14 + $0x48] sm:$0xff] }
 0x2c4   :  { %v6503_v45 = vmax.f32 %v1887_v61, %v6297_v44  ;;  %v2510_v62 = vsel %vm6381_vm5, %v6143_v32, 0.0  ;;  %vm6516_vm11 = vmor %vm2590_vm10, %vm6498_vm7  ;;  %vm2666_vm6 = vcmp.eq.f32.partialorder %v6230_v0, %v6274_v4  ;;  %4424 = vmatprep.subr.mxu1 %v2095_v34  ;;  %v6525_v32 = vsel %vm5926_vm14, 0.0, %v4695_v38  ;;  %v8257_v19 = vld [vmem:[#allocation30_spill] sm:$0xff] }
 0x2c5   :  { %v1797_v63 = vadd.f32 %v6495_v1, %v1722_v57  ;;  %v1813_v41 = vmax.f32 %v1738_v16, %v6495_v1  ;;  %v6530_v23 = vsel %vm6498_vm7, -1.0, %v6211_v17  ;;  %vm2670_vm5 = vmxor %vm6516_vm11, %vm4936_vm15  ;;  %v6539_v43 = vsel %vm2415_vm13, -1.0, %v6037_v30  ;;  %4425 = vmatpush3.msra.mxu1 %v2095_v34  ;;  %v2754_v16 = vld [vmem:[#allocation15 + $0xc0] sm:$0xff] }
 0x2c6   :  { %v1883_v50 = vadd.f32 %v1879_v9, %v1808_v59  ;;  %v1954_v54 = vmul.f32 %v6491_v47, %v6297_v44  ;;  %v6549_v61 = vsel %vm5967_vm1, 0.0, %v6278_v46  ;;  %vm6551_vm14 = vmand %vm2666_vm6, %vm2670_vm5  ;;  %4426 = vmatprep.subr.mxu1 %v2094_v15  ;;  %v1659_v38 = vadd.f32 %v6390_v55, %v1584_v18  ;;  %v2092_v59 = vld [vmem:[#allocation14 + $0x58] sm:$0xff] }
 0x2c7   :  { %v1872_v17 = vadd.f32 %v6525_v32, %v1797_v63  ;;  %v2658_v34 = vmax.f32 %v2614_v13, %v6530_v23  ;;  %vm2678_vm3 = vmor %vm6516_vm11, %vm6551_vm14  ;;  %v6564_v33 = vsel %vm6551_vm14, -1.0, %v6230_v0  ;;  %vm2710_vm1 = vcmp.eq.f32.partialorder %v6203_v5, %v6274_v4  ;;  %4427 = vmatpush3.msra.mxu1 %v2094_v15  ;;  %v6594_v15 = vld [vmem:[#allocation6 + $0xe8] sm:$0xff] }
 0x2c8   :  { %v2514_v55 = vadd.f32 %v2510_v62, %v2470_v31  ;;  %vm2714_vm9 = vmxor %vm2678_vm3, %vm4936_vm15  ;;  %v2439_v18 = vmax.f32 %v6539_v43, 0.0  ;;  %vm2447_vm2 = vcmp.eq.f32.partialorder %v6046_v27, %v6236_v10  ;;  %v1730_v57 = vmul.f32 %v6543_v2, %v6464_v12  ;;  %4428 = vmatprep.subr.mxu1 %v2093_v8  ;;  %v2091_v31 = vld [vmem:[#allocation14 + $0x50] sm:$0xff] }
 0x2c9   :  { %v1947_v46 = vadd.f32 %v6549_v61, %v1872_v17  ;;  %v1888_v0 = vmax.f32 %v1813_v41, %v6525_v32  ;;  %v2702_v4 = vmax.f32 %v2658_v34, %v6564_v33  ;;  %vm6577_vm10 = vmand %vm2710_vm1, %vm2714_vm9  ;;  %vm2416_vm12 = vcmp.eq.f32.partialorder %v6171_v58, %v6503_v45  ;;  %4429 = vmatpush3.msra.mxu1 %v2093_v8 }
 0x2ca   :  { %v1958_v9 = vadd.f32 %v1954_v54, %v1883_v50  ;;  %v6586_v13 = vsel %vm6577_vm10, -1.0, %v6203_v5  ;;  %vm2451_vm11 = vmxor %vm2415_vm13, %vm4936_vm15  ;;  %vm2491_vm6 = vcmp.eq.f32.partialorder %v6061_v37, %v6236_v10  ;;  %v1734_v60 = vadd.f32 %v1730_v57, %v1659_v38  ;;  %4430 = vmatprep.subr.mxu1 %v2092_v59  ;;  %v2089_v38 = vld [vmem:[#allocation14 + $0x40] sm:$0xff] }
 0x2cb   :  { %vm1967_vm4 = vcmp.gt.f32.partialorder %v1947_v46, 0.0  ;;  %v2554_v62 = vsel %vm6416_vm0, %v6164_v20, 0.0  ;;  %v6600_v5 = vmax.f32 %v2702_v4, %v6586_v13  ;;  %vm2455_vm5 = vmand %vm2447_vm2, %vm2451_vm11  ;;  %4431 = vmatpush3.msra.mxu1 %v2092_v59  ;;  %v6620_v50 = vsel %vm2416_vm12, -1.0, %v6171_v58  ;;  %v8242_v57 = vld [vmem:[#allocation39_spill] sm:$0xff] }
 0x2cc   :  { %v1971_v63 = vsel %vm1967_vm4, %v1947_v46, 1.0  ;;  %vm6608_vm3 = vmor %vm2415_vm13, %vm2455_vm5  ;;  %v2467_v11 = vsel %vm2455_vm5, %v6124_v14, 0.0  ;;  %v6614_v20 = vsel %vm2455_vm5, -1.0, %v6046_v27  ;;  %v6623_v17 = vmax.f32 %v1888_v0, %v6549_v61  ;;  %4432 = vmatprep.subr.mxu1 %v2091_v31 }
 0x2cd   :  { %4698 = vrcp.f32 %v1971_v63  ;;  %v4697_v54 = vpop.eup %4696  ;;  %v2471_v30 = vadd.f32 %v2467_v11, %v6450_v35  ;;  %v2483_v14 = vmax.f32 %v2439_v18, %v6614_v20  ;;  %vm2495_vm13 = vmxor %vm6608_vm3, %vm4936_vm15  ;;  %v1805_v8 = vmul.f32 %v6594_v15, %v6495_v1  ;;  %4433 = vmatpush3.msra.mxu1 %v2091_v31  ;;  %v6641_v35 = vld [vmem:[#allocation6 + $0xf0] sm:$0xff] }
 0x2ce   :  { %v1977_v27 = vmul.f32 %v4697_v54, %v1958_v9  ;;  %vm6637_vm1 = vmand %vm2491_vm6, %vm2495_vm13  ;;  %4434 = vmatprep.subr.mxu1 %v2090_v51  ;;  %v2558_v46 = vadd.f32 %v2554_v62, %v2514_v55  ;;  %vm2535_vm2 = vcmp.eq.f32.partialorder %v8242_v57, %v6236_v10  ;;  %v2088_v55 = vld [vmem:[#allocation14 + $0x38] sm:$0xff]  ;;  %vm8032_vm6 = vcmp.eq.f32.partialorder %v6264_v24, %v6623_v17  ;;  %v2087_v63 = vld [vmem:[#allocation14 + $0x30] sm:$0xff] }
 0x2cf   :  { %vm2503_vm9 = vmor %vm6608_vm3, %vm6637_vm1  ;;  %v2511_v59 = vsel %vm6637_vm1, %v6140_v39, 0.0  ;;  %v6653_v18 = vsel %vm6637_vm1, -1.0, %v6061_v37  ;;  %v1809_v0 = vadd.f32 %v1805_v8, %v1734_v60  ;;  %4435 = vmatpush3.msra.mxu1 %v2090_v51  ;;  %v6664_v39 = vld [vmem:[#allocation6 + $0xf8] sm:$0xff]  ;;  %v1880_v60 = vmul.f32 %v6641_v35, %v6525_v32  ;;  %v2083_v62 = vld [vmem:[#allocation14 + $0x10] sm:$0xff] }
 0x2d0   :  { %4381 = vmatprep.mubr.f32.mxu1 %v1977_v27  ;;  %v2515_v4 = vadd.f32 %v2511_v59, %v2471_v30  ;;  %v2527_v9 = vmax.f32 %v2483_v14, %v6653_v18  ;;  %vm2539_vm4 = vmxor %vm2503_vm9, %vm4936_vm15  ;;  %4436 = vmatprep.subr.mxu1 %v2089_v38  ;;  %v8243_v37 = vld [vmem:[#allocation46_spill] sm:$0xff]  ;;  %v6690_v54 = vsel %vm8032_vm6, -1.0, %v6264_v24  ;;  %v8247_v14 = vld [vmem:[#allocation40_spill] sm:$0xff]  ;;  %v1955_v8 = vmul.f32 %v6664_v39, %v6549_v61 }
 0x2d1   :  { %v2598_v31 = vsel %vm6458_vm8, %v8243_v37, 0.0  ;;  %vm2543_vm11 = vmand %vm2535_vm2, %vm2539_vm4  ;;  %4437 = vmatpush3.msra.mxu1 %v2089_v38  ;;  %vm2579_vm8 = vcmp.eq.f32.partialorder %v8247_v14, %v6236_v10  ;;  %v1884_v27 = vadd.f32 %v1880_v60, %v1809_v0  ;;  %v2086_v38 = vld [vmem:[#allocation14 + $0x28] sm:$0xff]  ;;  %vm8031_vm1 = vcmp.eq.f32.partialorder %v6329_v7, %v6600_v5 }
 0x2d2   :  { %vm6678_vm5 = vmor %vm2503_vm9, %vm2543_vm11  ;;  %v2555_v51 = vsel %vm2543_vm11, %v8246_v3, 0.0  ;;  %v6684_v11 = vsel %vm2543_vm11, -1.0, %v8242_v57  ;;  %4438 = vmatprep.subr.mxu1 %v2088_v55  ;;  %v2602_v34 = vadd.f32 %v2598_v31, %v2558_v46  ;;  %v8250_v57 = vld [vmem:[#allocation28_spill] sm:$0xff]  ;;  %v8251_v31 = vld [vmem:[#allocation41_spill] sm:$0xff]  ;;  %vm2975_vm0 = vcmp.eq.f32.partialorder %v6438_v6, %v6600_v5 }
 0x2d3   :  { %v2559_v41 = vadd.f32 %v2555_v51, %v2515_v4  ;;  %v2571_v30 = vmax.f32 %v2527_v9, %v6684_v11  ;;  %vm2583_vm3 = vmxor %vm6678_vm5, %vm4936_vm15  ;;  %4439 = vmatpush3.msra.mxu1 %v2088_v55  ;;  %v6722_v55 = vsel %vm8031_vm1, -1.0, %v6329_v7  ;;  %v2085_v4 = vld [vmem:[#allocation14 + $0x20] sm:$0xff]  ;;  %vm2623_vm4 = vcmp.eq.f32.partialorder %v8251_v31, %v6236_v10 }
 0x2d4   :  { %vm6700_vm13 = vmand %vm2579_vm8, %vm2583_vm3  ;;  %4440 = vmatprep.subr.mxu1 %v2087_v63  ;;  %vm2931_vm8 = vcmp.eq.f32.partialorder %v6399_v36, %v6600_v5  ;;  %vm3019_vm2 = vcmp.eq.f32.partialorder %v6477_v28, %v6600_v5  ;;  %vm3063_vm1 = vcmp.eq.f32.partialorder %v6530_v23, %v6600_v5  ;;  %vm3107_vm6 = vcmp.eq.f32.partialorder %v6564_v33, %v6600_v5 }
 0x2d5   :  { %vm2591_vm9 = vmor %vm6678_vm5, %vm6700_vm13  ;;  %v2599_v0 = vsel %vm6700_vm13, %v8250_v57, 0.0  ;;  %v6716_v46 = vsel %vm6700_vm13, -1.0, %v8247_v14  ;;  %4441 = vmatpush3.msra.mxu1 %v2087_v63  ;;  %v1959_v60 = vadd.f32 %v1955_v8, %v1884_v27  ;;  %v2084_v63 = vld [vmem:[#allocation14 + $0x18] sm:$0xff]  ;;  %v2642_v3 = vsel %vm6498_vm7, %v6250_v22, 0.0  ;;  %v8255_v57 = vld [vmem:[#allocation47_spill] sm:$0xff] }
 0x2d6   :  { %v2603_v9 = vadd.f32 %v2599_v0, %v2559_v41  ;;  %v2615_v37 = vmax.f32 %v2571_v30, %v6716_v46  ;;  %vm2627_vm11 = vmxor %vm2591_vm9, %vm4936_vm15  ;;  %4442 = vmatprep.subr.mxu1 %v2086_v38  ;;  %v8254_v41 = vld [vmem:[#allocation45_spill] sm:$0xff]  ;;  %vm2667_vm7 = vcmp.eq.f32.partialorder %v6102_v29, %v6236_v10  ;;  %v2686_v59 = vsel %vm6551_vm14, %v6280_v56, 0.0  ;;  %v2082_v56 = vld [vmem:[#allocation14 + $0x8] sm:$0xff] }
 0x2d7   :  { %vm2631_vm3 = vmand %vm2623_vm4, %vm2627_vm11  ;;  %4443 = vmatpush3.msra.mxu1 %v2086_v38  ;;  %v2646_v38 = vadd.f32 %v2642_v3, %v2602_v34  ;;  %vm2448_vm14 = vcmp.eq.f32.partialorder %v8257_v19, %v6503_v45  ;;  %v4701_v34 = vld [vmem:[#allocation3] sm:$0xff] }
 0x2d8   :  { %vm6753_vm4 = vmor %vm2591_vm9, %vm2631_vm3  ;;  %v2643_v30 = vsel %vm2631_vm3, %v8254_v41, 0.0  ;;  %v6759_v14 = vsel %vm2631_vm3, -1.0, %v8251_v31  ;;  %4444 = vmatprep.subr.mxu1 %v2085_v4  ;;  %v8256_v31 = vld [vmem:[#allocation42_spill] sm:$0xff] }
 0x2d9   :  { %v2647_v8 = vadd.f32 %v2643_v30, %v2603_v9  ;;  %v2659_v42 = vmax.f32 %v2615_v37, %v6759_v14  ;;  %vm2671_vm5 = vmxor %vm6753_vm4, %vm4936_vm15  ;;  %4445 = vmatpush3.msra.mxu1 %v2085_v4  ;;  %vm2711_vm11 = vcmp.eq.f32.partialorder %v8256_v31, %v6236_v10  ;;  %v2081_v10 = vld [vmem:[#allocation14] sm:$0xff] }
 0x2da   :  { %v4699_v27 = vpop.eup %4698  ;;  %vm2675_vm13 = vmand %vm2667_vm7, %vm2671_vm5  ;;  %4446 = vmatprep.subr.mxu1 %v2084_v63 }
 0x2db   :  { %v1979_v22 = vmul.f32 %v4699_v27, %v1959_v60  ;;  %vm2679_vm9 = vmor %vm6753_vm4, %vm2675_vm13  ;;  %v2687_v0 = vsel %vm2675_vm13, %v8255_v57, 0.0  ;;  %v6774_v9 = vsel %vm2675_vm13, -1.0, %v6102_v29  ;;  %4447 = vmatpush3.msra.mxu1 %v2084_v63  ;;  %v2440_v29 = vmax.f32 %v6620_v50, 0.0  ;;  %v8258_v60 = vld [vmem:[#allocation37_spill] sm:$0xff]  ;;  %v8259_v27 = vld [vmem:[#allocation32_spill] sm:$0xff] }
 0x2dc   :  { %v2691_v37 = vadd.f32 %v2687_v0, %v2647_v8  ;;  %v2703_v4 = vmax.f32 %v2659_v42, %v6774_v9  ;;  %vm2715_vm3 = vmxor %vm2679_vm9, %vm4936_vm15  ;;  %4448 = vmatprep.subr.mxu1 %v2083_v62  ;;  %v2690_v63 = vadd.f32 %v2686_v59, %v2646_v38  ;;  %v2424_v8 = vsel %vm2416_vm12, %v8259_v27, 0.0  ;;  %v8263_v59 = vld [vmem:[#allocation33_spill] sm:$0xff]  ;;  %v2761_v57 = vld [vmem:[#allocation15 + $0xf8] sm:$0xff] }
 0x2dd   :  { %4382 = vmatmul.mubr.f32.gmra.mxu1 %v1979_v22  ;;  %vm2719_vm4 = vmand %vm2711_vm11, %vm2715_vm3  ;;  %v8262_v22 = vld [vmem:[#allocation44_spill] sm:$0xff]  ;;  %vm2492_vm9 = vcmp.eq.f32.partialorder %v8263_v59, %v6503_v45  ;;  %v4704_v42 = vld [vmem:[#allocation3 + $0x18] sm:$0xff] }
 0x2de   :  { %4454 = vmatprep.mubr.f32.mxu1 %v4701_v34  ;;  %v2727_v3 = vsel %vm2719_vm4, %v8258_v60, 0.0  ;;  %v6785_v51 = vsel %vm2719_vm4, -1.0, %v8256_v31  ;;  %vm2452_vm7 = vmxor %vm2416_vm12, %vm4936_vm15  ;;  %4449 = vmatpush3.msra.mxu1 %v2083_v62  ;;  %v2760_v31 = vld [vmem:[#allocation15 + $0xf0] sm:$0xff]  ;;  %v8267_v60 = vld [vmem:[#allocation35_spill] sm:$0xff] }
 0x2df   :  { %v6791_v41 = vadd.f32 %v2727_v3, %v2691_v37  ;;  %v6794_v30 = vmax.f32 %v2703_v4, %v6785_v51  ;;  %vm2456_vm5 = vmand %vm2448_vm14, %vm2452_vm7  ;;  %4450 = vmatprep.subr.mxu1 %v2082_v56  ;;  %v2726_v3 = vsel %vm6577_vm10, %v8267_v60, 0.0  ;;  %v8277_v37 = vld [vmem:[#allocation29_spill] sm:$0xff] }
 0x2e0   :  { %vm6806_vm13 = vmor %vm2416_vm12, %vm2456_vm5  ;;  %v2468_v62 = vsel %vm2456_vm5, %v8262_v22, 0.0  ;;  %v6812_v38 = vsel %vm2456_vm5, -1.0, %v8257_v19  ;;  %4451 = vmatpush3.msra.mxu1 %v2082_v56  ;;  %v8266_v19 = vld [vmem:[#allocation48_spill] sm:$0xff] }
 0x2e1   :  { %v2472_v0 = vadd.f32 %v2468_v62, %v2424_v8  ;;  %v2484_v58 = vmax.f32 %v2440_v29, %v6812_v38  ;;  %vm2496_vm12 = vmxor %vm6806_vm13, %vm4936_vm15  ;;  %vm2856_vm3 = vcmp.eq.f32.partialorder %v6539_v43, %v6794_v30  ;;  %4452 = vmatprep.subr.mxu1 %v2081_v10  ;;  %v4702_v29 = vld [vmem:[#allocation3 + $0x8] sm:$0xff]  ;;  %v4703_v8 = vld [vmem:[#allocation3 + $0x10] sm:$0xff] }
 0x2e2   :  { %vm6824_vm14 = vmand %vm2492_vm9, %vm2496_vm12  ;;  %v6832_v4 = vsel %vm2856_vm3, -1.0, %v6539_v43  ;;  %4453 = vmatpush3.msra.mxu1 %v2081_v10  ;;  %vm2536_vm12 = vcmp.eq.f32.partialorder %v6256_v52, %v6503_v45  ;;  %v2759_v22 = vld [vmem:[#allocation15 + $0xe8] sm:$0xff]  ;;  %v7407_v43 = vld [vmem:[#allocation6 + $0x60] sm:$0xff] }
 0x2e3   :  { %vm2504_vm9 = vmor %vm6806_vm13, %vm6824_vm14  ;;  %v2512_v56 = vsel %vm6824_vm14, %v8266_v19, 0.0  ;;  %v6850_v34 = vsel %vm6824_vm14, -1.0, %v8263_v59  ;;  %4455 = vmatmul.mubr.f32.vlgmr.msra.gmra.mxu1 %v4702_v29  ;;  %4498 = vmatprep.subr.mxu1 %v2761_v57  ;;  %v8270_v62 = vld [vmem:[#allocation36_spill] sm:$0xff] }
 0x2e4   :  { %v2516_v10 = vadd.f32 %v2512_v56, %v2472_v0  ;;  %v2528_v27 = vmax.f32 %v2484_v58, %v6850_v34  ;;  %vm2540_vm5 = vmxor %vm2504_vm9, %vm4936_vm15  ;;  %4499 = vmatpush3.msra.mxu1 %v2761_v57  ;;  %4457 = vmatprep.mubr.f32.mxu1 %v4703_v8  ;;  %v2730_v0 = vadd.f32 %v2726_v3, %v2690_v63  ;;  %v2758_v58 = vld [vmem:[#allocation15 + $0xe0] sm:$0xff]  ;;  %v2756_v3 = vld [vmem:[#allocation15 + $0xd0] sm:$0xff] }
 0x2e5   :  { %vm2544_vm7 = vmand %vm2536_vm12, %vm2540_vm5  ;;  %4500 = vmatprep.subr.mxu1 %v2760_v31  ;;  %vm2580_vm5 = vcmp.eq.f32.partialorder %v6290_v53, %v6503_v45 }
 0x2e6   :  { %vm6875_vm4 = vmor %vm2504_vm9, %vm2544_vm7  ;;  %v2556_v59 = vsel %vm2544_vm7, %v8270_v62, 0.0  ;;  %v6881_v57 = vsel %vm2544_vm7, -1.0, %v6256_v52  ;;  %4501 = vmatpush3.msra.mxu1 %v2760_v31  ;;  %v2757_v52 = vld [vmem:[#allocation15 + $0xd8] sm:$0xff]  ;;  %vm2624_vm9 = vcmp.eq.f32.partialorder %v6319_v25, %v6503_v45 }
 0x2e7   :  { %v2560_v19 = vadd.f32 %v2556_v59, %v2516_v10  ;;  %v2572_v56 = vmax.f32 %v2528_v27, %v6881_v57  ;;  %vm2584_vm13 = vmxor %vm6875_vm4, %vm4936_vm15  ;;  %4458 = vmatmul.mubr.f32.gmra.mxu1 %v4704_v42  ;;  %4502 = vmatprep.subr.mxu1 %v2759_v22  ;;  %v2755_v27 = vld [vmem:[#allocation15 + $0xc8] sm:$0xff] }
 0x2e8   :  { %vm6889_vm14 = vmand %vm2580_vm5, %vm2584_vm13  ;;  %4503 = vmatpush3.msra.mxu1 %v2759_v22  ;;  %4530 = vmatprep.mubr.f32.mxu1 %v2730_v0  ;;  %vm2668_vm13 = vcmp.eq.f32.partialorder %v6369_v49, %v6503_v45  ;;  %v8275_v0 = vld [vmem:[#allocation27_spill] sm:$0xff] }
 0x2e9   :  { %vm2592_vm7 = vmor %vm6875_vm4, %vm6889_vm14  ;;  %v2600_v63 = vsel %vm6889_vm14, %v6365_v40, 0.0  ;;  %v6903_v31 = vsel %vm6889_vm14, -1.0, %v6290_v53  ;;  %4504 = vmatprep.subr.mxu1 %v2758_v58 }
 0x2ea   :  { %v2604_v29 = vadd.f32 %v2600_v63, %v2560_v19  ;;  %v2616_v60 = vmax.f32 %v2572_v56, %v6903_v31  ;;  %vm2628_vm12 = vmxor %vm2592_vm7, %vm4936_vm15  ;;  %4505 = vmatpush3.msra.mxu1 %v2758_v58  ;;  %v2753_v58 = vld [vmem:[#allocation15 + $0xb8] sm:$0xff] }
 0x2eb   :  { %vm2632_vm4 = vmand %vm2624_vm9, %vm2628_vm12  ;;  %4506 = vmatprep.subr.mxu1 %v2757_v52  ;;  %vm2712_vm12 = vcmp.eq.f32.partialorder %v6297_v44, %v6503_v45  ;;  %v2752_v45 = vld [vmem:[#allocation15 + $0xb0] sm:$0xff] }
 0x2ec   :  { %vm6909_vm5 = vmor %vm2592_vm7, %vm2632_vm4  ;;  %v2644_v53 = vsel %vm2632_vm4, %v6386_v26, 0.0  ;;  %v6915_v10 = vsel %vm2632_vm4, -1.0, %v6319_v25  ;;  %4507 = vmatpush3.msra.mxu1 %v2757_v52  ;;  %v8282_v52 = vld [vmem:[#allocation49_spill] sm:$0xff] }
 0x2ed   :  { %v2648_v8 = vadd.f32 %v2644_v53, %v2604_v29  ;;  %v2660_v22 = vmax.f32 %v2616_v60, %v6915_v10  ;;  %vm2672_vm14 = vmxor %vm6909_vm5, %vm4936_vm15  ;;  %4508 = vmatprep.subr.mxu1 %v2756_v3  ;;  %v8283_v60 = vld [vmem:[#allocation31_spill] sm:$0xff] }
 0x2ee   :  { %vm2676_vm7 = vmand %vm2668_vm13, %vm2672_vm14  ;;  %4509 = vmatpush3.msra.mxu1 %v2756_v3  ;;  %vm2449_vm13 = vcmp.eq.f32.partialorder %v8275_v0, %v6623_v17  ;;  %vm8276_vm14 = vcmp.eq.f32.partialorder %v6264_v24, %v6623_v17  ;;  %v2751_v3 = vld [vmem:[#allocation15 + $0xa8] sm:$0xff] }
 0x2ef   :  { %vm2680_vm9 = vmor %vm6909_vm5, %vm2676_vm7  ;;  %v2688_v25 = vsel %vm2676_vm7, %v6452_v48, 0.0  ;;  %v6927_v26 = vsel %vm2676_vm7, -1.0, %v6369_v49  ;;  %4510 = vmatprep.subr.mxu1 %v2755_v27  ;;  %v2441_v48 = vmax.f32 %v6690_v54, 0.0 }
 0x2f0   :  { %v2692_v62 = vadd.f32 %v2688_v25, %v2648_v8  ;;  %v2704_v59 = vmax.f32 %v2660_v22, %v6927_v26  ;;  %vm2716_vm4 = vmxor %vm2680_vm9, %vm4936_vm15  ;;  %4511 = vmatpush3.msra.mxu1 %v2755_v27  ;;  %v2750_v27 = vld [vmem:[#allocation15 + $0xa0] sm:$0xff]  ;;  %v8286_v8 = vld [vmem:[#allocation50_spill] sm:$0xff] }
 0x2f1   :  { %vm2720_vm5 = vmand %vm2712_vm12, %vm2716_vm4  ;;  %4512 = vmatprep.subr.mxu1 %v2754_v16  ;;  %v8287_v25 = vld [vmem:[#allocation34_spill] sm:$0xff] }
 0x2f2   :  { %v2728_v49 = vsel %vm2720_vm5, %v6491_v47, 0.0  ;;  %v6938_v19 = vsel %vm2720_vm5, -1.0, %v6297_v44  ;;  %vm2453_vm7 = vmxor %vm8276_vm14, %vm4936_vm15  ;;  %4513 = vmatpush3.msra.mxu1 %v2754_v16  ;;  %v7030_v47 = vld [vmem:[#allocation6] sm:$0xff] }
 0x2f3   :  { %v6944_v56 = vadd.f32 %v2728_v49, %v2692_v62  ;;  %v6947_v42 = vmax.f32 %v2704_v59, %v6938_v19  ;;  %vm2457_vm9 = vmand %vm2449_vm13, %vm2453_vm7  ;;  %4514 = vmatprep.subr.mxu1 %v2753_v58  ;;  %vm2493_vm13 = vcmp.eq.f32.partialorder %v8283_v60, %v6623_v17 }
 0x2f4   :  { %vm8278_vm12 = vmmov %vm8276_vm14  ;;  %v2469_v63 = vsel %vm2457_vm9, %v8282_v52, 0.0  ;;  %v6962_v29 = vsel %vm2457_vm9, -1.0, %v8275_v0  ;;  %4515 = vmatpush3.msra.mxu1 %v2753_v58  ;;  %v2749_v0 = vld [vmem:[#allocation15 + $0x98] sm:$0xff] }
 0x2f5   :  { %v2425_v44 = vsel %vm8278_vm12, %v8277_v37, 0.0  ;;  %vm8279_vm4 = vmmov %vm8278_vm12  ;;  %v2485_v24 = vmax.f32 %v2441_v48, %v6962_v29  ;;  %4516 = vmatprep.subr.mxu1 %v2752_v45  ;;  %vm3065_vm14 = vcmp.eq.f32.partialorder %v6915_v10, %v6947_v42  ;;  %v8290_v48 = vld [vmem:[#allocation51_spill] sm:$0xff]  ;;  %v2748_v37 = vld [vmem:[#allocation15 + $0x90] sm:$0xff] }
 0x2f6   :  { %vm6956_vm5 = vmor %vm8279_vm4, %vm2457_vm9  ;;  %v2473_v40 = vadd.f32 %v2469_v63, %v2425_v44  ;;  %4517 = vmatpush3.msra.mxu1 %v2752_v45 }
 0x2f7   :  { %vm2497_vm7 = vmxor %vm6956_vm5, %vm4936_vm15  ;;  %4518 = vmatprep.subr.mxu1 %v2751_v3 }
 0x2f8   :  { %vm6974_vm9 = vmand %vm2493_vm13, %vm2497_vm7  ;;  %vm2537_vm13 = vcmp.eq.f32.partialorder %v8287_v25, %v6623_v17  ;;  %4519 = vmatpush3.msra.mxu1 %v2751_v3 }
 0x2f9   :  { %vm2505_vm12 = vmor %vm6956_vm5, %vm6974_vm9  ;;  %v2513_v22 = vsel %vm6974_vm9, %v8286_v8, 0.0  ;;  %v6994_v16 = vsel %vm6974_vm9, -1.0, %v8283_v60  ;;  %4520 = vmatprep.subr.mxu1 %v2750_v27  ;;  %v2747_v60 = vld [vmem:[#allocation15 + $0x88] sm:$0xff] }
 0x2fa   :  { %v2517_v62 = vadd.f32 %v2513_v22, %v2473_v40  ;;  %v2529_v59 = vmax.f32 %v2485_v24, %v6994_v16  ;;  %vm2541_vm10 = vmxor %vm2505_vm12, %vm4936_vm15  ;;  %4521 = vmatpush3.msra.mxu1 %v2750_v27 }
 0x2fb   :  { %vm2545_vm7 = vmand %vm2537_vm13, %vm2541_vm10  ;;  %vm2581_vm10 = vcmp.eq.f32.partialorder %v6464_v12, %v6623_v17  ;;  %4522 = vmatprep.subr.mxu1 %v2749_v0  ;;  %vm2625_vm13 = vcmp.eq.f32.partialorder %v6495_v1, %v6623_v17 }
 0x2fc   :  { %vm7016_vm11 = vmor %vm2505_vm12, %vm2545_vm7  ;;  %v2557_v49 = vsel %vm2545_vm7, %v8290_v48, 0.0  ;;  %v7022_v45 = vsel %vm2545_vm7, -1.0, %v8287_v25  ;;  %4523 = vmatpush3.msra.mxu1 %v2749_v0  ;;  %v3547_v25 = vld [vmem:[#allocation15 + $0x1f8] sm:$0xff]  ;;  %v3546_v0 = vld [vmem:[#allocation15 + $0x1f0] sm:$0xff] }
 0x2fd   :  { %v2561_v44 = vadd.f32 %v2557_v49, %v2517_v62  ;;  %v2573_v52 = vmax.f32 %v2529_v59, %v7022_v45  ;;  %vm2585_vm5 = vmxor %vm7016_vm11, %vm4936_vm15  ;;  %4524 = vmatprep.subr.mxu1 %v2748_v37  ;;  %v3545_v49 = vld [vmem:[#allocation15 + $0x1e8] sm:$0xff] }
 0x2fe   :  { %vm7032_vm12 = vmand %vm2581_vm10, %vm2585_vm5  ;;  %4525 = vmatpush3.msra.mxu1 %v2748_v37 }
 0x2ff   :  { %vm2593_vm9 = vmor %vm7016_vm11, %vm7032_vm12  ;;  %v2601_v3 = vsel %vm7032_vm12, %v6543_v2, 0.0  ;;  %v7046_v40 = vsel %vm7032_vm12, -1.0, %v6464_v12  ;;  %vm8293_vm11 = vcmp.eq.f32.partialorder %v6329_v7, %v6600_v5  ;;  %v2746_v2 = vld [vmem:[#allocation15 + $0x80] sm:$0xff]  ;;  %4526 = vmatprep.subr.mxu1 %v2747_v60  ;;  %vm2669_vm12 = vcmp.eq.f32.partialorder %v6525_v32, %v6623_v17 }
 0x300   :  { %v2605_v24 = vadd.f32 %v2601_v3, %v2561_v44  ;;  %v2617_v53 = vmax.f32 %v2573_v52, %v7046_v40  ;;  %vm2629_vm7 = vmxor %vm2593_vm9, %vm4936_vm15  ;;  %v7056_v27 = vsel %vm8293_vm11, %v7030_v47, 0.0  ;;  %4527 = vmatpush3.msra.mxu1 %v2747_v60  ;;  %vm2713_vm11 = vcmp.eq.f32.partialorder %v6549_v61, %v6623_v17  ;;  %v3544_v52 = vld [vmem:[#allocation15 + $0x1e0] sm:$0xff]  ;;  %v7128_v60 = vld [vmem:[#allocation6 + $0x10] sm:$0xff] }
 0x301   :  { %vm2633_vm10 = vmand %vm2625_vm13, %vm2629_vm7  ;;  %4528 = vmatprep.subr.mxu1 %v2746_v2  ;;  %v3543_v3 = vld [vmem:[#allocation15 + $0x1d8] sm:$0xff] }
 0x302   :  { %vm7058_vm5 = vmor %vm2593_vm9, %vm2633_vm10  ;;  %v2645_v8 = vsel %vm2633_vm10, %v6594_v15, 0.0  ;;  %v7064_v22 = vsel %vm2633_vm10, -1.0, %v6495_v1  ;;  %4529 = vmatpush3.msra.mxu1 %v2746_v2  ;;  %v7162_v2 = vld [vmem:[#allocation6 + $0x18] sm:$0xff] }
 0x303   :  { %v2649_v62 = vadd.f32 %v2645_v8, %v2605_v24  ;;  %v2661_v59 = vmax.f32 %v2617_v53, %v7064_v22  ;;  %vm2673_vm9 = vmxor %vm7058_vm5, %vm4936_vm15  ;;  %4531 = vmatmul.mubr.f32.vlgmr.msra.gmra.mxu1 %v6791_v41  ;;  %4574 = vmatprep.subr.mxu1 %v3547_v25  ;;  %v3542_v8 = vld [vmem:[#allocation15 + $0x1d0] sm:$0xff] }
 0x304   :  { %vm2677_vm13 = vmand %vm2669_vm12, %vm2673_vm9  ;;  %4533 = vmatprep.mubr.f32.mxu1 %v6944_v56  ;;  %4575 = vmatpush3.msra.mxu1 %v3547_v25  ;;  %vm8296_vm12 = vcmp.eq.f32.partialorder %v6329_v7, %v6600_v5 }
 0x305   :  { %vm2681_vm7 = vmor %vm7058_vm5, %vm2677_vm13  ;;  %v2689_v1 = vsel %vm2677_vm13, %v6641_v35, 0.0  ;;  %v7076_v15 = vsel %vm2677_vm13, -1.0, %v6525_v32  ;;  %v2879_v35 = vmax.f32 %v6722_v55, 0.0  ;;  %v7085_v32 = vld [vmem:[#allocation6 + $0x8] sm:$0xff]  ;;  %4576 = vmatprep.subr.mxu1 %v3546_v0  ;;  %vm8297_vm13 = vcmp.eq.f32.partialorder %v6363_v21, %v6600_v5 }
 0x306   :  { %v2693_v58 = vadd.f32 %v2689_v1, %v2649_v62  ;;  %v2705_v48 = vmax.f32 %v2661_v59, %v7076_v15  ;;  %vm2717_vm10 = vmxor %vm2681_vm7, %vm4936_vm15  ;;  %4577 = vmatpush3.msra.mxu1 %v3546_v0  ;;  %v7184_v0 = vld [vmem:[#allocation6 + $0x20] sm:$0xff]  ;;  %v7239_v62 = vld [vmem:[#allocation6 + $0x38] sm:$0xff] }
 0x307   :  { %vm2721_vm5 = vmand %vm2713_vm11, %vm2717_vm10  ;;  %4578 = vmatprep.subr.mxu1 %v3545_v49 }
 0x308   :  { %v2729_v41 = vsel %vm2721_vm5, %v6664_v39, 0.0  ;;  %v7089_v37 = vsel %vm2721_vm5, -1.0, %v6549_v61  ;;  %vm2891_vm9 = vmxor %vm8296_vm12, %vm4936_vm15  ;;  %4579 = vmatpush3.msra.mxu1 %v3545_v49  ;;  %v3540_v49 = vld [vmem:[#allocation15 + $0x1c0] sm:$0xff] }
 0x309   :  { %v2733_v17 = vadd.f32 %v2729_v41, %v2693_v58  ;;  %v7096_v56 = vmax.f32 %v2705_v48, %v7089_v37  ;;  %vm7101_vm7 = vmand %vm8297_vm13, %vm2891_vm9  ;;  %4580 = vmatprep.subr.mxu1 %v3544_v52 }
 0x30a   :  { %vm8300_vm11 = vmmov %vm8296_vm12  ;;  %v7117_v39 = vsel %vm7101_vm7, -1.0, %v6363_v21  ;;  %v2907_v63 = vsel %vm7101_vm7, %v7085_v32, 0.0  ;;  %4581 = vmatpush3.msra.mxu1 %v3544_v52  ;;  %v3539_v52 = vld [vmem:[#allocation15 + $0x1b8] sm:$0xff]  ;;  %v7224_v21 = vld [vmem:[#allocation6 + $0x30] sm:$0xff] }
 0x30b   :  { %vm7110_vm10 = vmor %vm8300_vm11, %vm7101_vm7  ;;  %4534 = vmatmul.mubr.f32.gmra.mxu1 %v2733_v17  ;;  %v2923_v7 = vmax.f32 %v2879_v35, %v7117_v39  ;;  %vm8033_vm9 = vcmp.eq.f32.partialorder %v6690_v54, %v7096_v56  ;;  %v2911_v25 = vadd.f32 %v2907_v63, %v7056_v27  ;;  %4582 = vmatprep.subr.mxu1 %v3543_v3  ;;  %v3541_v27 = vld [vmem:[#allocation15 + $0x1c8] sm:$0xff] }
 0x30c   :  { %vm2935_vm12 = vmxor %vm7110_vm10, %vm4936_vm15  ;;  %v7145_v24 = vsel %vm8033_vm9, -1.0, %v6690_v54  ;;  %4583 = vmatpush3.msra.mxu1 %v3543_v3  ;;  %v7207_v17 = vld [vmem:[#allocation6 + $0x28] sm:$0xff]  ;;  %v3538_v3 = vld [vmem:[#allocation15 + $0x1b0] sm:$0xff] }
 0x30d   :  { %vm7137_vm7 = vmand %vm2931_vm8, %vm2935_vm12  ;;  %4584 = vmatprep.subr.mxu1 %v3542_v8 }
 0x30e   :  { %vm2943_vm8 = vmor %vm7110_vm10, %vm7137_vm7  ;;  %v7160_v53 = vsel %vm7137_vm7, -1.0, %v6399_v36  ;;  %v2951_v36 = vsel %vm7137_vm7, %v7128_v60, 0.0  ;;  %4585 = vmatpush3.msra.mxu1 %v3542_v8 }
 0x30f   :  { %v2967_v12 = vmax.f32 %v2923_v7, %v7160_v53  ;;  %vm2979_vm13 = vmxor %vm2943_vm8, %vm4936_vm15  ;;  %v2955_v1 = vadd.f32 %v2951_v36, %v2911_v25  ;;  %4586 = vmatprep.subr.mxu1 %v3541_v27 }
 0x310   :  { %vm2983_vm10 = vmand %vm2975_vm0, %vm2979_vm13  ;;  %4587 = vmatpush3.msra.mxu1 %v3541_v27 }
 0x311   :  { %vm7177_vm12 = vmor %vm2943_vm8, %vm2983_vm10  ;;  %v7182_v59 = vsel %vm2983_vm10, -1.0, %v6438_v6  ;;  %v2995_v58 = vsel %vm2983_vm10, %v7162_v2, 0.0  ;;  %4588 = vmatprep.subr.mxu1 %v3540_v49  ;;  %v7247_v6 = vld [vmem:[#allocation6 + $0x48] sm:$0xff] }
 0x312   :  { %v3011_v48 = vmax.f32 %v2967_v12, %v7182_v59  ;;  %vm3023_vm0 = vmxor %vm7177_vm12, %vm4936_vm15  ;;  %v2999_v35 = vadd.f32 %v2995_v58, %v2955_v1  ;;  %4589 = vmatpush3.msra.mxu1 %v3540_v49  ;;  %v3536_v58 = vld [vmem:[#allocation15 + $0x1a0] sm:$0xff]  ;;  %v3535_v49 = vld [vmem:[#allocation15 + $0x198] sm:$0xff] }
 0x313   :  { %vm7194_vm13 = vmand %vm3019_vm2, %vm3023_vm0  ;;  %4590 = vmatprep.subr.mxu1 %v3539_v52 }
 0x314   :  { %vm3031_vm7 = vmor %vm7177_vm12, %vm7194_vm13  ;;  %v7205_v41 = vsel %vm7194_vm13, -1.0, %v6477_v28  ;;  %v3039_v44 = vsel %vm7194_vm13, %v7184_v0, 0.0  ;;  %4591 = vmatpush3.msra.mxu1 %v3539_v52 }
 0x315   :  { %v3055_v61 = vmax.f32 %v3011_v48, %v7205_v41  ;;  %vm3067_vm2 = vmxor %vm3031_vm7, %vm4936_vm15  ;;  %v3043_v63 = vadd.f32 %v3039_v44, %v2999_v35  ;;  %4592 = vmatprep.subr.mxu1 %v3538_v3 }
 0x316   :  { %vm3071_vm8 = vmand %vm3063_vm1, %vm3067_vm2  ;;  %4593 = vmatpush3.msra.mxu1 %v3538_v3 }
 0x317   :  { %vm7217_vm12 = vmor %vm3031_vm7, %vm3071_vm8  ;;  %v7222_v7 = vsel %vm3071_vm8, -1.0, %v6530_v23  ;;  %v3083_v12 = vsel %vm3071_vm8, %v7207_v17, 0.0  ;;  %v3537_v23 = vld [vmem:[#allocation15 + $0x1a8] sm:$0xff]  ;;  %vm8312_vm8 = vcmp.eq.f32.partialorder %v6614_v20, %v6794_v30 }
 0x318   :  { %v3099_v8 = vmax.f32 %v3055_v61, %v7222_v7  ;;  %vm3111_vm1 = vmxor %vm7217_vm12, %vm4936_vm15  ;;  %v3087_v25 = vadd.f32 %v3083_v12, %v3043_v63  ;;  %4594 = vmatprep.subr.mxu1 %v3537_v23  ;;  %v7268_v61 = vld [vmem:[#allocation6 + $0x40] sm:$0xff]  ;;  %v3534_v63 = vld [vmem:[#allocation15 + $0x190] sm:$0xff] }
 0x319   :  { %vm3115_vm10 = vmand %vm3107_vm6, %vm3111_vm1  ;;  %vm8311_vm6 = vcmp.eq.f32.partialorder %v6586_v13, %v6600_v5  ;;  %4595 = vmatpush3.msra.mxu1 %v3537_v23  ;;  %v2880_v5 = vmax.f32 %v6832_v4, 0.0 }
 0x31a   :  { %vm3119_vm0 = vmor %vm7217_vm12, %vm3115_vm10  ;;  %v7237_v36 = vsel %vm3115_vm10, -1.0, %v6564_v33  ;;  %v3127_v27 = vsel %vm3115_vm10, %v7224_v21, 0.0  ;;  %4596 = vmatprep.subr.mxu1 %v3536_v58 }
 0x31b   :  { %v3143_v1 = vmax.f32 %v3099_v8, %v7237_v36  ;;  %vm3155_vm13 = vmxor %vm3119_vm0, %vm4936_vm15  ;;  %v3131_v48 = vadd.f32 %v3127_v27, %v3087_v25  ;;  %4597 = vmatpush3.msra.mxu1 %v3536_v58 }
 0x31c   :  { %vm3159_vm7 = vmand %vm8311_vm6, %vm3155_vm13  ;;  %4598 = vmatprep.subr.mxu1 %v3535_v49 }
 0x31d   :  { %v7250_v33 = vsel %vm3159_vm7, -1.0, %v6586_v13  ;;  %vm2892_vm2 = vmxor %vm2856_vm3, %vm4936_vm15  ;;  %v3167_v35 = vsel %vm3159_vm7, %v7239_v62, 0.0  ;;  %4599 = vmatpush3.msra.mxu1 %v3535_v49  ;;  %v7365_v13 = vld [vmem:[#allocation6 + $0x50] sm:$0xff] }
 0x31e   :  { %v7258_v44 = vmax.f32 %v3143_v1, %v7250_v33  ;;  %vm7264_vm12 = vmand %vm8312_vm8, %vm2892_vm2  ;;  %v7270_v52 = vadd.f32 %v3167_v35, %v3131_v48  ;;  %4600 = vmatprep.subr.mxu1 %v3534_v63  ;;  %v3532_v1 = vld [vmem:[#allocation15 + $0x180] sm:$0xff]  ;;  %v2112_v35 = vld [vmem:[#allocation14 + $0xf8] sm:$0xff] }
 0x31f   :  { %vm7277_vm1 = vmor %vm2856_vm3, %vm7264_vm12  ;;  %v7284_v3 = vsel %vm7264_vm12, -1.0, %v6614_v20  ;;  %v2908_v12 = vsel %vm7264_vm12, %v7247_v6, 0.0  ;;  %v3533_v20 = vld [vmem:[#allocation15 + $0x188] sm:$0xff]  ;;  %4601 = vmatpush3.msra.mxu1 %v3534_v63  ;;  %4384 = vmatprep.subr.mxu0 %v2112_v35 }
 0x320   :  { %vm3296_vm10 = vcmp.eq.f32.partialorder %v6722_v55, %v7258_v44  ;;  %vm3316_vm0 = vcmp.eq.f32.partialorder %v7117_v39, %v7258_v44  ;;  %vm3348_vm13 = vcmp.eq.f32.partialorder %v7160_v53, %v7258_v44  ;;  %vm3380_vm6 = vcmp.eq.f32.partialorder %v7182_v59, %v7258_v44  ;;  %4602 = vmatprep.subr.mxu1 %v3533_v20 }
 0x321   :  { %vm3320_vm7 = vmxor %vm3296_vm10, %vm4936_vm15  ;;  %vm3412_vm2 = vcmp.eq.f32.partialorder %v7205_v41, %v7258_v44  ;;  %vm3444_vm8 = vcmp.eq.f32.partialorder %v7222_v7, %v7258_v44  ;;  %vm3476_vm12 = vcmp.eq.f32.partialorder %v7237_v36, %v7258_v44  ;;  %v2864_v39 = vsel %vm2856_vm3, %v7268_v61, 0.0  ;;  %4603 = vmatpush3.msra.mxu1 %v3533_v20  ;;  %4385 = vmatpush3.msra.mxu0 %v2112_v35  ;;  %v2110_v41 = vld [vmem:[#allocation14 + $0xe8] sm:$0xff] }
 0x322   :  { %vm3324_vm5 = vmand %vm3316_vm0, %vm3320_vm7  ;;  %vm3508_vm11 = vcmp.eq.f32.partialorder %v7250_v33, %v7258_v44  ;;  %v7314_v8 = vmax.f32 %v2880_v5, %v7284_v3  ;;  %v2912_v25 = vadd.f32 %v2908_v12, %v2864_v39  ;;  %v3304_v23 = vsel %vm3296_vm10, %v7030_v47, 0.0  ;;  %4604 = vmatprep.subr.mxu1 %v3532_v1  ;;  %v2111_v5 = vld [vmem:[#allocation14 + $0xf0] sm:$0xff]  ;;  %v7389_v33 = vld [vmem:[#allocation6 + $0x58] sm:$0xff] }
 0x323   :  { %vm7323_vm9 = vmor %vm3296_vm10, %vm3324_vm5  ;;  %v3336_v27 = vsel %vm3324_vm5, %v7085_v32, 0.0  ;;  %4605 = vmatpush3.msra.mxu1 %v3532_v1  ;;  %4386 = vmatprep.subr.mxu0 %v2111_v5  ;;  %v2108_v44 = vld [vmem:[#allocation14 + $0xd8] sm:$0xff] }
 0x324   :  { %v3340_v58 = vadd.f32 %v3336_v27, %v3304_v23  ;;  %vm3352_vm3 = vmxor %vm7323_vm9, %vm4936_vm15  ;;  %4387 = vmatpush3.msra.mxu0 %v2111_v5  ;;  %v2106_v27 = vld [vmem:[#allocation14 + $0xc8] sm:$0xff]  ;;  %v2103_v5 = vld [vmem:[#allocation14 + $0xb0] sm:$0xff] }
 0x325   :  { %vm3356_vm0 = vmand %vm3348_vm13, %vm3352_vm3  ;;  %4388 = vmatprep.subr.mxu0 %v2110_v41 }
 0x326   :  { %vm3360_vm10 = vmor %vm7323_vm9, %vm3356_vm0  ;;  %v3368_v55 = vsel %vm3356_vm0, %v7128_v60, 0.0  ;;  %4389 = vmatpush3.msra.mxu0 %v2110_v41  ;;  %v7462_v41 = vld [vmem:[#allocation6 + $0x78] sm:$0xff] }
 0x327   :  { %v3372_v47 = vadd.f32 %v3368_v55, %v3340_v58  ;;  %vm3384_vm5 = vmxor %vm3360_vm10, %vm4936_vm15  ;;  %v7430_v55 = vld [vmem:[#allocation6 + $0x68] sm:$0xff] }
 0x328   :  { %vm3388_vm7 = vmand %vm3380_vm6, %vm3384_vm5 }
 0x329   :  { %vm3392_vm4 = vmor %vm3360_vm10, %vm3388_vm7  ;;  %v3400_v32 = vsel %vm3388_vm7, %v7162_v2, 0.0 }
 0x32a   :  { %v3404_v53 = vadd.f32 %v3400_v32, %v3372_v47  ;;  %vm3416_vm13 = vmxor %vm3392_vm4, %vm4936_vm15  ;;  %v2105_v47 = vld [vmem:[#allocation14 + $0xc0] sm:$0xff] }
 0x32b   :  { %vm7346_vm9 = vmxor %vm7277_vm1, %vm4936_vm15 }
 0x32c   :  { %vm3420_vm3 = vmand %vm3412_vm2, %vm3416_vm13 }
 0x32d   :  { %vm3424_vm0 = vmor %vm3392_vm4, %vm3420_vm3  ;;  %v3432_v59 = vsel %vm3420_vm3, %v7184_v0, 0.0 }
 0x32e   :  { %v3436_v48 = vadd.f32 %v3432_v59, %v3404_v53  ;;  %vm3448_vm6 = vmxor %vm3424_vm0, %vm4936_vm15 }
 0x32f   :  { %vm3452_vm10 = vmand %vm3444_vm8, %vm3448_vm6 }
 0x330   :  { %vm3456_vm5 = vmor %vm3424_vm0, %vm3452_vm10  ;;  %v3464_v2 = vsel %vm3452_vm10, %v7207_v17, 0.0  ;;  %v2109_v17 = vld [vmem:[#allocation14 + $0xe0] sm:$0xff] }
 0x331   :  { %v3468_v49 = vadd.f32 %v3464_v2, %v3436_v48  ;;  %vm3480_vm7 = vmxor %vm3456_vm5, %vm4936_vm15  ;;  %4390 = vmatprep.subr.mxu0 %v2109_v17  ;;  %v7447_v2 = vld [vmem:[#allocation6 + $0x70] sm:$0xff] }
 0x332   :  { %vm3484_vm4 = vmand %vm3476_vm12, %vm3480_vm7  ;;  %vm8321_vm12 = vcmp.eq.f32.partialorder %v6653_v18, %v6794_v30  ;;  %4391 = vmatpush3.msra.mxu0 %v2109_v17 }
 0x333   :  { %vm3488_vm2 = vmor %vm3456_vm5, %vm3484_vm4  ;;  %v3496_v0 = vsel %vm3484_vm4, %v7224_v21, 0.0  ;;  %4392 = vmatprep.subr.mxu0 %v2108_v44  ;;  %vm8327_vm5 = vcmp.eq.f32.partialorder %v6716_v46, %v6794_v30 }
 0x334   :  { %v3500_v7 = vadd.f32 %v3496_v0, %v3468_v49  ;;  %vm3512_vm8 = vmxor %vm3488_vm2, %vm4936_vm15  ;;  %4393 = vmatpush3.msra.mxu0 %v2108_v44  ;;  %v2101_v44 = vld [vmem:[#allocation14 + $0xa0] sm:$0xff] }
 0x335   :  { %vm3516_vm13 = vmand %vm3508_vm11, %vm3512_vm8  ;;  %vm8330_vm8 = vcmp.eq.f32.partialorder %v6759_v14, %v6794_v30 }
 0x336   :  { %v3524_v36 = vsel %vm3516_vm13, %v7239_v62, 0.0  ;;  %vm7376_vm3 = vmand %vm8321_vm12, %vm7346_vm9 }
 0x337   :  { %v3528_v63 = vadd.f32 %v3524_v36, %v3500_v7  ;;  %vm2944_vm11 = vmor %vm7277_vm1, %vm7376_vm3  ;;  %v7387_v62 = vsel %vm7376_vm3, -1.0, %v6653_v18  ;;  %v2952_v12 = vsel %vm7376_vm3, %v7365_v13, 0.0  ;;  %vm8324_vm1 = vcmp.eq.f32.partialorder %v6684_v11, %v6794_v30  ;;  %v2107_v18 = vld [vmem:[#allocation14 + $0xd0] sm:$0xff]  ;;  %v2102_v7 = vld [vmem:[#allocation14 + $0xa8] sm:$0xff] }
 0x338   :  { %v2968_v20 = vmax.f32 %v7314_v8, %v7387_v62  ;;  %vm2980_vm9 = vmxor %vm2944_vm11, %vm4936_vm15  ;;  %v2956_v28 = vadd.f32 %v2952_v12, %v2912_v25  ;;  %4394 = vmatprep.subr.mxu0 %v2107_v18 }
 0x339   :  { %4606 = vmatprep.mubr.f32.mxu1 %v3528_v63  ;;  %vm2984_vm0 = vmand %vm8324_vm1, %vm2980_vm9  ;;  %4395 = vmatpush3.msra.mxu0 %v2107_v18 }
 0x33a   :  { %vm7400_vm6 = vmor %vm2944_vm11, %vm2984_vm0  ;;  %v7405_v23 = vsel %vm2984_vm0, -1.0, %v6684_v11  ;;  %v2996_v8 = vsel %vm2984_vm0, %v7389_v33, 0.0  ;;  %4396 = vmatprep.subr.mxu0 %v2106_v27  ;;  %vm8333_vm11 = vcmp.eq.f32.partialorder %v6774_v9, %v6794_v30 }
 0x33b   :  { %v3012_v25 = vmax.f32 %v2968_v20, %v7405_v23  ;;  %vm3024_vm10 = vmxor %vm7400_vm6, %vm4936_vm15  ;;  %v3000_v1 = vadd.f32 %v2996_v8, %v2956_v28  ;;  %4397 = vmatpush3.msra.mxu0 %v2106_v27  ;;  %v2099_v27 = vld [vmem:[#allocation14 + $0x90] sm:$0xff] }
 0x33c   :  { %vm7417_vm7 = vmand %vm8327_vm5, %vm3024_vm10  ;;  %4398 = vmatprep.subr.mxu0 %v2105_v47  ;;  %vm8335_vm10 = vcmp.eq.f32.partialorder %v6785_v51, %v6794_v30 }
 0x33d   :  { %vm3032_vm4 = vmor %vm7400_vm6, %vm7417_vm7  ;;  %v7428_v58 = vsel %vm7417_vm7, -1.0, %v6716_v46  ;;  %v3040_v32 = vsel %vm7417_vm7, %v7407_v43, 0.0  ;;  %v2104_v46 = vld [vmem:[#allocation14 + $0xb8] sm:$0xff]  ;;  %4399 = vmatpush3.msra.mxu0 %v2105_v47  ;;  %vm8334_vm6 = vcmp.eq.f32.partialorder %v6620_v50, %v6947_v42 }
 0x33e   :  { %v3056_v53 = vmax.f32 %v3012_v25, %v7428_v58  ;;  %vm3068_vm2 = vmxor %vm3032_vm4, %vm4936_vm15  ;;  %v3044_v60 = vadd.f32 %v3040_v32, %v3000_v1  ;;  %4400 = vmatprep.subr.mxu0 %v2104_v46  ;;  %v7471_v21 = vsel %vm8334_vm6, -1.0, %v6620_v50  ;;  %v2098_v1 = vld [vmem:[#allocation14 + $0x88] sm:$0xff] }
 0x33f   :  { %vm3072_vm13 = vmand %vm8330_vm8, %vm3068_vm2  ;;  %4401 = vmatpush3.msra.mxu0 %v2104_v46  ;;  %v2881_v30 = vmax.f32 %v7471_v21, 0.0  ;;  %vm8337_vm2 = vcmp.eq.f32.partialorder %v6812_v38, %v6947_v42 }
 0x340   :  { %vm7440_vm12 = vmor %vm3032_vm4, %vm3072_vm13  ;;  %v7445_v48 = vsel %vm3072_vm13, -1.0, %v6759_v14  ;;  %v3084_v49 = vsel %vm3072_vm13, %v7430_v55, 0.0  ;;  %4402 = vmatprep.subr.mxu0 %v2103_v5 }
 0x341   :  { %v3100_v35 = vmax.f32 %v3056_v53, %v7445_v48  ;;  %vm3112_vm3 = vmxor %vm7440_vm12, %vm4936_vm15  ;;  %v3088_v0 = vadd.f32 %v3084_v49, %v3044_v60  ;;  %4403 = vmatpush3.msra.mxu0 %v2103_v5  ;;  %v2097_v60 = vld [vmem:[#allocation14 + $0x80] sm:$0xff] }
 0x342   :  { %vm3116_vm9 = vmand %vm8333_vm11, %vm3112_vm3  ;;  %4404 = vmatprep.subr.mxu0 %v2102_v7  ;;  %v7585_v49 = vld [vmem:[#allocation6 + $0x80] sm:$0xff] }
 0x343   :  { %vm3120_vm1 = vmor %vm7440_vm12, %vm3116_vm9  ;;  %v7460_v14 = vsel %vm3116_vm9, -1.0, %v6774_v9  ;;  %v3128_v17 = vsel %vm3116_vm9, %v7447_v2, 0.0  ;;  %v7476_v9 = vld [vmem:[#allocation6 + $0x88] sm:$0xff]  ;;  %4405 = vmatpush3.msra.mxu0 %v2102_v7 }
 0x344   :  { %v3144_v36 = vmax.f32 %v3100_v35, %v7460_v14  ;;  %vm3156_vm0 = vmxor %vm3120_vm1, %vm4936_vm15  ;;  %v3132_v63 = vadd.f32 %v3128_v17, %v3088_v0  ;;  %4406 = vmatprep.subr.mxu0 %v2101_v44 }
 0x345   :  { %vm3160_vm5 = vmand %vm8335_vm10, %vm3156_vm0  ;;  %4407 = vmatpush3.msra.mxu0 %v2101_v44 }
 0x346   :  { %v7479_v12 = vsel %vm3160_vm5, -1.0, %v6785_v51  ;;  %vm8336_vm7 = vmmov %vm8334_vm6  ;;  %v3168_v20 = vsel %vm3160_vm5, %v7462_v41, 0.0  ;;  %v2100_v51 = vld [vmem:[#allocation14 + $0x98] sm:$0xff] }
 0x347   :  { %vm2893_vm4 = vmxor %vm8336_vm7, %vm4936_vm15  ;;  %v7487_v28 = vmax.f32 %v3144_v36, %v7479_v12  ;;  %v7497_v39 = vadd.f32 %v3168_v20, %v3132_v63  ;;  %4408 = vmatprep.subr.mxu0 %v2100_v51  ;;  %v7629_v63 = vld [vmem:[#allocation6 + $0xa0] sm:$0xff]  ;;  %v7758_v36 = vld [vmem:[#allocation6 + $0xd8] sm:$0xff] }
 0x348   :  { %vm7493_vm8 = vmand %vm8337_vm2, %vm2893_vm4  ;;  %4409 = vmatpush3.msra.mxu0 %v2100_v51 }
 0x349   :  { %v7502_v8 = vsel %vm7493_vm8, -1.0, %v6812_v38  ;;  %v2909_v25 = vsel %vm7493_vm8, %v7476_v9, 0.0  ;;  %vm3297_vm13 = vcmp.eq.f32.partialorder %v6832_v4, %v7487_v28  ;;  %vm3317_vm12 = vcmp.eq.f32.partialorder %v7284_v3, %v7487_v28  ;;  %vm8340_vm9 = vmmov %vm8334_vm6  ;;  %4410 = vmatprep.subr.mxu0 %v2099_v27  ;;  %v7653_v38 = vld [vmem:[#allocation6 + $0xb0] sm:$0xff] }
 0x34a   :  { %vm3349_vm3 = vcmp.eq.f32.partialorder %v7387_v62, %v7487_v28  ;;  %vm3381_vm11 = vcmp.eq.f32.partialorder %v7405_v23, %v7487_v28  ;;  %vm7520_vm1 = vmor %vm8340_vm9, %vm7493_vm8  ;;  %vm3413_vm6 = vcmp.eq.f32.partialorder %v7428_v58, %v7487_v28  ;;  %vm3445_vm10 = vcmp.eq.f32.partialorder %v7445_v48, %v7487_v28  ;;  %4411 = vmatpush3.msra.mxu0 %v2099_v27 }
 0x34b   :  { %vm3321_vm0 = vmxor %vm3297_vm13, %vm4936_vm15  ;;  %vm3477_vm5 = vcmp.eq.f32.partialorder %v7460_v14, %v7487_v28  ;;  %vm3509_vm4 = vcmp.eq.f32.partialorder %v7479_v12, %v7487_v28  ;;  %v7537_v3 = vmax.f32 %v2881_v30, %v7502_v8  ;;  %v3305_v11 = vsel %vm3297_vm13, %v7268_v61, 0.0  ;;  %4412 = vmatprep.subr.mxu0 %v2098_v1  ;;  %v7613_v14 = vld [vmem:[#allocation6 + $0x98] sm:$0xff]  ;;  %v7644_v28 = vld [vmem:[#allocation6 + $0xa8] sm:$0xff] }
 0x34c   :  { %vm3325_vm7 = vmand %vm3317_vm12, %vm3321_vm0  ;;  %4413 = vmatpush3.msra.mxu0 %v2098_v1 }
 0x34d   :  { %vm7546_vm2 = vmor %vm3297_vm13, %vm3325_vm7  ;;  %v3337_v32 = vsel %vm3325_vm7, %v7247_v6, 0.0  ;;  %v7560_v6 = vld [vmem:[#allocation15 + $0x78] sm:$0xff]  ;;  %4414 = vmatprep.subr.mxu0 %v2097_v60 }
 0x34e   :  { %v3341_v53 = vadd.f32 %v3337_v32, %v3305_v11  ;;  %vm3353_vm8 = vmxor %vm7546_vm2, %vm4936_vm15  ;;  %4415 = vmatpush3.msra.mxu0 %v2097_v60  ;;  %v7661_v11 = vld [vmem:[#allocation6 + $0xb8] sm:$0xff] }
 0x34f   :  { %vm3357_vm12 = vmand %vm3349_vm3, %vm3353_vm8  ;;  %4460 = vmatprep.subr.mxu0 %v7560_v6 }
 0x350   :  { %vm3361_vm13 = vmor %vm7546_vm2, %vm3357_vm12  ;;  %v3369_v4 = vsel %vm3357_vm12, %v7365_v13, 0.0 }
 0x351   :  { %v3373_v61 = vadd.f32 %v3369_v4, %v3341_v53  ;;  %vm3385_vm9 = vmxor %vm3361_vm13, %vm4936_vm15  ;;  %v7668_v53 = vld [vmem:[#allocation6 + $0xc8] sm:$0xff] }
 0x352   :  { %vm3389_vm0 = vmand %vm3381_vm11, %vm3385_vm9 }
 0x353   :  { %vm3393_vm7 = vmor %vm3361_vm13, %vm3389_vm0  ;;  %v3401_v62 = vsel %vm3389_vm0, %v7389_v33, 0.0 }
 0x354   :  { %v3405_v46 = vadd.f32 %v3401_v62, %v3373_v61  ;;  %vm3417_vm3 = vmxor %vm3393_vm7, %vm4936_vm15  ;;  %v2882_v61 = vmax.f32 %v7145_v24, 0.0  ;;  %v7684_v62 = vld [vmem:[#allocation6 + $0xc0] sm:$0xff] }
 0x355   :  { %vm7572_vm2 = vmxor %vm7520_vm1, %vm4936_vm15 }
 0x356   :  { %vm3421_vm11 = vmand %vm3413_vm6, %vm3417_vm3  ;;  %vm8347_vm3 = vcmp.eq.f32.partialorder %v6620_v50, %v6947_v42 }
 0x357   :  { %vm3425_vm8 = vmor %vm3393_vm7, %vm3421_vm11  ;;  %v3433_v23 = vsel %vm3421_vm11, %v7407_v43, 0.0  ;;  %v2865_v58 = vsel %vm8347_vm3, %v7585_v49, 0.0 }
 0x358   :  { %v3437_v33 = vadd.f32 %v3433_v23, %v3405_v46  ;;  %vm3449_vm12 = vmxor %vm3425_vm8, %vm4936_vm15  ;;  %v2913_v5 = vadd.f32 %v2909_v25, %v2865_v58 }
 0x359   :  { %vm3453_vm13 = vmand %vm3445_vm10, %vm3449_vm12 }
 0x35a   :  { %vm3457_vm9 = vmor %vm3425_vm8, %vm3453_vm13  ;;  %v3465_v59 = vsel %vm3453_vm13, %v7430_v55, 0.0  ;;  %v7597_v55 = vld [vmem:[#allocation6 + $0x90] sm:$0xff] }
 0x35b   :  { %v3469_v35 = vadd.f32 %v3465_v59, %v3437_v33  ;;  %vm3481_vm0 = vmxor %vm3457_vm9, %vm4936_vm15 }
 0x35c   :  { %vm3485_vm6 = vmand %vm3477_vm5, %vm3481_vm0  ;;  %vm8348_vm5 = vcmp.eq.f32.partialorder %v6850_v34, %v6947_v42  ;;  %vm8352_vm0 = vcmp.eq.f32.partialorder %v6903_v31, %v6947_v42 }
 0x35d   :  { %vm3489_vm7 = vmor %vm3457_vm9, %vm3485_vm6  ;;  %v3497_v43 = vsel %vm3485_vm6, %v7447_v2, 0.0 }
 0x35e   :  { %v3501_v48 = vadd.f32 %v3497_v43, %v3469_v35  ;;  %vm3513_vm10 = vmxor %vm3489_vm7, %vm4936_vm15 }
 0x35f   :  { %vm3517_vm11 = vmand %vm3509_vm4, %vm3513_vm10 }
 0x360   :  { %v3525_v0 = vsel %vm3517_vm11, %v7462_v41, 0.0  ;;  %vm2941_vm8 = vmand %vm8348_vm5, %vm7572_vm2  ;;  %vm8349_vm2 = vcmp.eq.f32.partialorder %v6881_v57, %v6947_v42 }
 0x361   :  { %v3529_v50 = vadd.f32 %v3525_v0, %v3501_v48  ;;  %vm2945_vm12 = vmor %vm7520_vm1, %vm2941_vm8  ;;  %v7611_v2 = vsel %vm2941_vm8, -1.0, %v6850_v34  ;;  %v2953_v7 = vsel %vm2941_vm8, %v7597_v55, 0.0  ;;  %vm8353_vm8 = vcmp.eq.f32.partialorder %v6927_v26, %v6947_v42 }
 0x362   :  { %v2969_v41 = vmax.f32 %v7537_v3, %v7611_v2  ;;  %vm2981_vm4 = vmxor %vm2945_vm12, %vm4936_vm15  ;;  %v2957_v17 = vadd.f32 %v2953_v7, %v2913_v5 }
 0x363   :  { %4607 = vmatmul.mubr.f32.vlgmr.msra.gmra.mxu1 %v3529_v50  ;;  %vm2985_vm13 = vmand %vm8349_vm2, %vm2981_vm4  ;;  %vm8354_vm2 = vcmp.eq.f32.partialorder %v6938_v19, %v6947_v42  ;;  %v7829_v42 = vld [vmem:[#allocation6 + $0xf8] sm:$0xff] }
 0x364   :  { %vm7622_vm9 = vmor %vm2945_vm12, %vm2985_vm13  ;;  %v7627_v34 = vsel %vm2985_vm13, -1.0, %v6881_v57  ;;  %v2997_v44 = vsel %vm2985_vm13, %v7613_v14, 0.0 }
 0x365   :  { %v3013_v12 = vmax.f32 %v2969_v41, %v7627_v34  ;;  %vm3025_vm1 = vmxor %vm7622_vm9, %vm4936_vm15  ;;  %v3001_v20 = vadd.f32 %v2997_v44, %v2957_v17 }
 0x366   :  { %vm3029_vm6 = vmand %vm8352_vm0, %vm3025_vm1  ;;  %vm8356_vm0 = vcmp.eq.f32.partialorder %v6962_v29, %v7096_v56 }
 0x367   :  { %vm3033_vm7 = vmor %vm7622_vm9, %vm3029_vm6  ;;  %v7642_v57 = vsel %vm3029_vm6, -1.0, %v6903_v31  ;;  %v3041_v30 = vsel %vm3029_vm6, %v7629_v63, 0.0  ;;  %vm8355_vm9 = vcmp.eq.f32.partialorder %v6690_v54, %v7096_v56 }
 0x368   :  { %v3057_v18 = vmax.f32 %v3013_v12, %v7642_v57  ;;  %vm3069_vm3 = vmxor %vm3033_vm7, %vm4936_vm15  ;;  %v3045_v51 = vadd.f32 %v3041_v30, %v3001_v20  ;;  %v2316_v30 = vld [vmem:[#allocation15 + $0x70] sm:$0xff] }
 0x369   :  { %vm3073_vm10 = vmand %vm3065_vm14, %vm3069_vm3 }
 0x36a   :  { %vm3077_vm11 = vmor %vm3033_vm7, %vm3073_vm10  ;;  %v3093_v25 = vsel %vm3073_vm10, -1.0, %v6915_v10  ;;  %v3085_v31 = vsel %vm3073_vm10, %v7644_v28, 0.0 }
 0x36b   :  { %v3101_v27 = vmax.f32 %v3057_v18, %v3093_v25  ;;  %vm3113_vm5 = vmxor %vm3077_vm11, %vm4936_vm15  ;;  %v3089_v3 = vadd.f32 %v3085_v31, %v3045_v51 }
 0x36c   :  { %vm3117_vm12 = vmand %vm8353_vm8, %vm3113_vm5 }
 0x36d   :  { %vm3121_vm4 = vmor %vm3077_vm11, %vm3117_vm12  ;;  %v3137_v1 = vsel %vm3117_vm12, -1.0, %v6927_v26  ;;  %v3129_v47 = vsel %vm3117_vm12, %v7653_v38, 0.0 }
 0x36e   :  { %v3145_v10 = vmax.f32 %v3101_v27, %v3137_v1  ;;  %vm3157_vm14 = vmxor %vm3121_vm4, %vm4936_vm15  ;;  %v3133_v32 = vadd.f32 %v3129_v47, %v3089_v3  ;;  %v7797_v27 = vld [vmem:[#allocation6 + $0xe8] sm:$0xff] }
 0x36f   :  { %vm3161_vm13 = vmand %vm8354_vm2, %vm3157_vm14 }
 0x370   :  { %v3177_v60 = vsel %vm3161_vm13, -1.0, %v6938_v19  ;;  %vm2894_vm1 = vmxor %vm8355_vm9, %vm4936_vm15  ;;  %v3169_v26 = vsel %vm3161_vm13, %v7661_v11, 0.0 }
 0x371   :  { %v3185_v4 = vmax.f32 %v3145_v10, %v3177_v60  ;;  %vm7680_vm6 = vmand %vm8356_vm0, %vm2894_vm1  ;;  %v7686_v19 = vadd.f32 %v3169_v26, %v3133_v32  ;;  %v7814_v10 = vld [vmem:[#allocation6 + $0xf0] sm:$0xff]  ;;  %v2313_v32 = vld [vmem:[#allocation15 + $0x58] sm:$0xff] }
 0x372   :  { %vm8359_vm7 = vmmov %vm8355_vm9  ;;  %v7700_v13 = vsel %vm7680_vm6, -1.0, %v6962_v29  ;;  %v2910_v23 = vsel %vm7680_vm6, %v7668_v53, 0.0 }
 0x373   :  { %vm7693_vm3 = vmor %vm8359_vm7, %vm7680_vm6  ;;  %vm3298_vm10 = vcmp.eq.f32.partialorder %v7471_v21, %v3185_v4  ;;  %vm3318_vm11 = vcmp.eq.f32.partialorder %v7502_v8, %v3185_v4  ;;  %vm3350_vm5 = vcmp.eq.f32.partialorder %v7611_v2, %v3185_v4  ;;  %vm3382_vm8 = vcmp.eq.f32.partialorder %v7627_v34, %v3185_v4 }
 0x374   :  { %vm3322_vm12 = vmxor %vm3298_vm10, %vm4936_vm15  ;;  %vm3414_vm4 = vcmp.eq.f32.partialorder %v7642_v57, %v3185_v4  ;;  %vm3446_vm14 = vcmp.eq.f32.partialorder %v3093_v25, %v3185_v4  ;;  %v2926_v21 = vmax.f32 %v2882_v61, %v7700_v13  ;;  %v3306_v33 = vsel %vm3298_vm10, %v7585_v49, 0.0 }
 0x375   :  { %vm8362_vm13 = vmmov %vm8359_vm7 }
 0x376   :  { %v2866_v29 = vsel %vm8362_vm13, %v7684_v62, 0.0  ;;  %vm3326_vm9 = vmand %vm3318_vm11, %vm3322_vm12 }
 0x377   :  { %v2914_v8 = vadd.f32 %v2910_v23, %v2866_v29  ;;  %vm3330_vm0 = vmor %vm3298_vm10, %vm3326_vm9  ;;  %v3338_v59 = vsel %vm3326_vm9, %v7476_v9, 0.0  ;;  %v2311_v29 = vld [vmem:[#allocation15 + $0x48] sm:$0xff] }
 0x378   :  { %v3342_v35 = vadd.f32 %v3338_v59, %v3306_v33  ;;  %vm3354_vm6 = vmxor %vm3330_vm0, %vm4936_vm15 }
 0x379   :  { %vm3358_vm7 = vmand %vm3350_vm5, %vm3354_vm6 }
 0x37a   :  { %vm3362_vm2 = vmor %vm3330_vm0, %vm3358_vm7  ;;  %v3370_v54 = vsel %vm3358_vm7, %v7597_v55, 0.0 }
 0x37b   :  { %v3374_v43 = vadd.f32 %v3370_v54, %v3342_v35  ;;  %vm3386_vm11 = vmxor %vm3362_vm2, %vm4936_vm15  ;;  %v2309_v54 = vld [vmem:[#allocation15 + $0x38] sm:$0xff] }
 0x37c   :  { %vm3390_vm12 = vmand %vm3382_vm8, %vm3386_vm11  ;;  %vm8365_vm11 = vcmp.eq.f32.partialorder %v3137_v1, %v3185_v4  ;;  %v2314_v1 = vld [vmem:[#allocation15 + $0x60] sm:$0xff] }
 0x37d   :  { %vm3394_vm13 = vmor %vm3362_vm2, %vm3390_vm12  ;;  %v3402_v49 = vsel %vm3390_vm12, %v7613_v14, 0.0  ;;  %v7744_v14 = vld [vmem:[#allocation6 + $0xd0] sm:$0xff] }
 0x37e   :  { %v3406_v58 = vadd.f32 %v3402_v49, %v3374_v43  ;;  %vm3418_vm10 = vmxor %vm3394_vm13, %vm4936_vm15  ;;  %v2307_v49 = vld [vmem:[#allocation15 + $0x28] sm:$0xff] }
 0x37f   :  { %vm7730_vm9 = vmxor %vm7693_vm3, %vm4936_vm15 }
 0x380   :  { %vm3422_vm5 = vmand %vm3414_vm4, %vm3418_vm10 }
 0x381   :  { %vm3426_vm0 = vmor %vm3394_vm13, %vm3422_vm5  ;;  %v3434_v48 = vsel %vm3422_vm5, %v7629_v63, 0.0  ;;  %vm8366_vm13 = vcmp.eq.f32.partialorder %v3177_v60, %v3185_v4 }
 0x382   :  { %v3438_v55 = vadd.f32 %v3434_v48, %v3406_v58  ;;  %vm3450_vm8 = vmxor %vm3426_vm0, %vm4936_vm15  ;;  %v4380_v34 = vpop.f32.mrf.mxu1  ;;  %v2305_v48 = vld [vmem:[#allocation15 + $0x18] sm:$0xff] }
 0x383   :  { %vm3454_vm2 = vmand %vm3446_vm14, %vm3450_vm8  ;;  %vm8367_vm14 = vcmp.eq.f32.partialorder %v6994_v16, %v7096_v56 }
 0x384   :  { %vm3458_vm6 = vmor %vm3426_vm0, %vm3454_vm2  ;;  %v3466_v5 = vsel %vm3454_vm2, %v7644_v28, 0.0  ;;  %v2062_v20 = vpop.f32.mrf.mxu1  ;;  %v7773_v28 = vld [vmem:[#allocation6 + $0xe0] sm:$0xff] }
 0x385   :  { %v3470_v0 = vadd.f32 %v3466_v5, %v3438_v55  ;;  %vm3482_vm7 = vmxor %vm3458_vm6, %vm4936_vm15  ;;  %4416 = vmatprep.mubr.f32.mxu0 %v2062_v20  ;;  %v3202_v20 = vld [vmem:[#allocation15 + $0x178] sm:$0xff] }
 0x386   :  { %vm3486_vm12 = vmand %vm8365_vm11, %vm3482_vm7  ;;  %4417 = vmatmul.mubr.f32.vlgmr.msra.gmra.mxu0 %v4380_v34  ;;  %v2302_v34 = vld [vmem:[#allocation15] sm:$0xff] }
 0x387   :  { %vm3490_vm1 = vmor %vm3458_vm6, %vm3486_vm12  ;;  %v3498_v50 = vsel %vm3486_vm12, %v7653_v38, 0.0  ;;  %vm8371_vm6 = vcmp.eq.f32.partialorder %v7046_v40, %v7096_v56  ;;  %4461 = vmatpush3.msra.mxu0 %v7560_v6  ;;  %v2315_v38 = vld [vmem:[#allocation15 + $0x68] sm:$0xff] }
 0x388   :  { %v3502_v2 = vadd.f32 %v3498_v50, %v3470_v0  ;;  %vm3514_vm4 = vmxor %vm3490_vm1, %vm4936_vm15  ;;  %4462 = vmatprep.subr.mxu0 %v2316_v30 }
 0x389   :  { %vm3518_vm10 = vmand %vm8366_vm13, %vm3514_vm4  ;;  %4463 = vmatpush3.msra.mxu0 %v2316_v30  ;;  %vm8374_vm4 = vcmp.eq.f32.partialorder %v7064_v22, %v7096_v56  ;;  %v4706_v30 = vld [vmem:[#allocation3 + $0x8] sm:$0xff] }
 0x38a   :  { %v3526_v7 = vsel %vm3518_vm10, %v7661_v11, 0.0  ;;  %vm2942_vm5 = vmand %vm8367_vm14, %vm7730_vm9  ;;  %vm8368_vm9 = vcmp.eq.f32.partialorder %v7022_v45, %v7096_v56  ;;  %4464 = vmatprep.subr.mxu0 %v2315_v38 }
 0x38b   :  { %v3530_v41 = vadd.f32 %v3526_v7, %v3502_v2  ;;  %vm2946_vm0 = vmor %vm7693_vm3, %vm2942_vm5  ;;  %v7756_v17 = vsel %vm2942_vm5, -1.0, %v6994_v16  ;;  %v2954_v63 = vsel %vm2942_vm5, %v7744_v14, 0.0  ;;  %4465 = vmatpush3.msra.mxu0 %v2315_v38  ;;  %vm8377_vm5 = vcmp.eq.f32.partialorder %v7076_v15, %v7096_v56  ;;  %v2304_v2 = vld [vmem:[#allocation15 + $0x10] sm:$0xff]  ;;  %v3199_v38 = vld [vmem:[#allocation15 + $0x160] sm:$0xff] }
 0x38c   :  { %v2970_v44 = vmax.f32 %v2926_v21, %v7756_v17  ;;  %vm2982_vm1 = vmxor %vm2946_vm0, %vm4936_vm15  ;;  %v2958_v12 = vadd.f32 %v2954_v63, %v2914_v8  ;;  %4466 = vmatprep.subr.mxu0 %v2314_v1  ;;  %v2310_v8 = vld [vmem:[#allocation15 + $0x40] sm:$0xff] }
 0x38d   :  { %4609 = vmatprep.mubr.f32.mxu1 %v3530_v41  ;;  %vm2986_vm8 = vmand %vm8368_vm9, %vm2982_vm1  ;;  %4467 = vmatpush3.msra.mxu0 %v2314_v1  ;;  %v2303_v41 = vld [vmem:[#allocation15 + $0x8] sm:$0xff]  ;;  %v3195_v1 = vld [vmem:[#allocation15 + $0x140] sm:$0xff] }
 0x38e   :  { %vm7766_vm3 = vmor %vm2946_vm0, %vm2986_vm8  ;;  %v7771_v16 = vsel %vm2986_vm8, -1.0, %v7022_v45  ;;  %v2998_v18 = vsel %vm2986_vm8, %v7758_v36, 0.0  ;;  %4468 = vmatprep.subr.mxu0 %v2313_v32  ;;  %vm8378_vm8 = vcmp.eq.f32.partialorder %v7089_v37, %v7096_v56 }
 0x38f   :  { %v3014_v51 = vmax.f32 %v2970_v44, %v7771_v16  ;;  %vm3026_vm2 = vmxor %vm7766_vm3, %vm4936_vm15  ;;  %v3002_v25 = vadd.f32 %v2998_v18, %v2958_v12  ;;  %4469 = vmatpush3.msra.mxu0 %v2313_v32  ;;  %v4707_v18 = vld [vmem:[#allocation3 + $0x10] sm:$0xff] }
 0x390   :  { %vm7783_vm7 = vmand %vm8371_vm6, %vm3026_vm2  ;;  %v3189_v32 = vld [vmem:[#allocation15 + $0x110] sm:$0xff] }
 0x391   :  { %vm3034_vm11 = vmor %vm7766_vm3, %vm7783_vm7  ;;  %v7795_v31 = vsel %vm7783_vm7, -1.0, %v7046_v40  ;;  %v3042_v3 = vsel %vm7783_vm7, %v7773_v28, 0.0  ;;  %v3193_v40 = vld [vmem:[#allocation15 + $0x130] sm:$0xff] }
 0x392   :  { %v3058_v6 = vmax.f32 %v3014_v51, %v7795_v31  ;;  %vm3070_vm12 = vmxor %vm3034_vm11, %vm4936_vm15  ;;  %v3046_v11 = vadd.f32 %v3042_v3, %v3002_v25  ;;  %v3200_v51 = vld [vmem:[#allocation15 + $0x168] sm:$0xff]  ;;  %v3197_v3 = vld [vmem:[#allocation15 + $0x150] sm:$0xff] }
 0x393   :  { %vm3074_vm13 = vmand %vm8374_vm4, %vm3070_vm12 }
 0x394   :  { %vm7807_vm10 = vmor %vm3034_vm11, %vm3074_vm13  ;;  %v7812_v47 = vsel %vm3074_vm13, -1.0, %v7064_v22  ;;  %v3086_v60 = vsel %vm3074_vm13, %v7797_v27, 0.0  ;;  %v2312_v22 = vld [vmem:[#allocation15 + $0x50] sm:$0xff] }
 0x395   :  { %v3102_v26 = vmax.f32 %v3058_v6, %v7812_v47  ;;  %vm3114_vm14 = vmxor %vm7807_vm10, %vm4936_vm15  ;;  %v3090_v4 = vadd.f32 %v3086_v60, %v3046_v11  ;;  %4470 = vmatprep.subr.mxu0 %v2312_v22  ;;  %v3196_v6 = vld [vmem:[#allocation15 + $0x148] sm:$0xff]  ;;  %v3194_v11 = vld [vmem:[#allocation15 + $0x138] sm:$0xff] }
 0x396   :  { %vm3118_vm0 = vmand %vm8377_vm5, %vm3114_vm14  ;;  %4471 = vmatpush3.msra.mxu0 %v2312_v22  ;;  %v3188_v60 = vld [vmem:[#allocation15 + $0x108] sm:$0xff] }
 0x397   :  { %vm3122_vm1 = vmor %vm7807_vm10, %vm3118_vm0  ;;  %v7827_v61 = vsel %vm3118_vm0, -1.0, %v7076_v15  ;;  %v3130_v46 = vsel %vm3118_vm0, %v7814_v10, 0.0  ;;  %4472 = vmatprep.subr.mxu0 %v2311_v29 }
 0x398   :  { %v3146_v23 = vmax.f32 %v3102_v26, %v7827_v61  ;;  %vm3158_vm9 = vmxor %vm3122_vm1, %vm4936_vm15  ;;  %v3134_v21 = vadd.f32 %v3130_v46, %v3090_v4  ;;  %4473 = vmatpush3.msra.mxu0 %v2311_v29  ;;  %v3187_v26 = vld [vmem:[#allocation15 + $0x100] sm:$0xff] }
 0x399   :  { %vm3162_vm3 = vmand %vm8378_vm8, %vm3158_vm9  ;;  %4474 = vmatprep.subr.mxu0 %v2310_v8 }
 0x39a   :  { %v7838_v15 = vsel %vm3162_vm3, -1.0, %v7089_v37  ;;  %v3170_v33 = vsel %vm3162_vm3, %v7829_v42, 0.0  ;;  %4475 = vmatpush3.msra.mxu0 %v2310_v8  ;;  %v2308_v37 = vld [vmem:[#allocation15 + $0x30] sm:$0xff] }
 0x39b   :  { %v7842_v59 = vmax.f32 %v3146_v23, %v7838_v15  ;;  %v7844_v35 = vadd.f32 %v3170_v33, %v3134_v21  ;;  %4476 = vmatprep.subr.mxu0 %v2309_v54 }
 0x39c   :  { %4477 = vmatpush3.msra.mxu0 %v2309_v54 }
 0x39d   :  { %vm3299_vm2 = vcmp.eq.f32.partialorder %v7145_v24, %v7842_v59  ;;  %vm3319_vm6 = vcmp.eq.f32.partialorder %v7700_v13, %v7842_v59  ;;  %vm3351_vm7 = vcmp.eq.f32.partialorder %v7756_v17, %v7842_v59  ;;  %vm3383_vm11 = vcmp.eq.f32.partialorder %v7771_v16, %v7842_v59  ;;  %4478 = vmatprep.subr.mxu0 %v2308_v37  ;;  %v2306_v24 = vld [vmem:[#allocation15 + $0x20] sm:$0xff]  ;;  %v4383_v9 = vpop.f32.mrf.mxu1  ;;  %v3201_v16 = vld [vmem:[#allocation15 + $0x170] sm:$0xff] }
 0x39e   :  { %vm3323_vm12 = vmxor %vm3299_vm2, %vm4936_vm15  ;;  %vm3415_vm4 = vcmp.eq.f32.partialorder %v7795_v31, %v7842_v59  ;;  %vm3447_vm13 = vcmp.eq.f32.partialorder %v7812_v47, %v7842_v59  ;;  %vm3479_vm10 = vcmp.eq.f32.partialorder %v7827_v61, %v7842_v59  ;;  %vm3511_vm5 = vcmp.eq.f32.partialorder %v7838_v15, %v7842_v59  ;;  %4479 = vmatpush3.msra.mxu0 %v2308_v37  ;;  %v4705_v17 = vld [vmem:[#allocation3] sm:$0xff]  ;;  %v4708_v31 = vld [vmem:[#allocation3 + $0x18] sm:$0xff] }
 0x39f   :  { %vm3327_vm14 = vmand %vm3319_vm6, %vm3323_vm12  ;;  %v3307_v56 = vsel %vm3299_vm2, %v7684_v62, 0.0  ;;  %4480 = vmatprep.subr.mxu0 %v2307_v49  ;;  %v2072_v0 = vpop.f32.mrf.mxu1  ;;  %v3192_v47 = vld [vmem:[#allocation15 + $0x128] sm:$0xff]  ;;  %v3682_v61 = vld [vmem:[%s7965_s7] ss:$0 sm:$0xff]  ;;  %s4869_s7 = scalar_lea.vmem %s3663_s3, 512 }
 0x3a0   :  { %vm7873_vm0 = vmor %vm3299_vm2, %vm3327_vm14  ;;  %v3339_v43 = vsel %vm3327_vm14, %v7668_v53, 0.0  ;;  %4481 = vmatpush3.msra.mxu0 %v2307_v49  ;;  %4419 = vmatprep.mubr.f32.mxu0 %v2072_v0  ;;  %p4870_p12 = scmp.ne.s32.totalorder %s3663_s3, %s4869_s7  ;;  %p4875_p0 = scmp.lt.s32.totalorder %s4869_s7, %s4869_s7 }
 0x3a1   :  { %v3343_v58 = vadd.f32 %v3339_v43, %v3307_v56  ;;  %vm3355_vm1 = vmxor %vm7873_vm0, %vm4936_vm15  ;;  %4482 = vmatprep.subr.mxu0 %v2306_v24  ;;  %4420 = vmatmul.mubr.f32.gmra.mxu0 %v4383_v9 }
 0x3a2   :  { %vm3359_vm9 = vmand %vm3351_vm7, %vm3355_vm1  ;;  %4483 = vmatpush3.msra.mxu0 %v2306_v24  ;;  %4492 = vmatprep.mubr.f32.mxu0 %v4705_v17  ;;  %p4876_p1 = por %p4875_p0, %p4874_p13 }
 0x3a3   :  { %vm3363_vm8 = vmor %vm7873_vm0, %vm3359_vm9  ;;  %v3371_v62 = vsel %vm3359_vm9, %v7744_v14, 0.0  ;;  %4484 = vmatprep.subr.mxu0 %v2305_v48  ;;  %v4456_v4 = vpop.f32.mrf.mxu1 }
 0x3a4   :  { %v3375_v53 = vadd.f32 %v3371_v62, %v3343_v58  ;;  %vm3387_vm3 = vmxor %vm3363_vm8, %vm4936_vm15  ;;  %4485 = vmatpush3.msra.mxu0 %v2305_v48  ;;  %p4877_p2 = pnand %p4876_p1, %p4870_p12 }
 0x3a5   :  { %vm3391_vm2 = vmand %vm3383_vm11, %vm3387_vm3  ;;  %4486 = vmatprep.subr.mxu0 %v2304_v2  ;;  %v2264_v46 = vpop.f32.mrf.mxu1 }
 0x3a6   :  { %vm7891_vm6 = vmor %vm3363_vm8, %vm3391_vm2  ;;  %v3403_v5 = vsel %vm3391_vm2, %v7758_v36, 0.0  ;;  %4487 = vmatpush3.msra.mxu0 %v2304_v2 }
 0x3a7   :  { %v3407_v50 = vadd.f32 %v3403_v5, %v3375_v53  ;;  %vm3419_vm7 = vmxor %vm7891_vm6, %vm4936_vm15  ;;  %4488 = vmatprep.subr.mxu0 %v2303_v41 }
 0x3a8   :  { %vm7902_vm11 = vmand %vm3415_vm4, %vm3419_vm7  ;;  %4489 = vmatpush3.msra.mxu0 %v2303_v41 }
 0x3a9   :  { %vm3427_vm12 = vmor %vm7891_vm6, %vm7902_vm11  ;;  %v3435_v7 = vsel %vm7902_vm11, %v7773_v28, 0.0  ;;  %4490 = vmatprep.subr.mxu0 %v2302_v34 }
 0x3aa   :  { %v3439_v36 = vadd.f32 %v3435_v7, %v3407_v50  ;;  %vm3451_vm4 = vmxor %vm3427_vm12, %vm4936_vm15  ;;  %4491 = vmatpush3.msra.mxu0 %v2302_v34 }
 0x3ab   :  { %vm3455_vm14 = vmand %vm3447_vm13, %vm3451_vm4  ;;  %4493 = vmatmul.mubr.f32.vlgmr.msra.gmra.mxu0 %v4706_v30  ;;  %4536 = vmatprep.subr.mxu0 %v3202_v20 }
 0x3ac   :  { %vm7917_vm0 = vmor %vm3427_vm12, %vm3455_vm14  ;;  %v3467_v44 = vsel %vm3455_vm14, %v7797_v27, 0.0  ;;  %4537 = vmatpush3.msra.mxu0 %v3202_v20  ;;  %4495 = vmatprep.mubr.f32.mxu0 %v4707_v18  ;;  %v3198_v27 = vld [vmem:[#allocation15 + $0x158] sm:$0xff] }
 0x3ad   :  { %v3471_v12 = vadd.f32 %v3467_v44, %v3439_v36  ;;  %vm3483_vm1 = vmxor %vm7917_vm0, %vm4936_vm15  ;;  %4538 = vmatprep.subr.mxu0 %v3201_v16 }
 0x3ae   :  { %vm3487_vm13 = vmand %vm3479_vm10, %vm3483_vm1  ;;  %4539 = vmatpush3.msra.mxu0 %v3201_v16 }
 0x3af   :  { %vm3491_vm9 = vmor %vm7917_vm0, %vm3487_vm13  ;;  %v3499_v57 = vsel %vm3487_vm13, %v7814_v10, 0.0  ;;  %4496 = vmatmul.mubr.f32.gmra.mxu0 %v4708_v31  ;;  %4540 = vmatprep.subr.mxu0 %v3200_v51  ;;  %v3190_v10 = vld [vmem:[#allocation15 + $0x118] sm:$0xff] }
 0x3b0   :  { %v3503_v28 = vadd.f32 %v3499_v57, %v3471_v12  ;;  %vm3515_vm8 = vmxor %vm3491_vm9, %vm4936_vm15  ;;  %4541 = vmatpush3.msra.mxu0 %v3200_v51  ;;  %4568 = vmatprep.mubr.f32.mxu0 %v7270_v52  ;;  %v3191_v52 = vld [vmem:[#allocation15 + $0x120] sm:$0xff] }
 0x3b1   :  { %vm3519_vm3 = vmand %vm3511_vm5, %vm3515_vm8  ;;  %4542 = vmatprep.subr.mxu0 %v3199_v38 }
 0x3b2   :  { %v3527_v25 = vsel %vm3519_vm3, %v7829_v42, 0.0  ;;  %4543 = vmatpush3.msra.mxu0 %v3199_v38 }
 0x3b3   :  { %v3531_v45 = vadd.f32 %v3527_v25, %v3503_v28  ;;  %4544 = vmatprep.subr.mxu0 %v3198_v27 }
 0x3b4   :  { %4545 = vmatpush3.msra.mxu0 %v3198_v27 }
 0x3b5   :  { %4610 = vmatmul.mubr.f32.gmra.mxu1 %v3531_v45  ;;  %4546 = vmatprep.subr.mxu0 %v3197_v3 }
 0x3b6   :  { %4547 = vmatpush3.msra.mxu0 %v3197_v3 }
 0x3b7   :  { %4548 = vmatprep.subr.mxu0 %v3196_v6 }
 0x3b8   :  { %4549 = vmatpush3.msra.mxu0 %v3196_v6 }
 0x3b9   :  { %4550 = vmatprep.subr.mxu0 %v3195_v1 }
 0x3ba   :  { %4551 = vmatpush3.msra.mxu0 %v3195_v1 }
 0x3bb   :  { %4552 = vmatprep.subr.mxu0 %v3194_v11 }
 0x3bc   :  { %4553 = vmatpush3.msra.mxu0 %v3194_v11 }
 0x3bd   :  { %4554 = vmatprep.subr.mxu0 %v3193_v40 }
 0x3be   :  { %4555 = vmatpush3.msra.mxu0 %v3193_v40 }
 0x3bf   :  { %4556 = vmatprep.subr.mxu0 %v3192_v47 }
 0x3c0   :  { %4557 = vmatpush3.msra.mxu0 %v3192_v47 }
 0x3c1   :  { %4558 = vmatprep.subr.mxu0 %v3191_v52 }
 0x3c2   :  { %4559 = vmatpush3.msra.mxu0 %v3191_v52 }
 0x3c3   :  { %4560 = vmatprep.subr.mxu0 %v3190_v10 }
 0x3c4   :  { %4561 = vmatpush3.msra.mxu0 %v3190_v10 }
 0x3c5   :  { %4562 = vmatprep.subr.mxu0 %v3189_v32 }
 0x3c6   :  { %4563 = vmatpush3.msra.mxu0 %v3189_v32 }
 0x3c7   :  { %4564 = vmatprep.subr.mxu0 %v3188_v60 }
 0x3c8   :  { %4565 = vmatpush3.msra.mxu0 %v3188_v60 }
 0x3c9   :  { %4566 = vmatprep.subr.mxu0 %v3187_v26 }
 0x3ca   :  { %4567 = vmatpush3.msra.mxu0 %v3187_v26 }
 0x3cb   :  { %4569 = vmatmul.mubr.f32.vlgmr.msra.gmra.mxu0 %v7497_v39  ;;  %v4459_v39 = vpop.f32.mrf.mxu1 }
 0x3cc   :  { %4571 = vmatprep.mubr.f32.mxu0 %v7686_v19 }
 0x3cf   :  { %4572 = vmatmul.mubr.f32.gmra.mxu0 %v7844_v35  ;;  %v2274_v35 = vpop.f32.mrf.mxu1 }
 0x446   :  { %v4418_v22 = vpop.f32.mrf.mxu0 }
 0x447   :  { %v2270_v42 = vadd.f32 %v4456_v4, %v4418_v22 }
 0x448   :  { %v2179_v23 = vpop.f32.mrf.mxu0 }
 0x449   :  { %v2291_v29 = vadd.f32 %v3682_v61, %v2270_v42  ;;  %v2265_v21 = vadd.f32 %v2264_v46, %v2179_v23 }
 0x44b   :  { %v2295_v15 = vmax.f32 %v2291_v29, 0.0  ;;  %v2290_v8 = vadd.f32 %v3682_v61, %v2265_v21 }
 0x44d   :  { %2299 = vst [vmem:[#allocation18 + $0x8] sm:$0xff] %v2295_v15  ;;  %v2294_v33 = vmax.f32 %v2290_v8, 0.0 }
 0x44f   :  { %2298 = vst [vmem:[#allocation18] sm:$0xff] %v2294_v33 }
 0x461   :  { %v4421_v19 = vpop.f32.mrf.mxu0 }
 0x462   :  { %v2280_v59 = vadd.f32 %v4459_v39, %v4421_v19 }
 0x463   :  { %v2189_v54 = vpop.f32.mrf.mxu0 }
 0x464   :  { %v2293_v37 = vadd.f32 %v3682_v61, %v2280_v59  ;;  %v2275_v56 = vadd.f32 %v2274_v35, %v2189_v54 }
 0x466   :  { %v2297_v13 = vmax.f32 %v2293_v37, 0.0  ;;  %v2292_v43 = vadd.f32 %v3682_v61, %v2275_v56 }
 0x468   :  { %2301 = vst [vmem:[#allocation18 + $0x18] sm:$0xff] %v2297_v13  ;;  %v2296_v49 = vmax.f32 %v2292_v43, 0.0 }
 0x46a   :  { %2300 = vst [vmem:[#allocation18 + $0x10] sm:$0xff] %v2296_v49 }
 0x46b   :  { %4880 = shalt.err (!%p4877_p2)
}
 0x46c   :  { %3668 = dma.vmem_to_hbm [thread:$0]  %s3663_s3, 512, %s7969_s11, [#allocation19], %s4928_s29, %s4928_s29, %s4929_s30   ;;  %v4532_v58 = vpop.f32.mrf.mxu1  ;;  %v4494_v62 = vpop.f32.mrf.mxu0 }
 0x46d   :  { %v3683_v48 = vld [vmem:[%s7967_s9] ss:$0 sm:$0xff]  ;;  %s4938_s9 = smov [#allocation17]  }
 0x46e   :  { %v2828_v24 = vpop.f32.mrf.mxu1  ;;  %v2391_v9 = vpop.f32.mrf.mxu0  ;;  %v2397_v0 = vadd.f32 %v4494_v62, %v3683_v48  ;;  %s3650_s11 = sshll.u32 %s4938_s9, 4  ;;  %s3651_s11 = int_to_ptr.vmem [resolvable:$true] %s3650_s11 }
 0x46f   :  { %v2392_v2 = vadd.f32 %v3683_v48, %v2391_v9  ;;  %s4889_s22 = scalar_lea.vmem %s3651_s11, 512  ;;  %p4894_p4 = scmp.lt.s32.totalorder %s3651_s11, %s3651_s11 }
 0x470   :  { %v4535_v53 = vpop.f32.mrf.mxu1  ;;  %v4497_v5 = vpop.f32.mrf.mxu0  ;;  %v2848_v41 = vadd.f32 %v4532_v58, %v2397_v0  ;;  %p4890_p3 = scmp.ne.s32.totalorder %s3651_s11, %s4889_s22  ;;  %p4895_p5 = scmp.lt.s32.totalorder %s4889_s22, %s4889_s22 }
 0x471   :  { %v2407_v7 = vadd.f32 %v4497_v5, %v3683_v48  ;;  %v2847_v44 = vadd.f32 %v2828_v24, %v2392_v2 }
 0x472   :  { %v2838_v55 = vpop.f32.mrf.mxu1  ;;  %v2401_v14 = vpop.f32.mrf.mxu0  ;;  %p4896_p6 = por %p4895_p5, %p4894_p4 }
 0x473   :  { %v2402_v34 = vadd.f32 %v3683_v48, %v2401_v14  ;;  %v2850_v16 = vadd.f32 %v4535_v53, %v2407_v7 }
 0x474   :  { %v4608_v50 = vpop.f32.mrf.mxu1  ;;  %p4897_p7 = pnand %p4896_p6, %p4890_p3 }
 0x475   :  { %v2849_v45 = vadd.f32 %v2838_v55, %v2402_v34 }
 0x476   :  { %v3614_v17 = vpop.f32.mrf.mxu1 }
 0x478   :  { %v4611_v28 = vpop.f32.mrf.mxu1 }
 0x47a   :  { %v3624_v6 = vpop.f32.mrf.mxu1 }
 0x48b   :  { %v4570_v36 = vpop.f32.mrf.mxu0 }
 0x48c   :  { %v3289_v63 = vadd.f32 %v4570_v36, %v2848_v41 }
 0x48d   :  { %v3269_v12 = vpop.f32.mrf.mxu0 }
 0x48e   :  { %v3634_v20 = vadd.f32 %v4608_v50, %v3289_v63  ;;  %v3288_v57 = vadd.f32 %v3269_v12, %v2847_v44 }
 0x48f   :  { %v4573_v30 = vpop.f32.mrf.mxu0 }
 0x490   :  { %v3638_v18 = vmax.f32 %v3634_v20, 0.0  ;;  %v3633_v51 = vadd.f32 %v3614_v17, %v3288_v57  ;;  %v3291_v25 = vadd.f32 %v4573_v30, %v2850_v16 }
 0x491   :  { %v3279_v38 = vpop.f32.mrf.mxu0 }
 0x492   :  { %3642 = vst [vmem:[#allocation17 + $0x8] sm:$0xff] %v3638_v18  ;;  %v3637_v31 = vmax.f32 %v3633_v51, 0.0  ;;  %v3636_v27 = vadd.f32 %v4611_v28, %v3291_v25  ;;  %v3290_v3 = vadd.f32 %v3279_v38, %v2849_v45 }
 0x494   :  { %3641 = vst [vmem:[#allocation17] sm:$0xff] %v3637_v31  ;;  %v3640_v1 = vmax.f32 %v3636_v27, 0.0  ;;  %v3635_v11 = vadd.f32 %v3624_v6, %v3290_v3 }
 0x496   :  { %3644 = vst [vmem:[#allocation17 + $0x18] sm:$0xff] %v3640_v1  ;;  %v3639_v40 = vmax.f32 %v3635_v11, 0.0 }
 0x498   :  { %3643 = vst [vmem:[#allocation17 + $0x10] sm:$0xff] %v3639_v40 }
 0x499   :  { %4900 = shalt.err (!%p4897_p7)
}
 0x49a   :  { %3656 = dma.vmem_to_hbm [thread:$0]  %s3651_s11, 512, %s7968_s10, [#allocation5], %s4928_s29, %s4928_s29, %s4929_s30  }
 0x49b   :  { %4919 = dma.done.wait [#allocation5], 512  }
 0x49c   :  { %4920 = vsyncadd [#allocation5], 4294966784 }
 0x49d   :  { %4921 = dma.done.wait [#allocation19], 512  }
 0x49e   :  { %4922 = vsyncadd [#allocation19], 4294966784 }
 0x49f   :  { %3675 = vsyncpa [#allocation4], 1 }
 0x4a0   :  { %3676 = vsyncpa [#allocation7], 1 }
 0x4a1   :  { %3677 = vsyncpa [#allocation10], 1 }
 0x4a2   :  { %3678 = vsyncpa [#allocation13], 1 }
 0x4a3   :  { %3679 = vsyncpa [#allocation16], 1 }
 0x4a4   :  { %3680 = vsyncpa [#allocation5], 1 }
 0x4a5   :  { %3681 = vsyncpa [#allocation19], 1 }

</bundles_post_ra>
